<compile_context>
chip_gen: v7x
topology: tpu7x:2x2x1
jax: 0.10.0
libtpu: 0.0.40
codegen_flags: <defaults>
</compile_context>

<pallas_src>
import jax
import jax.numpy as jnp
from jax.experimental import pallas as pl
from jax.experimental.pallas import tpu as pltpu


# ---------------------------------------------------------------------------
# In-kernel building blocks (all shapes static; Python loops unroll at trace)
# ---------------------------------------------------------------------------
def _conv3x3_s2_relu(x_padded, w_ref, b_ref):
    """3x3 conv, stride (2,1), on an already zero-padded activation value.

    x_padded : (Hin+2, Win+2, Cin) f32 value
    w_ref    : (9, Cin, Cout) ref  -- tap-major folded Conv*BN weights
    b_ref    : (1, Cout) ref       -- folded bias
    returns  : (Ho*Wo, Cout) f32 value with ReLU applied; Ho=Hin//2, Wo=Win
    """
    Hp, Wp, Cin = x_padded.shape
    Ho = (Hp - 2) // 2
    Wo = Wp - 2
    # Even/odd row planes: xeo[q, p] == x_padded[2*q + p].  Only the leading
    # dim is split (layout no-op), so stride-2 row selection becomes a plain
    # static slice + integer index.
    xeo = x_padded.reshape(Hp // 2, 2, Wp, Cin)
    acc = None
    for i in range(3):
        for j in range(3):
            tap = xeo[i // 2:i // 2 + Ho, i % 2, j:j + Wo, :]   # (Ho, Wo, Cin)
            tap2d = tap.reshape(Ho * Wo, Cin)
            part = jnp.dot(tap2d, w_ref[3 * i + j],
                           preferred_element_type=jnp.float32)
            acc = part if acc is None else acc + part
    return jnp.maximum(acc + b_ref[...], 0.0)                    # (Ho*Wo, Cout)


def _store_zero_padded(dst_ref, y2d):
    """Store y2d into dst_ref's interior with a zero border (for next conv)."""
    Hp, Wp, C = dst_ref.shape
    Ho, Wo = Hp - 2, Wp - 2
    dst_ref[...] = jnp.zeros((Hp, Wp, C), dst_ref.dtype)
    dst_ref[1:1 + Ho, 1:1 + Wo, :] = y2d.reshape(Ho, Wo, C)


def _fused_chain_kernel(xp_ref, w1_ref, b1_ref, w2_ref, b2_ref,
                        w3_ref, b3_ref, w4_ref, b4_ref, o_ref,
                        s1_ref, s2_ref):
    """One batch element: 3x [3x3, s=(2,1), p=(1,1)] conv + one (4,1) valid."""
    y1 = _conv3x3_s2_relu(xp_ref[...], w1_ref, b1_ref)
    _store_zero_padded(s1_ref, y1)
    y2 = _conv3x3_s2_relu(s1_ref[...], w2_ref, b2_ref)
    _store_zero_padded(s2_ref, y2)
    y3 = _conv3x3_s2_relu(s2_ref[...], w3_ref, b3_ref)

    # Layer 4: (4,1) kernel, stride (1,1), no padding -> collapses H.
    Ho3 = (s2_ref.shape[0] - 2) // 2
    W = s2_ref.shape[1] - 2
    C3 = w3_ref.shape[-1]
    x3 = y3.reshape(Ho3, W, C3)
    for ho in range(Ho3 - 3):
        acc = None
        for i in range(4):
            part = jnp.dot(x3[ho + i], w4_ref[i],
                           preferred_element_type=jnp.float32)
            acc = part if acc is None else acc + part
        o_ref[ho, :, :] = jnp.maximum(acc + b4_ref[...], 0.0).astype(o_ref.dtype)


# ---------------------------------------------------------------------------
# Wrapper: one pallas_call over the batch
# ---------------------------------------------------------------------------
def fused_2layer_scale1(x_nchw, folded):
    """x_nchw: (N, C, H, W) f32.  folded: 4 pairs of (w_taps, bias)."""
    N, Cin, H, W = x_nchw.shape
    assert H % 8 == 0 and H >= 32, "need H divisible by 8 and >= 32"
    (w1, b1), (w2, b2), (w3, b3), (w4, b4) = folded
    C1, C2, C3, C4 = w1.shape[-1], w2.shape[-1], w3.shape[-1], w4.shape[-1]
    H1, H2, H3 = H // 2, H // 4, H // 8
    Ho4 = H3 - 3

    # Only per-call glue: NCHW -> NHWC (channels on lanes) + 1-px zero pad.
    xp = jnp.pad(jnp.transpose(x_nchw, (0, 2, 3, 1)),
                 ((0, 0), (1, 1), (1, 1), (0, 0)))

    def _whole(shape):
        nd = len(shape)
        return pl.BlockSpec(tuple(shape), lambda b, _nd=nd: (0,) * _nd)

    out = pl.pallas_call(
        _fused_chain_kernel,
        out_shape=jax.ShapeDtypeStruct((N, Ho4, W, C4), jnp.float32),
        grid=(N,),
        in_specs=[
            pl.BlockSpec((None, H + 2, W + 2, Cin), lambda b: (b, 0, 0, 0)),
            _whole(w1.shape), _whole(b1.shape),
            _whole(w2.shape), _whole(b2.shape),
            _whole(w3.shape), _whole(b3.shape),
            _whole(w4.shape), _whole(b4.shape),
        ],
        out_specs=pl.BlockSpec((None, Ho4, W, C4), lambda b: (b, 0, 0, 0)),
        scratch_shapes=[
            pltpu.VMEM((H1 + 2, W + 2, C1), jnp.float32),  # padded layer-1 out
            pltpu.VMEM((H2 + 2, W + 2, C2), jnp.float32),  # padded layer-2 out
        ],
        compiler_params=pltpu.CompilerParams(
            dimension_semantics=("parallel",),   # batch across v7x's 2 TCs
        ),
    )(xp, w1, b1, w2, b2, w3, b3, w4, b4)

    return jnp.transpose(out, (0, 3, 1, 2))      # -> NCHW, matching PyTorch


# ---------------------------------------------------------------------------
# Parameter init, eval-mode BN folding, and the module
# ---------------------------------------------------------------------------
def _init_conv_bn(key, cin, cout, kh, kw):
    kw_, kb, kg, kbe, km, kv = jax.random.split(key, 6)
    fan_in = cin * kh * kw
    w = jax.random.normal(kw_, (cout, cin, kh, kw), jnp.float32) * (2.0 / fan_in) ** 0.5
    b = 0.1 * jax.random.normal(kb, (cout,), jnp.float32)
    gamma = 1.0 + 0.2 * jax.random.normal(kg, (cout,), jnp.float32)
    beta = 0.1 * jax.random.normal(kbe, (cout,), jnp.float32)
    r_mean = 0.1 * jax.random.normal(km, (cout,), jnp.float32)
    r_var = jax.random.uniform(kv, (cout,), jnp.float32, 0.5, 1.5)
    return (w, b, gamma, beta, r_mean, r_var)


def _fold_conv_bn(params, eps=1e-5):
    """Fold eval-mode BatchNorm into tap-major matmul weights + bias."""
    w, b, gamma, beta, mean, var = params
    cout, cin, kh, kw = w.shape
    inv_std = gamma / jnp.sqrt(var + eps)
    w_taps = jnp.transpose(w, (2, 3, 1, 0)).reshape(kh * kw, cin, cout) * inv_std
    bias = (beta + (b - mean) * inv_std).reshape(1, cout)
    return w_taps.astype(jnp.float32), bias.astype(jnp.float32)


class TwoLayerScale1:
    """JAX/Pallas port of _2LayerScale1 (four conv_keep_W blocks)."""

    def __init__(self, backbone_depth, feature, key):
        keys = jax.random.split(key, 4)
        cin = backbone_depth
        self.raw_layers = []     # (params, stride, padding) -- kept for reference
        for li in range(3):
            cout = 2 * feature
            self.raw_layers.append(
                (_init_conv_bn(keys[li], cin, cout, 3, 3), (2, 1), (1, 1)))
            feature = cout
            cin = cout
        cout = 2 * feature
        self.raw_layers.append(
            (_init_conv_bn(keys[3], cin, cout, 4, 1), (1, 1), (0, 0)))
        self.depth = cout
        # Fold BN once at init -> no per-call folding glue.
        self.folded = [_fold_conv_bn(p) for p, _, _ in self.raw_layers]

    def forward(self, x_nchw):
        return fused_2layer_scale1(x_nchw, self.folded)


def reference_forward(x_nchw, raw_layers, eps=1e-5):
    """Pure-JAX f32 reference (Conv2d + eval-mode BN + ReLU per block)."""
    y = x_nchw
    for (w, b, gamma, beta, mean, var), stride, pad in raw_layers:
        y = jax.lax.conv_general_dilated(
            y, w, window_strides=stride,
            padding=((pad[0], pad[0]), (pad[1], pad[1])),
            dimension_numbers=("NCHW", "OIHW", "NCHW"),
            precision=jax.lax.Precision.HIGHEST)
        y = y + b[None, :, None, None]
        inv = (gamma / jnp.sqrt(var + eps))[None, :, None, None]
        y = (y - mean[None, :, None, None]) * inv + beta[None, :, None, None]
        y = jnp.maximum(y, 0.0)
    return y


if __name__ == "__main__":
    key = jax.random.PRNGKey(0)
    k_param, k_input = jax.random.split(key)

    backbone_depth = 4
    feature = 4
    # H=32: three stride-(2,1) convs -> H=4, then the (4,1) valid conv -> H=1.
    # W=16 is preserved by every layer ("keep_W").
    x = jax.random.normal(k_input, (2, backbone_depth, 32, 16), jnp.float32)

    model = TwoLayerScale1(backbone_depth, feature, k_param)
    fwd = jax.jit(model.forward)
    out = jax.block_until_ready(fwd(x))

    expected = (2, model.depth, 1, 16)               # (2, 64, 1, 16)
    assert out.shape == expected, f"got {out.shape}, expected {expected}"

    ref = reference_forward(x, model.raw_layers)
    assert ref.shape == out.shape
    max_err = float(jnp.max(jnp.abs(out - ref)))
    assert max_err < 1e-2, f"max |pallas - reference| = {max_err}"
    assert bool(jnp.all(out >= 0.0)), "ReLU output must be non-negative"

    print("KERNEL_OK")
</pallas_src>

<mosaic_0001>
module attributes {stable_mosaic.version = 11 : i64} {
  func.func @_fused_chain_kernel(%arg0: i32, %arg1: memref<1x34x18x4xf32, #tpu.memory_space<vmem>>, %arg2: memref<9x4x8xf32, #tpu.memory_space<vmem>>, %arg3: memref<1x8xf32, #tpu.memory_space<vmem>>, %arg4: memref<9x8x16xf32, #tpu.memory_space<vmem>>, %arg5: memref<1x16xf32, #tpu.memory_space<vmem>>, %arg6: memref<9x16x32xf32, #tpu.memory_space<vmem>>, %arg7: memref<1x32xf32, #tpu.memory_space<vmem>>, %arg8: memref<4x32x64xf32, #tpu.memory_space<vmem>>, %arg9: memref<1x64xf32, #tpu.memory_space<vmem>>, %arg10: memref<1x1x16x64xf32, #tpu.memory_space<vmem>>, %arg11: memref<18x18x8xf32, #tpu.memory_space<vmem>>, %arg12: memref<10x18x16xf32, #tpu.memory_space<vmem>>) attributes {dimension_semantics = [#tpu.dimension_semantics<parallel>], iteration_bounds = array<i64: 2>, scalar_prefetch = 0 : i64, scratch_operands = 2 : i64, tpu.core_type = #tpu.core_type<tc>, window_params = [{transform_indices = @transform_0, window_bounds = array<i64: 1, 34, 18, 4>}, {pipeline_mode = #tpu.pipeline_mode<synchronous>, transform_indices = @transform_1, window_bounds = array<i64: 9, 4, 8>}, {pipeline_mode = #tpu.pipeline_mode<synchronous>, transform_indices = @transform_2, window_bounds = array<i64: 1, 8>}, {pipeline_mode = #tpu.pipeline_mode<synchronous>, transform_indices = @transform_3, window_bounds = array<i64: 9, 8, 16>}, {pipeline_mode = #tpu.pipeline_mode<synchronous>, transform_indices = @transform_4, window_bounds = array<i64: 1, 16>}, {pipeline_mode = #tpu.pipeline_mode<synchronous>, transform_indices = @transform_5, window_bounds = array<i64: 9, 16, 32>}, {pipeline_mode = #tpu.pipeline_mode<synchronous>, transform_indices = @transform_6, window_bounds = array<i64: 1, 32>}, {pipeline_mode = #tpu.pipeline_mode<synchronous>, transform_indices = @transform_7, window_bounds = array<i64: 4, 32, 64>}, {pipeline_mode = #tpu.pipeline_mode<synchronous>, transform_indices = @transform_8, window_bounds = array<i64: 1, 64>}, {transform_indices = @transform_9, window_bounds = array<i64: 1, 1, 16, 64>}]} {
    %c0 = arith.constant 0 : index
    %c0_0 = arith.constant 0 : index
    %c0_1 = arith.constant 0 : index
    %c0_2 = arith.constant 0 : index
    %0 = vector.load %arg1[%c0, %c0_0, %c0_1, %c0_2] : memref<1x34x18x4xf32, #tpu.memory_space<vmem>>, vector<1x34x18x4xf32>
    %1 = vector.shape_cast %0 : vector<1x34x18x4xf32> to vector<34x18x4xf32>
    %2 = vector.shape_cast %1 : vector<34x18x4xf32> to vector<17x2x18x4xf32>
    %3 = vector.extract_strided_slice %2 {offsets = [0, 0, 0, 0], sizes = [16, 1, 16, 4], strides = [1, 1, 1, 1]} : vector<17x2x18x4xf32> to vector<16x1x16x4xf32>
    %4 = vector.shape_cast %3 : vector<16x1x16x4xf32> to vector<16x16x4xf32>
    %5 = vector.shape_cast %4 : vector<16x16x4xf32> to vector<256x4xf32>
    %c0_3 = arith.constant 0 : index
    %c0_4 = arith.constant 0 : index
    %c0_5 = arith.constant 0 : index
    %6 = vector.load %arg2[%c0_3, %c0_4, %c0_5] : memref<9x4x8xf32, #tpu.memory_space<vmem>>, vector<1x4x8xf32>
    %7 = vector.shape_cast %6 : vector<1x4x8xf32> to vector<4x8xf32>
    %cst = arith.constant dense<0.000000e+00> : vector<256x8xf32>
    %8 = tpu.matmul %5, %7, %cst {dimension_numbers = #tpu.dot_dimension_numbers<[1], [0], [0], [1], [0, 0, 1, 1], [], []>} : vector<256x4xf32>, vector<4x8xf32>, vector<256x8xf32> -> vector<256x8xf32>
    %9 = vector.extract_strided_slice %2 {offsets = [0, 0, 1, 0], sizes = [16, 1, 16, 4], strides = [1, 1, 1, 1]} : vector<17x2x18x4xf32> to vector<16x1x16x4xf32>
    %10 = vector.shape_cast %9 : vector<16x1x16x4xf32> to vector<16x16x4xf32>
    %11 = vector.shape_cast %10 : vector<16x16x4xf32> to vector<256x4xf32>
    %c1 = arith.constant 1 : index
    %c0_6 = arith.constant 0 : index
    %c0_7 = arith.constant 0 : index
    %12 = vector.load %arg2[%c1, %c0_6, %c0_7] : memref<9x4x8xf32, #tpu.memory_space<vmem>>, vector<1x4x8xf32>
    %13 = vector.shape_cast %12 : vector<1x4x8xf32> to vector<4x8xf32>
    %cst_8 = arith.constant dense<0.000000e+00> : vector<256x8xf32>
    %14 = tpu.matmul %11, %13, %cst_8 {dimension_numbers = #tpu.dot_dimension_numbers<[1], [0], [0], [1], [0, 0, 1, 1], [], []>} : vector<256x4xf32>, vector<4x8xf32>, vector<256x8xf32> -> vector<256x8xf32>
    %15 = arith.addf %8, %14 : vector<256x8xf32>
    %16 = vector.extract_strided_slice %2 {offsets = [0, 0, 2, 0], sizes = [16, 1, 16, 4], strides = [1, 1, 1, 1]} : vector<17x2x18x4xf32> to vector<16x1x16x4xf32>
    %17 = vector.shape_cast %16 : vector<16x1x16x4xf32> to vector<16x16x4xf32>
    %18 = vector.shape_cast %17 : vector<16x16x4xf32> to vector<256x4xf32>
    %c2 = arith.constant 2 : index
    %c0_9 = arith.constant 0 : index
    %c0_10 = arith.constant 0 : index
    %19 = vector.load %arg2[%c2, %c0_9, %c0_10] : memref<9x4x8xf32, #tpu.memory_space<vmem>>, vector<1x4x8xf32>
    %20 = vector.shape_cast %19 : vector<1x4x8xf32> to vector<4x8xf32>
    %cst_11 = arith.constant dense<0.000000e+00> : vector<256x8xf32>
    %21 = tpu.matmul %18, %20, %cst_11 {dimension_numbers = #tpu.dot_dimension_numbers<[1], [0], [0], [1], [0, 0, 1, 1], [], []>} : vector<256x4xf32>, vector<4x8xf32>, vector<256x8xf32> -> vector<256x8xf32>
    %22 = arith.addf %15, %21 : vector<256x8xf32>
    %23 = vector.extract_strided_slice %2 {offsets = [0, 1, 0, 0], sizes = [16, 1, 16, 4], strides = [1, 1, 1, 1]} : vector<17x2x18x4xf32> to vector<16x1x16x4xf32>
    %24 = vector.shape_cast %23 : vector<16x1x16x4xf32> to vector<16x16x4xf32>
    %25 = vector.shape_cast %24 : vector<16x16x4xf32> to vector<256x4xf32>
    %c3 = arith.constant 3 : index
    %c0_12 = arith.constant 0 : index
    %c0_13 = arith.constant 0 : index
    %26 = vector.load %arg2[%c3, %c0_12, %c0_13] : memref<9x4x8xf32, #tpu.memory_space<vmem>>, vector<1x4x8xf32>
    %27 = vector.shape_cast %26 : vector<1x4x8xf32> to vector<4x8xf32>
    %cst_14 = arith.constant dense<0.000000e+00> : vector<256x8xf32>
    %28 = tpu.matmul %25, %27, %cst_14 {dimension_numbers = #tpu.dot_dimension_numbers<[1], [0], [0], [1], [0, 0, 1, 1], [], []>} : vector<256x4xf32>, vector<4x8xf32>, vector<256x8xf32> -> vector<256x8xf32>
    %29 = arith.addf %22, %28 : vector<256x8xf32>
    %30 = vector.extract_strided_slice %2 {offsets = [0, 1, 1, 0], sizes = [16, 1, 16, 4], strides = [1, 1, 1, 1]} : vector<17x2x18x4xf32> to vector<16x1x16x4xf32>
    %31 = vector.shape_cast %30 : vector<16x1x16x4xf32> to vector<16x16x4xf32>
    %32 = vector.shape_cast %31 : vector<16x16x4xf32> to vector<256x4xf32>
    %c4 = arith.constant 4 : index
    %c0_15 = arith.constant 0 : index
    %c0_16 = arith.constant 0 : index
    %33 = vector.load %arg2[%c4, %c0_15, %c0_16] : memref<9x4x8xf32, #tpu.memory_space<vmem>>, vector<1x4x8xf32>
    %34 = vector.shape_cast %33 : vector<1x4x8xf32> to vector<4x8xf32>
    %cst_17 = arith.constant dense<0.000000e+00> : vector<256x8xf32>
    %35 = tpu.matmul %32, %34, %cst_17 {dimension_numbers = #tpu.dot_dimension_numbers<[1], [0], [0], [1], [0, 0, 1, 1], [], []>} : vector<256x4xf32>, vector<4x8xf32>, vector<256x8xf32> -> vector<256x8xf32>
    %36 = arith.addf %29, %35 : vector<256x8xf32>
    %37 = vector.extract_strided_slice %2 {offsets = [0, 1, 2, 0], sizes = [16, 1, 16, 4], strides = [1, 1, 1, 1]} : vector<17x2x18x4xf32> to vector<16x1x16x4xf32>
    %38 = vector.shape_cast %37 : vector<16x1x16x4xf32> to vector<16x16x4xf32>
    %39 = vector.shape_cast %38 : vector<16x16x4xf32> to vector<256x4xf32>
    %c5 = arith.constant 5 : index
    %c0_18 = arith.constant 0 : index
    %c0_19 = arith.constant 0 : index
    %40 = vector.load %arg2[%c5, %c0_18, %c0_19] : memref<9x4x8xf32, #tpu.memory_space<vmem>>, vector<1x4x8xf32>
    %41 = vector.shape_cast %40 : vector<1x4x8xf32> to vector<4x8xf32>
    %cst_20 = arith.constant dense<0.000000e+00> : vector<256x8xf32>
    %42 = tpu.matmul %39, %41, %cst_20 {dimension_numbers = #tpu.dot_dimension_numbers<[1], [0], [0], [1], [0, 0, 1, 1], [], []>} : vector<256x4xf32>, vector<4x8xf32>, vector<256x8xf32> -> vector<256x8xf32>
    %43 = arith.addf %36, %42 : vector<256x8xf32>
    %44 = vector.extract_strided_slice %2 {offsets = [1, 0, 0, 0], sizes = [16, 1, 16, 4], strides = [1, 1, 1, 1]} : vector<17x2x18x4xf32> to vector<16x1x16x4xf32>
    %45 = vector.shape_cast %44 : vector<16x1x16x4xf32> to vector<16x16x4xf32>
    %46 = vector.shape_cast %45 : vector<16x16x4xf32> to vector<256x4xf32>
    %c6 = arith.constant 6 : index
    %c0_21 = arith.constant 0 : index
    %c0_22 = arith.constant 0 : index
    %47 = vector.load %arg2[%c6, %c0_21, %c0_22] : memref<9x4x8xf32, #tpu.memory_space<vmem>>, vector<1x4x8xf32>
    %48 = vector.shape_cast %47 : vector<1x4x8xf32> to vector<4x8xf32>
    %cst_23 = arith.constant dense<0.000000e+00> : vector<256x8xf32>
    %49 = tpu.matmul %46, %48, %cst_23 {dimension_numbers = #tpu.dot_dimension_numbers<[1], [0], [0], [1], [0, 0, 1, 1], [], []>} : vector<256x4xf32>, vector<4x8xf32>, vector<256x8xf32> -> vector<256x8xf32>
    %50 = arith.addf %43, %49 : vector<256x8xf32>
    %51 = vector.extract_strided_slice %2 {offsets = [1, 0, 1, 0], sizes = [16, 1, 16, 4], strides = [1, 1, 1, 1]} : vector<17x2x18x4xf32> to vector<16x1x16x4xf32>
    %52 = vector.shape_cast %51 : vector<16x1x16x4xf32> to vector<16x16x4xf32>
    %53 = vector.shape_cast %52 : vector<16x16x4xf32> to vector<256x4xf32>
    %c7 = arith.constant 7 : index
    %c0_24 = arith.constant 0 : index
    %c0_25 = arith.constant 0 : index
    %54 = vector.load %arg2[%c7, %c0_24, %c0_25] : memref<9x4x8xf32, #tpu.memory_space<vmem>>, vector<1x4x8xf32>
    %55 = vector.shape_cast %54 : vector<1x4x8xf32> to vector<4x8xf32>
    %cst_26 = arith.constant dense<0.000000e+00> : vector<256x8xf32>
    %56 = tpu.matmul %53, %55, %cst_26 {dimension_numbers = #tpu.dot_dimension_numbers<[1], [0], [0], [1], [0, 0, 1, 1], [], []>} : vector<256x4xf32>, vector<4x8xf32>, vector<256x8xf32> -> vector<256x8xf32>
    %57 = arith.addf %50, %56 : vector<256x8xf32>
    %58 = vector.extract_strided_slice %2 {offsets = [1, 0, 2, 0], sizes = [16, 1, 16, 4], strides = [1, 1, 1, 1]} : vector<17x2x18x4xf32> to vector<16x1x16x4xf32>
    %59 = vector.shape_cast %58 : vector<16x1x16x4xf32> to vector<16x16x4xf32>
    %60 = vector.shape_cast %59 : vector<16x16x4xf32> to vector<256x4xf32>
    %c8 = arith.constant 8 : index
    %c0_27 = arith.constant 0 : index
    %c0_28 = arith.constant 0 : index
    %61 = vector.load %arg2[%c8, %c0_27, %c0_28] : memref<9x4x8xf32, #tpu.memory_space<vmem>>, vector<1x4x8xf32>
    %62 = vector.shape_cast %61 : vector<1x4x8xf32> to vector<4x8xf32>
    %cst_29 = arith.constant dense<0.000000e+00> : vector<256x8xf32>
    %63 = tpu.matmul %60, %62, %cst_29 {dimension_numbers = #tpu.dot_dimension_numbers<[1], [0], [0], [1], [0, 0, 1, 1], [], []>} : vector<256x4xf32>, vector<4x8xf32>, vector<256x8xf32> -> vector<256x8xf32>
    %64 = arith.addf %57, %63 : vector<256x8xf32>
    %c0_30 = arith.constant 0 : index
    %c0_31 = arith.constant 0 : index
    %65 = vector.load %arg3[%c0_30, %c0_31] : memref<1x8xf32, #tpu.memory_space<vmem>>, vector<1x8xf32>
    %66 = vector.broadcast %65 : vector<1x8xf32> to vector<256x8xf32>
    %67 = arith.addf %64, %66 : vector<256x8xf32>
    %cst_32 = arith.constant 0.000000e+00 : f32
    %68 = vector.broadcast %cst_32 : f32 to vector<256x8xf32>
    %69 = arith.maximumf %67, %68 : vector<256x8xf32>
    %cst_33 = arith.constant 0.000000e+00 : f32
    %70 = vector.broadcast %cst_33 : f32 to vector<18x18x8xf32>
    %c0_34 = arith.constant 0 : index
    %c0_35 = arith.constant 0 : index
    %c0_36 = arith.constant 0 : index
    %71 = vector.load %arg11[%c0_34, %c0_35, %c0_36] : memref<18x18x8xf32, #tpu.memory_space<vmem>>, vector<18x18x8xf32>
    tpu.vector_store %arg11[%c0_34, %c0_35, %c0_36], %70 {strides = array<i32>} : memref<18x18x8xf32, #tpu.memory_space<vmem>>, vector<18x18x8xf32>,
    %72 = vector.shape_cast %69 : vector<256x8xf32> to vector<16x16x8xf32>
    %c1_37 = arith.constant 1 : index
    %c1_38 = arith.constant 1 : index
    %c0_39 = arith.constant 0 : index
    %73 = vector.load %arg11[%c1_37, %c1_38, %c0_39] : memref<18x18x8xf32, #tpu.memory_space<vmem>>, vector<16x16x8xf32>
    tpu.vector_store %arg11[%c1_37, %c1_38, %c0_39], %72 {strides = array<i32>} : memref<18x18x8xf32, #tpu.memory_space<vmem>>, vector<16x16x8xf32>,
    %c0_40 = arith.constant 0 : index
    %c0_41 = arith.constant 0 : index
    %c0_42 = arith.constant 0 : index
    %74 = vector.load %arg11[%c0_40, %c0_41, %c0_42] : memref<18x18x8xf32, #tpu.memory_space<vmem>>, vector<18x18x8xf32>
    %75 = vector.shape_cast %74 : vector<18x18x8xf32> to vector<9x2x18x8xf32>
    %76 = vector.extract_strided_slice %75 {offsets = [0, 0, 0, 0], sizes = [8, 1, 16, 8], strides = [1, 1, 1, 1]} : vector<9x2x18x8xf32> to vector<8x1x16x8xf32>
    %77 = vector.shape_cast %76 : vector<8x1x16x8xf32> to vector<8x16x8xf32>
    %78 = vector.shape_cast %77 : vector<8x16x8xf32> to vector<128x8xf32>
    %c0_43 = arith.constant 0 : index
    %c0_44 = arith.constant 0 : index
    %c0_45 = arith.constant 0 : index
    %79 = vector.load %arg4[%c0_43, %c0_44, %c0_45] : memref<9x8x16xf32, #tpu.memory_space<vmem>>, vector<1x8x16xf32>
    %80 = vector.shape_cast %79 : vector<1x8x16xf32> to vector<8x16xf32>
    %cst_46 = arith.constant dense<0.000000e+00> : vector<128x16xf32>
    %81 = tpu.matmul %78, %80, %cst_46 {dimension_numbers = #tpu.dot_dimension_numbers<[1], [0], [0], [1], [0, 0, 1, 1], [], []>} : vector<128x8xf32>, vector<8x16xf32>, vector<128x16xf32> -> vector<128x16xf32>
    %82 = vector.extract_strided_slice %75 {offsets = [0, 0, 1, 0], sizes = [8, 1, 16, 8], strides = [1, 1, 1, 1]} : vector<9x2x18x8xf32> to vector<8x1x16x8xf32>
    %83 = vector.shape_cast %82 : vector<8x1x16x8xf32> to vector<8x16x8xf32>
    %84 = vector.shape_cast %83 : vector<8x16x8xf32> to vector<128x8xf32>
    %c1_47 = arith.constant 1 : index
    %c0_48 = arith.constant 0 : index
    %c0_49 = arith.constant 0 : index
    %85 = vector.load %arg4[%c1_47, %c0_48, %c0_49] : memref<9x8x16xf32, #tpu.memory_space<vmem>>, vector<1x8x16xf32>
    %86 = vector.shape_cast %85 : vector<1x8x16xf32> to vector<8x16xf32>
    %cst_50 = arith.constant dense<0.000000e+00> : vector<128x16xf32>
    %87 = tpu.matmul %84, %86, %cst_50 {dimension_numbers = #tpu.dot_dimension_numbers<[1], [0], [0], [1], [0, 0, 1, 1], [], []>} : vector<128x8xf32>, vector<8x16xf32>, vector<128x16xf32> -> vector<128x16xf32>
    %88 = arith.addf %81, %87 : vector<128x16xf32>
    %89 = vector.extract_strided_slice %75 {offsets = [0, 0, 2, 0], sizes = [8, 1, 16, 8], strides = [1, 1, 1, 1]} : vector<9x2x18x8xf32> to vector<8x1x16x8xf32>
    %90 = vector.shape_cast %89 : vector<8x1x16x8xf32> to vector<8x16x8xf32>
    %91 = vector.shape_cast %90 : vector<8x16x8xf32> to vector<128x8xf32>
    %c2_51 = arith.constant 2 : index
    %c0_52 = arith.constant 0 : index
    %c0_53 = arith.constant 0 : index
    %92 = vector.load %arg4[%c2_51, %c0_52, %c0_53] : memref<9x8x16xf32, #tpu.memory_space<vmem>>, vector<1x8x16xf32>
    %93 = vector.shape_cast %92 : vector<1x8x16xf32> to vector<8x16xf32>
    %cst_54 = arith.constant dense<0.000000e+00> : vector<128x16xf32>
    %94 = tpu.matmul %91, %93, %cst_54 {dimension_numbers = #tpu.dot_dimension_numbers<[1], [0], [0], [1], [0, 0, 1, 1], [], []>} : vector<128x8xf32>, vector<8x16xf32>, vector<128x16xf32> -> vector<128x16xf32>
    %95 = arith.addf %88, %94 : vector<128x16xf32>
    %96 = vector.extract_strided_slice %75 {offsets = [0, 1, 0, 0], sizes = [8, 1, 16, 8], strides = [1, 1, 1, 1]} : vector<9x2x18x8xf32> to vector<8x1x16x8xf32>
    %97 = vector.shape_cast %96 : vector<8x1x16x8xf32> to vector<8x16x8xf32>
    %98 = vector.shape_cast %97 : vector<8x16x8xf32> to vector<128x8xf32>
    %c3_55 = arith.constant 3 : index
    %c0_56 = arith.constant 0 : index
    %c0_57 = arith.constant 0 : index
    %99 = vector.load %arg4[%c3_55, %c0_56, %c0_57] : memref<9x8x16xf32, #tpu.memory_space<vmem>>, vector<1x8x16xf32>
    %100 = vector.shape_cast %99 : vector<1x8x16xf32> to vector<8x16xf32>
    %cst_58 = arith.constant dense<0.000000e+00> : vector<128x16xf32>
    %101 = tpu.matmul %98, %100, %cst_58 {dimension_numbers = #tpu.dot_dimension_numbers<[1], [0], [0], [1], [0, 0, 1, 1], [], []>} : vector<128x8xf32>, vector<8x16xf32>, vector<128x16xf32> -> vector<128x16xf32>
    %102 = arith.addf %95, %101 : vector<128x16xf32>
    %103 = vector.extract_strided_slice %75 {offsets = [0, 1, 1, 0], sizes = [8, 1, 16, 8], strides = [1, 1, 1, 1]} : vector<9x2x18x8xf32> to vector<8x1x16x8xf32>
    %104 = vector.shape_cast %103 : vector<8x1x16x8xf32> to vector<8x16x8xf32>
    %105 = vector.shape_cast %104 : vector<8x16x8xf32> to vector<128x8xf32>
    %c4_59 = arith.constant 4 : index
    %c0_60 = arith.constant 0 : index
    %c0_61 = arith.constant 0 : index
    %106 = vector.load %arg4[%c4_59, %c0_60, %c0_61] : memref<9x8x16xf32, #tpu.memory_space<vmem>>, vector<1x8x16xf32>
    %107 = vector.shape_cast %106 : vector<1x8x16xf32> to vector<8x16xf32>
    %cst_62 = arith.constant dense<0.000000e+00> : vector<128x16xf32>
    %108 = tpu.matmul %105, %107, %cst_62 {dimension_numbers = #tpu.dot_dimension_numbers<[1], [0], [0], [1], [0, 0, 1, 1], [], []>} : vector<128x8xf32>, vector<8x16xf32>, vector<128x16xf32> -> vector<128x16xf32>
    %109 = arith.addf %102, %108 : vector<128x16xf32>
    %110 = vector.extract_strided_slice %75 {offsets = [0, 1, 2, 0], sizes = [8, 1, 16, 8], strides = [1, 1, 1, 1]} : vector<9x2x18x8xf32> to vector<8x1x16x8xf32>
    %111 = vector.shape_cast %110 : vector<8x1x16x8xf32> to vector<8x16x8xf32>
    %112 = vector.shape_cast %111 : vector<8x16x8xf32> to vector<128x8xf32>
    %c5_63 = arith.constant 5 : index
    %c0_64 = arith.constant 0 : index
    %c0_65 = arith.constant 0 : index
    %113 = vector.load %arg4[%c5_63, %c0_64, %c0_65] : memref<9x8x16xf32, #tpu.memory_space<vmem>>, vector<1x8x16xf32>
    %114 = vector.shape_cast %113 : vector<1x8x16xf32> to vector<8x16xf32>
    %cst_66 = arith.constant dense<0.000000e+00> : vector<128x16xf32>
    %115 = tpu.matmul %112, %114, %cst_66 {dimension_numbers = #tpu.dot_dimension_numbers<[1], [0], [0], [1], [0, 0, 1, 1], [], []>} : vector<128x8xf32>, vector<8x16xf32>, vector<128x16xf32> -> vector<128x16xf32>
    %116 = arith.addf %109, %115 : vector<128x16xf32>
    %117 = vector.extract_strided_slice %75 {offsets = [1, 0, 0, 0], sizes = [8, 1, 16, 8], strides = [1, 1, 1, 1]} : vector<9x2x18x8xf32> to vector<8x1x16x8xf32>
    %118 = vector.shape_cast %117 : vector<8x1x16x8xf32> to vector<8x16x8xf32>
    %119 = vector.shape_cast %118 : vector<8x16x8xf32> to vector<128x8xf32>
    %c6_67 = arith.constant 6 : index
    %c0_68 = arith.constant 0 : index
    %c0_69 = arith.constant 0 : index
    %120 = vector.load %arg4[%c6_67, %c0_68, %c0_69] : memref<9x8x16xf32, #tpu.memory_space<vmem>>, vector<1x8x16xf32>
    %121 = vector.shape_cast %120 : vector<1x8x16xf32> to vector<8x16xf32>
    %cst_70 = arith.constant dense<0.000000e+00> : vector<128x16xf32>
    %122 = tpu.matmul %119, %121, %cst_70 {dimension_numbers = #tpu.dot_dimension_numbers<[1], [0], [0], [1], [0, 0, 1, 1], [], []>} : vector<128x8xf32>, vector<8x16xf32>, vector<128x16xf32> -> vector<128x16xf32>
    %123 = arith.addf %116, %122 : vector<128x16xf32>
    %124 = vector.extract_strided_slice %75 {offsets = [1, 0, 1, 0], sizes = [8, 1, 16, 8], strides = [1, 1, 1, 1]} : vector<9x2x18x8xf32> to vector<8x1x16x8xf32>
    %125 = vector.shape_cast %124 : vector<8x1x16x8xf32> to vector<8x16x8xf32>
    %126 = vector.shape_cast %125 : vector<8x16x8xf32> to vector<128x8xf32>
    %c7_71 = arith.constant 7 : index
    %c0_72 = arith.constant 0 : index
    %c0_73 = arith.constant 0 : index
    %127 = vector.load %arg4[%c7_71, %c0_72, %c0_73] : memref<9x8x16xf32, #tpu.memory_space<vmem>>, vector<1x8x16xf32>
    %128 = vector.shape_cast %127 : vector<1x8x16xf32> to vector<8x16xf32>
    %cst_74 = arith.constant dense<0.000000e+00> : vector<128x16xf32>
    %129 = tpu.matmul %126, %128, %cst_74 {dimension_numbers = #tpu.dot_dimension_numbers<[1], [0], [0], [1], [0, 0, 1, 1], [], []>} : vector<128x8xf32>, vector<8x16xf32>, vector<128x16xf32> -> vector<128x16xf32>
    %130 = arith.addf %123, %129 : vector<128x16xf32>
    %131 = vector.extract_strided_slice %75 {offsets = [1, 0, 2, 0], sizes = [8, 1, 16, 8], strides = [1, 1, 1, 1]} : vector<9x2x18x8xf32> to vector<8x1x16x8xf32>
    %132 = vector.shape_cast %131 : vector<8x1x16x8xf32> to vector<8x16x8xf32>
    %133 = vector.shape_cast %132 : vector<8x16x8xf32> to vector<128x8xf32>
    %c8_75 = arith.constant 8 : index
    %c0_76 = arith.constant 0 : index
    %c0_77 = arith.constant 0 : index
    %134 = vector.load %arg4[%c8_75, %c0_76, %c0_77] : memref<9x8x16xf32, #tpu.memory_space<vmem>>, vector<1x8x16xf32>
    %135 = vector.shape_cast %134 : vector<1x8x16xf32> to vector<8x16xf32>
    %cst_78 = arith.constant dense<0.000000e+00> : vector<128x16xf32>
    %136 = tpu.matmul %133, %135, %cst_78 {dimension_numbers = #tpu.dot_dimension_numbers<[1], [0], [0], [1], [0, 0, 1, 1], [], []>} : vector<128x8xf32>, vector<8x16xf32>, vector<128x16xf32> -> vector<128x16xf32>
    %137 = arith.addf %130, %136 : vector<128x16xf32>
    %c0_79 = arith.constant 0 : index
    %c0_80 = arith.constant 0 : index
    %138 = vector.load %arg5[%c0_79, %c0_80] : memref<1x16xf32, #tpu.memory_space<vmem>>, vector<1x16xf32>
    %139 = vector.broadcast %138 : vector<1x16xf32> to vector<128x16xf32>
    %140 = arith.addf %137, %139 : vector<128x16xf32>
    %cst_81 = arith.constant 0.000000e+00 : f32
    %141 = vector.broadcast %cst_81 : f32 to vector<128x16xf32>
    %142 = arith.maximumf %140, %141 : vector<128x16xf32>
    %cst_82 = arith.constant 0.000000e+00 : f32
    %143 = vector.broadcast %cst_82 : f32 to vector<10x18x16xf32>
    %c0_83 = arith.constant 0 : index
    %c0_84 = arith.constant 0 : index
    %c0_85 = arith.constant 0 : index
    %144 = vector.load %arg12[%c0_83, %c0_84, %c0_85] : memref<10x18x16xf32, #tpu.memory_space<vmem>>, vector<10x18x16xf32>
    tpu.vector_store %arg12[%c0_83, %c0_84, %c0_85], %143 {strides = array<i32>} : memref<10x18x16xf32, #tpu.memory_space<vmem>>, vector<10x18x16xf32>,
    %145 = vector.shape_cast %142 : vector<128x16xf32> to vector<8x16x16xf32>
    %c1_86 = arith.constant 1 : index
    %c1_87 = arith.constant 1 : index
    %c0_88 = arith.constant 0 : index
    %146 = vector.load %arg12[%c1_86, %c1_87, %c0_88] : memref<10x18x16xf32, #tpu.memory_space<vmem>>, vector<8x16x16xf32>
    tpu.vector_store %arg12[%c1_86, %c1_87, %c0_88], %145 {strides = array<i32>} : memref<10x18x16xf32, #tpu.memory_space<vmem>>, vector<8x16x16xf32>,
    %c0_89 = arith.constant 0 : index
    %c0_90 = arith.constant 0 : index
    %c0_91 = arith.constant 0 : index
    %147 = vector.load %arg12[%c0_89, %c0_90, %c0_91] : memref<10x18x16xf32, #tpu.memory_space<vmem>>, vector<10x18x16xf32>
    %148 = vector.shape_cast %147 : vector<10x18x16xf32> to vector<5x2x18x16xf32>
    %149 = vector.extract_strided_slice %148 {offsets = [0, 0, 0, 0], sizes = [4, 1, 16, 16], strides = [1, 1, 1, 1]} : vector<5x2x18x16xf32> to vector<4x1x16x16xf32>
    %150 = vector.shape_cast %149 : vector<4x1x16x16xf32> to vector<4x16x16xf32>
    %151 = vector.shape_cast %150 : vector<4x16x16xf32> to vector<64x16xf32>
    %c0_92 = arith.constant 0 : index
    %c0_93 = arith.constant 0 : index
    %c0_94 = arith.constant 0 : index
    %152 = vector.load %arg6[%c0_92, %c0_93, %c0_94] : memref<9x16x32xf32, #tpu.memory_space<vmem>>, vector<1x16x32xf32>
    %153 = vector.shape_cast %152 : vector<1x16x32xf32> to vector<16x32xf32>
    %cst_95 = arith.constant dense<0.000000e+00> : vector<64x32xf32>
    %154 = tpu.matmul %151, %153, %cst_95 {dimension_numbers = #tpu.dot_dimension_numbers<[1], [0], [0], [1], [0, 0, 1, 1], [], []>} : vector<64x16xf32>, vector<16x32xf32>, vector<64x32xf32> -> vector<64x32xf32>
    %155 = vector.extract_strided_slice %148 {offsets = [0, 0, 1, 0], sizes = [4, 1, 16, 16], strides = [1, 1, 1, 1]} : vector<5x2x18x16xf32> to vector<4x1x16x16xf32>
    %156 = vector.shape_cast %155 : vector<4x1x16x16xf32> to vector<4x16x16xf32>
    %157 = vector.shape_cast %156 : vector<4x16x16xf32> to vector<64x16xf32>
    %c1_96 = arith.constant 1 : index
    %c0_97 = arith.constant 0 : index
    %c0_98 = arith.constant 0 : index
    %158 = vector.load %arg6[%c1_96, %c0_97, %c0_98] : memref<9x16x32xf32, #tpu.memory_space<vmem>>, vector<1x16x32xf32>
    %159 = vector.shape_cast %158 : vector<1x16x32xf32> to vector<16x32xf32>
    %cst_99 = arith.constant dense<0.000000e+00> : vector<64x32xf32>
    %160 = tpu.matmul %157, %159, %cst_99 {dimension_numbers = #tpu.dot_dimension_numbers<[1], [0], [0], [1], [0, 0, 1, 1], [], []>} : vector<64x16xf32>, vector<16x32xf32>, vector<64x32xf32> -> vector<64x32xf32>
    %161 = arith.addf %154, %160 : vector<64x32xf32>
    %162 = vector.extract_strided_slice %148 {offsets = [0, 0, 2, 0], sizes = [4, 1, 16, 16], strides = [1, 1, 1, 1]} : vector<5x2x18x16xf32> to vector<4x1x16x16xf32>
    %163 = vector.shape_cast %162 : vector<4x1x16x16xf32> to vector<4x16x16xf32>
    %164 = vector.shape_cast %163 : vector<4x16x16xf32> to vector<64x16xf32>
    %c2_100 = arith.constant 2 : index
    %c0_101 = arith.constant 0 : index
    %c0_102 = arith.constant 0 : index
    %165 = vector.load %arg6[%c2_100, %c0_101, %c0_102] : memref<9x16x32xf32, #tpu.memory_space<vmem>>, vector<1x16x32xf32>
    %166 = vector.shape_cast %165 : vector<1x16x32xf32> to vector<16x32xf32>
    %cst_103 = arith.constant dense<0.000000e+00> : vector<64x32xf32>
    %167 = tpu.matmul %164, %166, %cst_103 {dimension_numbers = #tpu.dot_dimension_numbers<[1], [0], [0], [1], [0, 0, 1, 1], [], []>} : vector<64x16xf32>, vector<16x32xf32>, vector<64x32xf32> -> vector<64x32xf32>
    %168 = arith.addf %161, %167 : vector<64x32xf32>
    %169 = vector.extract_strided_slice %148 {offsets = [0, 1, 0, 0], sizes = [4, 1, 16, 16], strides = [1, 1, 1, 1]} : vector<5x2x18x16xf32> to vector<4x1x16x16xf32>
    %170 = vector.shape_cast %169 : vector<4x1x16x16xf32> to vector<4x16x16xf32>
    %171 = vector.shape_cast %170 : vector<4x16x16xf32> to vector<64x16xf32>
    %c3_104 = arith.constant 3 : index
    %c0_105 = arith.constant 0 : index
    %c0_106 = arith.constant 0 : index
    %172 = vector.load %arg6[%c3_104, %c0_105, %c0_106] : memref<9x16x32xf32, #tpu.memory_space<vmem>>, vector<1x16x32xf32>
    %173 = vector.shape_cast %172 : vector<1x16x32xf32> to vector<16x32xf32>
    %cst_107 = arith.constant dense<0.000000e+00> : vector<64x32xf32>
    %174 = tpu.matmul %171, %173, %cst_107 {dimension_numbers = #tpu.dot_dimension_numbers<[1], [0], [0], [1], [0, 0, 1, 1], [], []>} : vector<64x16xf32>, vector<16x32xf32>, vector<64x32xf32> -> vector<64x32xf32>
    %175 = arith.addf %168, %174 : vector<64x32xf32>
    %176 = vector.extract_strided_slice %148 {offsets = [0, 1, 1, 0], sizes = [4, 1, 16, 16], strides = [1, 1, 1, 1]} : vector<5x2x18x16xf32> to vector<4x1x16x16xf32>
    %177 = vector.shape_cast %176 : vector<4x1x16x16xf32> to vector<4x16x16xf32>
    %178 = vector.shape_cast %177 : vector<4x16x16xf32> to vector<64x16xf32>
    %c4_108 = arith.constant 4 : index
    %c0_109 = arith.constant 0 : index
    %c0_110 = arith.constant 0 : index
    %179 = vector.load %arg6[%c4_108, %c0_109, %c0_110] : memref<9x16x32xf32, #tpu.memory_space<vmem>>, vector<1x16x32xf32>
    %180 = vector.shape_cast %179 : vector<1x16x32xf32> to vector<16x32xf32>
    %cst_111 = arith.constant dense<0.000000e+00> : vector<64x32xf32>
    %181 = tpu.matmul %178, %180, %cst_111 {dimension_numbers = #tpu.dot_dimension_numbers<[1], [0], [0], [1], [0, 0, 1, 1], [], []>} : vector<64x16xf32>, vector<16x32xf32>, vector<64x32xf32> -> vector<64x32xf32>
    %182 = arith.addf %175, %181 : vector<64x32xf32>
    %183 = vector.extract_strided_slice %148 {offsets = [0, 1, 2, 0], sizes = [4, 1, 16, 16], strides = [1, 1, 1, 1]} : vector<5x2x18x16xf32> to vector<4x1x16x16xf32>
    %184 = vector.shape_cast %183 : vector<4x1x16x16xf32> to vector<4x16x16xf32>
    %185 = vector.shape_cast %184 : vector<4x16x16xf32> to vector<64x16xf32>
    %c5_112 = arith.constant 5 : index
    %c0_113 = arith.constant 0 : index
    %c0_114 = arith.constant 0 : index
    %186 = vector.load %arg6[%c5_112, %c0_113, %c0_114] : memref<9x16x32xf32, #tpu.memory_space<vmem>>, vector<1x16x32xf32>
    %187 = vector.shape_cast %186 : vector<1x16x32xf32> to vector<16x32xf32>
    %cst_115 = arith.constant dense<0.000000e+00> : vector<64x32xf32>
    %188 = tpu.matmul %185, %187, %cst_115 {dimension_numbers = #tpu.dot_dimension_numbers<[1], [0], [0], [1], [0, 0, 1, 1], [], []>} : vector<64x16xf32>, vector<16x32xf32>, vector<64x32xf32> -> vector<64x32xf32>
    %189 = arith.addf %182, %188 : vector<64x32xf32>
    %190 = vector.extract_strided_slice %148 {offsets = [1, 0, 0, 0], sizes = [4, 1, 16, 16], strides = [1, 1, 1, 1]} : vector<5x2x18x16xf32> to vector<4x1x16x16xf32>
    %191 = vector.shape_cast %190 : vector<4x1x16x16xf32> to vector<4x16x16xf32>
    %192 = vector.shape_cast %191 : vector<4x16x16xf32> to vector<64x16xf32>
    %c6_116 = arith.constant 6 : index
    %c0_117 = arith.constant 0 : index
    %c0_118 = arith.constant 0 : index
    %193 = vector.load %arg6[%c6_116, %c0_117, %c0_118] : memref<9x16x32xf32, #tpu.memory_space<vmem>>, vector<1x16x32xf32>
    %194 = vector.shape_cast %193 : vector<1x16x32xf32> to vector<16x32xf32>
    %cst_119 = arith.constant dense<0.000000e+00> : vector<64x32xf32>
    %195 = tpu.matmul %192, %194, %cst_119 {dimension_numbers = #tpu.dot_dimension_numbers<[1], [0], [0], [1], [0, 0, 1, 1], [], []>} : vector<64x16xf32>, vector<16x32xf32>, vector<64x32xf32> -> vector<64x32xf32>
    %196 = arith.addf %189, %195 : vector<64x32xf32>
    %197 = vector.extract_strided_slice %148 {offsets = [1, 0, 1, 0], sizes = [4, 1, 16, 16], strides = [1, 1, 1, 1]} : vector<5x2x18x16xf32> to vector<4x1x16x16xf32>
    %198 = vector.shape_cast %197 : vector<4x1x16x16xf32> to vector<4x16x16xf32>
    %199 = vector.shape_cast %198 : vector<4x16x16xf32> to vector<64x16xf32>
    %c7_120 = arith.constant 7 : index
    %c0_121 = arith.constant 0 : index
    %c0_122 = arith.constant 0 : index
    %200 = vector.load %arg6[%c7_120, %c0_121, %c0_122] : memref<9x16x32xf32, #tpu.memory_space<vmem>>, vector<1x16x32xf32>
    %201 = vector.shape_cast %200 : vector<1x16x32xf32> to vector<16x32xf32>
    %cst_123 = arith.constant dense<0.000000e+00> : vector<64x32xf32>
    %202 = tpu.matmul %199, %201, %cst_123 {dimension_numbers = #tpu.dot_dimension_numbers<[1], [0], [0], [1], [0, 0, 1, 1], [], []>} : vector<64x16xf32>, vector<16x32xf32>, vector<64x32xf32> -> vector<64x32xf32>
    %203 = arith.addf %196, %202 : vector<64x32xf32>
    %204 = vector.extract_strided_slice %148 {offsets = [1, 0, 2, 0], sizes = [4, 1, 16, 16], strides = [1, 1, 1, 1]} : vector<5x2x18x16xf32> to vector<4x1x16x16xf32>
    %205 = vector.shape_cast %204 : vector<4x1x16x16xf32> to vector<4x16x16xf32>
    %206 = vector.shape_cast %205 : vector<4x16x16xf32> to vector<64x16xf32>
    %c8_124 = arith.constant 8 : index
    %c0_125 = arith.constant 0 : index
    %c0_126 = arith.constant 0 : index
    %207 = vector.load %arg6[%c8_124, %c0_125, %c0_126] : memref<9x16x32xf32, #tpu.memory_space<vmem>>, vector<1x16x32xf32>
    %208 = vector.shape_cast %207 : vector<1x16x32xf32> to vector<16x32xf32>
    %cst_127 = arith.constant dense<0.000000e+00> : vector<64x32xf32>
    %209 = tpu.matmul %206, %208, %cst_127 {dimension_numbers = #tpu.dot_dimension_numbers<[1], [0], [0], [1], [0, 0, 1, 1], [], []>} : vector<64x16xf32>, vector<16x32xf32>, vector<64x32xf32> -> vector<64x32xf32>
    %210 = arith.addf %203, %209 : vector<64x32xf32>
    %c0_128 = arith.constant 0 : index
    %c0_129 = arith.constant 0 : index
    %211 = vector.load %arg7[%c0_128, %c0_129] : memref<1x32xf32, #tpu.memory_space<vmem>>, vector<1x32xf32>
    %212 = vector.broadcast %211 : vector<1x32xf32> to vector<64x32xf32>
    %213 = arith.addf %210, %212 : vector<64x32xf32>
    %cst_130 = arith.constant 0.000000e+00 : f32
    %214 = vector.broadcast %cst_130 : f32 to vector<64x32xf32>
    %215 = arith.maximumf %213, %214 : vector<64x32xf32>
    %216 = vector.shape_cast %215 : vector<64x32xf32> to vector<4x16x32xf32>
    %217 = vector.extract_strided_slice %216 {offsets = [0, 0, 0], sizes = [1, 16, 32], strides = [1, 1, 1]} : vector<4x16x32xf32> to vector<1x16x32xf32>
    %218 = vector.shape_cast %217 : vector<1x16x32xf32> to vector<16x32xf32>
    %c0_131 = arith.constant 0 : index
    %c0_132 = arith.constant 0 : index
    %c0_133 = arith.constant 0 : index
    %219 = vector.load %arg8[%c0_131, %c0_132, %c0_133] : memref<4x32x64xf32, #tpu.memory_space<vmem>>, vector<1x32x64xf32>
    %220 = vector.shape_cast %219 : vector<1x32x64xf32> to vector<32x64xf32>
    %cst_134 = arith.constant dense<0.000000e+00> : vector<16x64xf32>
    %221 = tpu.matmul %218, %220, %cst_134 {dimension_numbers = #tpu.dot_dimension_numbers<[1], [0], [0], [1], [0, 0, 1, 1], [], []>} : vector<16x32xf32>, vector<32x64xf32>, vector<16x64xf32> -> vector<16x64xf32>
    %222 = vector.extract_strided_slice %216 {offsets = [1, 0, 0], sizes = [1, 16, 32], strides = [1, 1, 1]} : vector<4x16x32xf32> to vector<1x16x32xf32>
    %223 = vector.shape_cast %222 : vector<1x16x32xf32> to vector<16x32xf32>
    %c1_135 = arith.constant 1 : index
    %c0_136 = arith.constant 0 : index
    %c0_137 = arith.constant 0 : index
    %224 = vector.load %arg8[%c1_135, %c0_136, %c0_137] : memref<4x32x64xf32, #tpu.memory_space<vmem>>, vector<1x32x64xf32>
    %225 = vector.shape_cast %224 : vector<1x32x64xf32> to vector<32x64xf32>
    %cst_138 = arith.constant dense<0.000000e+00> : vector<16x64xf32>
    %226 = tpu.matmul %223, %225, %cst_138 {dimension_numbers = #tpu.dot_dimension_numbers<[1], [0], [0], [1], [0, 0, 1, 1], [], []>} : vector<16x32xf32>, vector<32x64xf32>, vector<16x64xf32> -> vector<16x64xf32>
    %227 = arith.addf %221, %226 : vector<16x64xf32>
    %228 = vector.extract_strided_slice %216 {offsets = [2, 0, 0], sizes = [1, 16, 32], strides = [1, 1, 1]} : vector<4x16x32xf32> to vector<1x16x32xf32>
    %229 = vector.shape_cast %228 : vector<1x16x32xf32> to vector<16x32xf32>
    %c2_139 = arith.constant 2 : index
    %c0_140 = arith.constant 0 : index
    %c0_141 = arith.constant 0 : index
    %230 = vector.load %arg8[%c2_139, %c0_140, %c0_141] : memref<4x32x64xf32, #tpu.memory_space<vmem>>, vector<1x32x64xf32>
    %231 = vector.shape_cast %230 : vector<1x32x64xf32> to vector<32x64xf32>
    %cst_142 = arith.constant dense<0.000000e+00> : vector<16x64xf32>
    %232 = tpu.matmul %229, %231, %cst_142 {dimension_numbers = #tpu.dot_dimension_numbers<[1], [0], [0], [1], [0, 0, 1, 1], [], []>} : vector<16x32xf32>, vector<32x64xf32>, vector<16x64xf32> -> vector<16x64xf32>
    %233 = arith.addf %227, %232 : vector<16x64xf32>
    %234 = vector.extract_strided_slice %216 {offsets = [3, 0, 0], sizes = [1, 16, 32], strides = [1, 1, 1]} : vector<4x16x32xf32> to vector<1x16x32xf32>
    %235 = vector.shape_cast %234 : vector<1x16x32xf32> to vector<16x32xf32>
    %c3_143 = arith.constant 3 : index
    %c0_144 = arith.constant 0 : index
    %c0_145 = arith.constant 0 : index
    %236 = vector.load %arg8[%c3_143, %c0_144, %c0_145] : memref<4x32x64xf32, #tpu.memory_space<vmem>>, vector<1x32x64xf32>
    %237 = vector.shape_cast %236 : vector<1x32x64xf32> to vector<32x64xf32>
    %cst_146 = arith.constant dense<0.000000e+00> : vector<16x64xf32>
    %238 = tpu.matmul %235, %237, %cst_146 {dimension_numbers = #tpu.dot_dimension_numbers<[1], [0], [0], [1], [0, 0, 1, 1], [], []>} : vector<16x32xf32>, vector<32x64xf32>, vector<16x64xf32> -> vector<16x64xf32>
    %239 = arith.addf %233, %238 : vector<16x64xf32>
    %c0_147 = arith.constant 0 : index
    %c0_148 = arith.constant 0 : index
    %240 = vector.load %arg9[%c0_147, %c0_148] : memref<1x64xf32, #tpu.memory_space<vmem>>, vector<1x64xf32>
    %241 = vector.broadcast %240 : vector<1x64xf32> to vector<16x64xf32>
    %242 = arith.addf %239, %241 : vector<16x64xf32>
    %cst_149 = arith.constant 0.000000e+00 : f32
    %243 = vector.broadcast %cst_149 : f32 to vector<16x64xf32>
    %244 = arith.maximumf %242, %243 : vector<16x64xf32>
    %c0_150 = arith.constant 0 : index
    %c0_151 = arith.constant 0 : index
    %c0_152 = arith.constant 0 : index
    %c0_153 = arith.constant 0 : index
    %245 = vector.load %arg10[%c0_150, %c0_151, %c0_152, %c0_153] : memref<1x1x16x64xf32, #tpu.memory_space<vmem>>, vector<1x1x16x64xf32>
    %246 = vector.shape_cast %245 : vector<1x1x16x64xf32> to vector<16x64xf32>
    %247 = vector.shape_cast %244 : vector<16x64xf32> to vector<1x1x16x64xf32>
    tpu.vector_store %arg10[%c0_150, %c0_151, %c0_152, %c0_153], %247 {strides = array<i32>} : memref<1x1x16x64xf32, #tpu.memory_space<vmem>>, vector<1x1x16x64xf32>,
    return
  }
  func.func @transform_0(%arg0: i32) -> (i32, i32, i32, i32) {
    %c0_i32 = arith.constant 0 : i32
    %c0_i32_0 = arith.constant 0 : i32
    %c0_i32_1 = arith.constant 0 : i32
    %c0_i32_2 = arith.constant 0 : i32
    return %arg0, %c0_i32, %c0_i32_0, %c0_i32_1 : i32, i32, i32, i32
  }
  func.func @transform_1(%arg0: i32) -> (i32, i32, i32) {
    %c0_i32 = arith.constant 0 : i32
    %c0_i32_0 = arith.constant 0 : i32
    %c0_i32_1 = arith.constant 0 : i32
    %c0_i32_2 = arith.constant 0 : i32
    return %c0_i32, %c0_i32_0, %c0_i32_1 : i32, i32, i32
  }
  func.func @transform_2(%arg0: i32) -> (i32, i32) {
    %c0_i32 = arith.constant 0 : i32
    %c0_i32_0 = arith.constant 0 : i32
    %c0_i32_1 = arith.constant 0 : i32
    return %c0_i32, %c0_i32_0 : i32, i32
  }
  func.func @transform_3(%arg0: i32) -> (i32, i32, i32) {
    %c0_i32 = arith.constant 0 : i32
    %c0_i32_0 = arith.constant 0 : i32
    %c0_i32_1 = arith.constant 0 : i32
    %c0_i32_2 = arith.constant 0 : i32
    return %c0_i32, %c0_i32_0, %c0_i32_1 : i32, i32, i32
  }
  func.func @transform_4(%arg0: i32) -> (i32, i32) {
    %c0_i32 = arith.constant 0 : i32
    %c0_i32_0 = arith.constant 0 : i32
    %c0_i32_1 = arith.constant 0 : i32
    return %c0_i32, %c0_i32_0 : i32, i32
  }
  func.func @transform_5(%arg0: i32) -> (i32, i32, i32) {
    %c0_i32 = arith.constant 0 : i32
    %c0_i32_0 = arith.constant 0 : i32
    %c0_i32_1 = arith.constant 0 : i32
    %c0_i32_2 = arith.constant 0 : i32
    return %c0_i32, %c0_i32_0, %c0_i32_1 : i32, i32, i32
  }
  func.func @transform_6(%arg0: i32) -> (i32, i32) {
    %c0_i32 = arith.constant 0 : i32
    %c0_i32_0 = arith.constant 0 : i32
    %c0_i32_1 = arith.constant 0 : i32
    return %c0_i32, %c0_i32_0 : i32, i32
  }
  func.func @transform_7(%arg0: i32) -> (i32, i32, i32) {
    %c0_i32 = arith.constant 0 : i32
    %c0_i32_0 = arith.constant 0 : i32
    %c0_i32_1 = arith.constant 0 : i32
    %c0_i32_2 = arith.constant 0 : i32
    return %c0_i32, %c0_i32_0, %c0_i32_1 : i32, i32, i32
  }
  func.func @transform_8(%arg0: i32) -> (i32, i32) {
    %c0_i32 = arith.constant 0 : i32
    %c0_i32_0 = arith.constant 0 : i32
    %c0_i32_1 = arith.constant 0 : i32
    return %c0_i32, %c0_i32_0 : i32, i32
  }
  func.func @transform_9(%arg0: i32) -> (i32, i32, i32, i32) {
    %c0_i32 = arith.constant 0 : i32
    %c0_i32_0 = arith.constant 0 : i32
    %c0_i32_1 = arith.constant 0 : i32
    %c0_i32_2 = arith.constant 0 : i32
    return %arg0, %c0_i32, %c0_i32_0, %c0_i32_1 : i32, i32, i32, i32
  }
}

</mosaic_0001>

<bundles_post_ra>
// kernel: forward.1
= control target key start
LH: loop header
LB: loop body
LE: loop exit
PB: predicated region body
PF: predicated region fallthrough
CT: control target
= control target key end

     0   :  { %14 = vsyncpa [#allocation5], 0  ;;  %s12914_s0 = inlined_call_operand.vmem [shape: f32[2,34,18,4], index: 0, kind: input, shape index: {}]   ;;  %s12915_s1 = inlined_call_operand.vmem [shape: f32[9,4,8], index: 1, kind: input, shape index: {}]   ;;  %s12916_s2 = inlined_call_operand.vmem [shape: f32[1,8], index: 2, kind: input, shape index: {}]   ;;  %s12917_s3 = inlined_call_operand.vmem [shape: f32[9,8,16], index: 3, kind: input, shape index: {}]   ;;  %s12918_s4 = inlined_call_operand.vmem [shape: f32[1,16], index: 4, kind: input, shape index: {}]   ;;  %s12919_s5 = inlined_call_operand.vmem [shape: f32[9,16,32], index: 5, kind: input, shape index: {}]   ;;  %s12920_s6 = inlined_call_operand.vmem [shape: f32[1,32], index: 6, kind: input, shape index: {}]   ;;  %s12921_s7 = inlined_call_operand.vmem [shape: f32[4,32,64], index: 7, kind: input, shape index: {}]   ;;  %s12922_s8 = inlined_call_operand.vmem [shape: f32[1,64], index: 8, kind: input, shape index: {}]   ;;  %s12923_s9 = inlined_call_operand.hbm [shape: f32[2,1,16,64], index: 9, kind: output, shape index: {}]  }
   0x1   :  { %16 = vsyncpa [#allocation5 + $0x1], 0  ;;  %s10182_s30 = smov 0   ;;  %s10184_s10 = smov 0  }
   0x2   :  { %s10186_s11 = smov 0   ;;  %s10188_s12 = smov 0  }
   0x3 LB: > { %s10203_s13 = sadd.s32 4294967295, %s10126_s12   ;;  %s7450_s14 = sadd.s32 4294967294, %s10126_s12   ;;  %s10126_s12 = sphi %s10188_s12, %s13190_s12   ;;  %s10122_s11 = sphi %s10186_s11, %s13189_s11   ;;  %s10118_s10 = sphi %s10184_s10, %s13188_s10   ;;  %s10114_s30 = sphi %s10182_s30, %s13187_s30  }
   0x4   : > { %s10207_s15 = sadd.s32 1, %s10126_s12   ;;  %s223_s16 = sadd.s32 1, %s10122_s11 }
   0x5   : > { %s220_s17 = ssub.s32 %s10126_s12, %s10207_s15  ;;  %p233_p0 = scmp.ne.s32.totalorder %s10122_s11, %s10118_s10 }
   0x6   : > { %p221_p1 = scmp.eq.s32.totalorder %s220_s17, 0  ;;  %p234_p2 = scmp.eq.s32.totalorder %s10203_s13, 1 }
   0x7   : > { %p239_p3 = scmp.ne.s32.totalorder %s10118_s10, %s10114_s30  ;;  %p240_p4 = scmp.eq.s32.totalorder %s7450_s14, 1 }
   0x8   : > { %s10218_s18 = scalar_select %p221_p1, %s10122_s11, %s223_s16  }
   0x9   : > { %p10220_p5 = por %p234_p2, %p233_p0  ;;  %p10224_p6 = por %p240_p4, %p239_p3 }
   0xa   : > { %p7453_p7 = scmp.ge.s32.totalorder %s10126_s12, 1  ;;  %p290_p8 = scmp.lt.s32.totalorder %s10126_s12, 3 }
   0xc   : > { %p291_p9 = pnand %p7453_p7, %p290_p8 }
   0xe   : > { %294 = sbr.rel (%p291_p9) target bundleno = 1843 (0x733), region = 56 }
  0x15   : > { %v7456_v0 = vld [vmem:[%s12915_s1 + $0x4] sm:$0xf]  ;;  %vm627_vm0 = vcmask 1043456   ;;  %p326_p10 = scmp.lt.s32.totalorder %s10203_s13, 1  ;;  %v430_v1 = vld [vmem:[%s12915_s1] sm:$0xf] }
  0x16   : > { %8595 = vmatprep.subr.msk.mxu0 %vm627_vm0, %v7456_v0  ;;  %9535 = vmatprep.subr.msk.mxu1 %vm627_vm0, %v7456_v0  ;;  %vm479_vm1 = vcmask 1046528   ;;  %vm562_vm2 = vcmask 31744   ;;  %v7523_v10 = vld [vmem:[%s12915_s1 + $0x8] sm:$0xf]  ;;  %v10267_v12 = vld [vmem:[%s12915_s1 + $0xc] sm:$0xf] }
  0x17   : > { %8596 = vmatpush3.msk.msra.mxu0 %vm627_vm0, %v7456_v0  ;;  %s327_s25 = scalar_select %p326_p10, %s10203_s13, 1  ;;  %9536 = vmatpush3.msk.msra.mxu1 %vm627_vm0, %v7456_v0  ;;  %vm1148_vm3 = vcmask 1045504   ;;  %v10442_v55 = vld [vmem:[%s12915_s1 + $0x10] sm:$0xf]  ;;  %vm3623_vm4 = vcmask 64512   ;;  %vm3626_vm5 = vcmask 58368  }
  0x18   : > { %8645 = vmatprep.subr.msk.mxu0 %vm627_vm0, %v430_v1  ;;  %vm5661_vm6 = vcmask 130048   ;;  %vm5664_vm7 = vcmask 123904   ;;  %vm7021_vm8 = vcmask 261120   ;;  %s323_s28 = sand.u32 1, %s10118_s10   ;;  %vm7371_vm9 = vcmask 523264   ;;  %s10129_s27 = smov [#allocation4]  }
  0x19   : > { %s9991_s26 = smul.u32 816, %s327_s25  ;;  %s7454_s14 = sshll.u32 %s323_s28, 4 }
  0x1a   : > { %s325_s21 = scalar_lea.vmem [#allocation4], %s7454_s14  ;;  %s10068_s14 = sshll.u32 %s10129_s27, 4  ;;  %s10069_s14 = int_to_ptr.vmem [resolvable:$false] %s10068_s14 }
  0x1b   : > { %s10246_s29 = scalar_lea.vmem %s12914_s0, %s9991_s26  ;;  %s7388_s22 = sshll.u32 %s325_s21, 4  ;;  %s12866_s22 = int_to_ptr.vmem [resolvable:$true] %s7388_s22 }
  0x1c   : > { %v331_v2 = vld [vmem:[%s10246_s29] sm:$0xff]  ;;  %v332_v3 = vld [vmem:[%s10246_s29 + $0x8] sm:$0xff]  ;;  %v333_v4 = vld [vmem:[%s10246_s29 + $0x10] sm:$0x3]  ;;  %s12873_s26 = scalar_lea.sflag [#allocation5], %s323_s28  ;;  %s10070_s16 = scalar_lea.vmem %s10069_s14, 512 }
  0x1d   : > { %v480_v5 = vrot.slane %v331_v2, 1  ;;  %v481_v6 = vrot.slane %v332_v3, 1  ;;  %v483_v7 = vrot.slane %v333_v4, 1  ;;  %v10262_v11 = vld [vmem:[%s10246_s29 + $0x30] sm:$0xff]  ;;  %v10274_v13 = vld [vmem:[%s10246_s29 + $0x38] sm:$0xff]  ;;  %v1152_v14 = vrot.slane %v333_v4, 2  ;;  %p10071_p0 = scmp.lt.s32.totalorder %s12866_s22, %s10069_s14 }
  0x1e   : > { %v10277_v15 = vld [vmem:[%s10246_s29 + $0x60] sm:$0xff]  ;;  %v1149_v16 = vrot.slane %v331_v2, 2  ;;  %v1150_v17 = vrot.slane %v332_v3, 2  ;;  %v10286_v18 = vld [vmem:[%s10246_s29 + $0x68] sm:$0xff]  ;;  %v10289_v19 = vld [vmem:[%s10246_s29 + $0x90] sm:$0xff]  ;;  %v1154_v47 = vrot.slane %v10262_v11, 2 }
  0x1f   : > { %v482_v8 = vsel %vm479_vm1, %v480_v5, %v481_v6  ;;  %v484_v9 = vsel %vm479_vm1, %v481_v6, %v483_v7  ;;  %v10300_v22 = vld [vmem:[%s10246_s29 + $0x98] sm:$0xff]  ;;  %v10303_v23 = vld [vmem:[%s10246_s29 + $0xc0] sm:$0xff]  ;;  %v10310_v24 = vld [vmem:[%s10246_s29 + $0xc8] sm:$0xff]  ;;  %v1155_v48 = vrot.slane %v10274_v13, 2  ;;  %v1159_v51 = vrot.slane %v10277_v15, 2 }
  0x20   : > { %8597 = vmatprep.mubr.msk.f32.mxu0 %vm562_vm2, %v482_v8  ;;  %v1151_v20 = vsel %vm1148_vm3, %v1149_v16, %v1150_v17  ;;  %v10293_v21 = vsel %vm1148_vm3, %v1150_v17, %v1152_v14  ;;  %v10313_v25 = vld [vmem:[%s10246_s29 + $0xf0] sm:$0xff]  ;;  %v10320_v26 = vld [vmem:[%s10246_s29 + $0xf8] sm:$0xff]  ;;  %v10323_v27 = vld [vmem:[%s10246_s29 + $0x120] sm:$0xff]  ;;  %v1160_v52 = vrot.slane %v10286_v18, 2  ;;  %v1164_v58 = vrot.slane %v10289_v19, 2 }
  0x21   : > { %8598 = vmatmul.mubr.msk.f32.vlgmr.msra.gmra.mrb[0].mxu0 %vm562_vm2, %v484_v9  ;;  %13014 = vst [vmem:[#allocation7_spill] sm:$0xff] %v10323_v27  ;;  %v10330_v28 = vld [vmem:[%s10246_s29 + $0x128] sm:$0xff]  ;;  %v10333_v29 = vld [vmem:[%s10246_s29 + $0x150] sm:$0xff]  ;;  %v10340_v30 = vld [vmem:[%s10246_s29 + $0x158] sm:$0xff]  ;;  %v10434_v53 = vsel %vm1148_vm3, %v1154_v47, %v1155_v48  ;;  %v1165_v59 = vrot.slane %v10300_v22, 2  ;;  %v1169_v0 = vrot.slane %v10303_v23, 2 }
  0x22   : > { %8646 = vmatpush3.msk.msra.mxu0 %vm627_vm0, %v430_v1  ;;  %8647 = vmatprep.mubr.msk.f32.mxu0 %vm562_vm2, %v331_v2  ;;  %13015 = vst [vmem:[#allocation8_spill] sm:$0xff] %v10330_v28  ;;  %13016 = vst [vmem:[#allocation9_spill] sm:$0xff] %v10333_v29  ;;  %v10343_v31 = vld [vmem:[%s10246_s29 + $0x180] sm:$0xff]  ;;  %v10350_v32 = vld [vmem:[%s10246_s29 + $0x188] sm:$0xff]  ;;  %v10457_v60 = vsel %vm1148_vm3, %v1159_v51, %v1160_v52  ;;  %v1170_v1 = vrot.slane %v10310_v24, 2  ;;  %v1174_v6 = vrot.slane %v10313_v25, 2 }
  0x23   : > { %8695 = vmatprep.subr.msk.mxu0 %vm627_vm0, %v7523_v10  ;;  %13017 = vst [vmem:[#allocation10_spill] sm:$0xff] %v10340_v30  ;;  %13018 = vst [vmem:[#allocation11_spill] sm:$0xff] %v10343_v31  ;;  %v10353_v33 = vld [vmem:[%s10246_s29 + $0x1b0] sm:$0xff]  ;;  %v10360_v34 = vld [vmem:[%s10246_s29 + $0x1b8] sm:$0xff]  ;;  %v10475_v2 = vsel %vm1148_vm3, %v1164_v58, %v1165_v59  ;;  %v1175_v7 = vrot.slane %v10320_v26, 2  ;;  %v1179_v14 = vrot.slane %v10323_v27, 2 }
  0x24   : > { %13019 = vst [vmem:[#allocation12_spill] sm:$0xff] %v10350_v32  ;;  %13020 = vst [vmem:[#allocation13_spill] sm:$0xff] %v10353_v33  ;;  %v10363_v35 = vld [vmem:[%s10246_s29 + $0x1e0] sm:$0xff]  ;;  %v10370_v36 = vld [vmem:[%s10246_s29 + $0x1e8] sm:$0xff]  ;;  %v10491_v8 = vsel %vm1148_vm3, %v1169_v0, %v1170_v1  ;;  %v1180_v16 = vrot.slane %v10330_v28, 2 }
  0x25   : > { %13021 = vst [vmem:[#allocation14_spill] sm:$0xff] %v10360_v34  ;;  %13022 = vst [vmem:[#allocation15_spill] sm:$0xff] %v10363_v35  ;;  %v10373_v37 = vld [vmem:[%s10246_s29 + $0x210] sm:$0xff]  ;;  %v10380_v38 = vld [vmem:[%s10246_s29 + $0x218] sm:$0xff]  ;;  %v10507_v17 = vsel %vm1148_vm3, %v1174_v6, %v1175_v7 }
  0x26   : > { %13023 = vst [vmem:[#allocation16_spill] sm:$0xff] %v10370_v36  ;;  %13024 = vst [vmem:[#allocation17_spill] sm:$0xff] %v10373_v37  ;;  %v10383_v39 = vld [vmem:[%s10246_s29 + $0x240] sm:$0xff]  ;;  %v10390_v40 = vld [vmem:[%s10246_s29 + $0x248] sm:$0xff]  ;;  %v10523_v51 = vsel %vm1148_vm3, %v1179_v14, %v1180_v16 }
  0x27   : > { %13025 = vst [vmem:[#allocation18_spill] sm:$0xff] %v10380_v38  ;;  %13026 = vst [vmem:[#allocation19_spill] sm:$0xff] %v10383_v39  ;;  %v10393_v41 = vld [vmem:[%s10246_s29 + $0x270] sm:$0xff]  ;;  %v10400_v42 = vld [vmem:[%s10246_s29 + $0x278] sm:$0xff] }
  0x28   : > { %13027 = vst [vmem:[#allocation20_spill] sm:$0xff] %v10390_v40  ;;  %13028 = vst [vmem:[#allocation21_spill] sm:$0xff] %v10393_v41  ;;  %v10403_v43 = vld [vmem:[%s10246_s29 + $0x2a0] sm:$0xff]  ;;  %v10410_v44 = vld [vmem:[%s10246_s29 + $0x2a8] sm:$0xff] }
  0x29   : > { %8648 = vmatmul.mubr.msk.f32.vlgmr.msra.gmra.mrb[0].mxu0 %vm562_vm2, %v332_v3  ;;  %13029 = vst [vmem:[#allocation22_spill] sm:$0xff] %v10400_v42  ;;  %13030 = vst [vmem:[#allocation23_spill] sm:$0xff] %v10403_v43  ;;  %v10413_v45 = vld [vmem:[%s10246_s29 + $0x2d0] sm:$0xff]  ;;  %v10420_v46 = vld [vmem:[%s10246_s29 + $0x2d8] sm:$0xff] }
  0x2a   : > { %8696 = vmatpush3.msk.msra.mxu0 %vm627_vm0, %v7523_v10  ;;  %8650 = vmatprep.mubr.msk.f32.mxu0 %vm562_vm2, %v10262_v11  ;;  %13031 = vst [vmem:[#allocation24_spill] sm:$0xff] %v10410_v44  ;;  %v10425_v49 = vld [vmem:[%s10246_s29 + $0x40] sm:$0x3]  ;;  %13032 = vst [vmem:[#allocation25_spill] sm:$0xff] %v10434_v53  ;;  %v10437_v54 = vld [vmem:[%s10246_s29 + $0x70] sm:$0x3] }
  0x2b   : > { %8745 = vmatprep.subr.msk.mxu0 %vm627_vm0, %v10267_v12  ;;  %v1157_v50 = vrot.slane %v10425_v49, 2  ;;  %v1162_v57 = vrot.slane %v10437_v54, 2  ;;  %13034 = vst [vmem:[#allocation27_spill] sm:$0xff] %v10457_v60  ;;  %v10460_v61 = vld [vmem:[%s10246_s29 + $0xa0] sm:$0x3]  ;;  %13036 = vst [vmem:[#allocation29_spill] sm:$0xff] %v10475_v2 }
  0x2c   : > { %v1167_v63 = vrot.slane %v10460_v61, 2  ;;  %v10478_v3 = vld [vmem:[%s10246_s29 + $0xd0] sm:$0x3]  ;;  %13039 = vst [vmem:[#allocation32_spill] sm:$0xff] %v10491_v8  ;;  %v10494_v9 = vld [vmem:[%s10246_s29 + $0x100] sm:$0x3] }
  0x2d   : > { %8651 = vmatmul.mubr.msk.f32.gmra.mrb[2].mxu0 %vm562_vm2, %v10274_v13  ;;  %v10451_v56 = vsel %vm1148_vm3, %v1155_v48, %v1157_v50  ;;  %v10469_v62 = vsel %vm1148_vm3, %v1160_v52, %v1162_v57  ;;  %13037 = vst [vmem:[#allocation30_spill] sm:$0xff] %v10478_v3  ;;  %v1172_v5 = vrot.slane %v10478_v3, 2  ;;  %13040 = vst [vmem:[#allocation33_spill] sm:$0xff] %v10494_v9  ;;  %v1184_v48 = vrot.slane %v10333_v29, 2  ;;  %v10526_v52 = vld [vmem:[%s10246_s29 + $0x160] sm:$0x3] }
  0x2e   : > { %8653 = vmatprep.mubr.msk.f32.mxu0 %vm562_vm2, %v10277_v15  ;;  %13033 = vst [vmem:[#allocation26_spill] sm:$0xff] %v10451_v56  ;;  %13035 = vst [vmem:[#allocation28_spill] sm:$0xff] %v10469_v62  ;;  %v10485_v4 = vsel %vm1148_vm3, %v1165_v59, %v1167_v63  ;;  %v1185_v50 = vrot.slane %v10340_v30, 2  ;;  %v1187_v58 = vrot.slane %v10526_v52, 2  ;;  %v1189_v59 = vrot.slane %v10343_v31, 2 }
  0x2f   : > { %13038 = vst [vmem:[#allocation31_spill] sm:$0xff] %v10485_v4  ;;  %v10501_v10 = vsel %vm1148_vm3, %v1170_v1, %v1172_v5  ;;  %13042 = vst [vmem:[#allocation35_spill] sm:$0xff] %v10507_v17  ;;  %v1190_v63 = vrot.slane %v10350_v32, 2  ;;  %v10542_v1 = vld [vmem:[%s10246_s29 + $0x190] sm:$0x3] }
  0x30   : > { %13041 = vst [vmem:[#allocation34_spill] sm:$0xff] %v10501_v10  ;;  %13045 = vst [vmem:[#allocation38_spill] sm:$0xff] %v10523_v51  ;;  %v10539_v0 = vsel %vm1148_vm3, %v1184_v48, %v1185_v50  ;;  %v10549_v5 = vsel %vm1148_vm3, %v1185_v50, %v1187_v58  ;;  %v1192_v6 = vrot.slane %v10542_v1, 2  ;;  %v1199_v50 = vrot.slane %v10363_v35, 2  ;;  %v10903_v3 = vld [vmem:[%s10246_s29 + $0x118] sm:$0x3] }
  0x31   : > { %8654 = vmatmul.mubr.msk.f32.gmra.mrb[4].mxu0 %vm562_vm2, %v10286_v18  ;;  %13046 = vst [vmem:[#allocation39_spill] sm:$0xff] %v10526_v52  ;;  %13048 = vst [vmem:[#allocation41_spill] sm:$0xff] %v10539_v0  ;;  %v10555_v14 = vsel %vm1148_vm3, %v1189_v59, %v1190_v63  ;;  %v1200_v58 = vrot.slane %v10370_v36, 2 }
  0x32   : > { %8656 = vmatprep.mubr.msk.f32.mxu0 %vm562_vm2, %v10289_v19  ;;  %13049 = vst [vmem:[#allocation42_spill] sm:$0xff] %v10542_v1  ;;  %13050 = vst [vmem:[#allocation43_spill] sm:$0xff] %v10549_v5 }
  0x33   : > { %13051 = vst [vmem:[#allocation44_spill] sm:$0xff] %v10555_v14 }
  0x35   : > { %8657 = vmatmul.mubr.msk.f32.gmra.mrb[6].mxu0 %vm562_vm2, %v10300_v22 }
  0x36   : > { %8659 = vmatprep.mubr.msk.f32.mxu0 %vm562_vm2, %v10303_v23 }
  0x39   : > { %8660 = vmatmul.mubr.msk.f32.gmra.mrb[8].mxu0 %vm562_vm2, %v10310_v24 }
  0x3a   : > { %8662 = vmatprep.mubr.msk.f32.mxu0 %vm562_vm2, %v10313_v25 }
  0x3d   : > { %8663 = vmatmul.mubr.msk.f32.gmra.mrb[10].mxu0 %vm562_vm2, %v10320_v26 }
  0x3e   : > { %8665 = vmatprep.mubr.msk.f32.mxu0 %vm562_vm2, %v10323_v27 }
  0x41   : > { %8666 = vmatmul.mubr.msk.f32.gmra.mrb[12].mxu0 %vm562_vm2, %v10330_v28  ;;  %v10881_v28 = vld [vmem:[%s10246_s29 + $0xb8] sm:$0x3] }
  0x42   : > { %8668 = vmatprep.mubr.msk.f32.mxu0 %vm562_vm2, %v10333_v29  ;;  %v10864_v29 = vld [vmem:[%s10246_s29 + $0x88] sm:$0x3] }
  0x45   : > { %8669 = vmatmul.mubr.msk.f32.gmra.mrb[14].mxu0 %vm562_vm2, %v10340_v30 }
  0x46   : > { %8671 = vmatprep.mubr.msk.f32.mxu0 %vm562_vm2, %v10343_v31 }
  0x49   : > { %8672 = vmatmul.mubr.msk.f32.gmra.mrb[16].mxu0 %vm562_vm2, %v10350_v32 }
  0x4a   : > { %8674 = vmatprep.mubr.msk.f32.mxu0 %vm562_vm2, %v10353_v33 }
  0x4d   : > { %8675 = vmatmul.mubr.msk.f32.gmra.mrb[18].mxu0 %vm562_vm2, %v10360_v34 }
  0x4e   : > { %8677 = vmatprep.mubr.msk.f32.mxu0 %vm562_vm2, %v10363_v35 }
  0x51   : > { %8678 = vmatmul.mubr.msk.f32.gmra.mrb[20].mxu0 %vm562_vm2, %v10370_v36 }
  0x52   : > { %8680 = vmatprep.mubr.msk.f32.mxu0 %vm562_vm2, %v10373_v37 }
  0x55   : > { %8681 = vmatmul.mubr.msk.f32.gmra.mrb[22].mxu0 %vm562_vm2, %v10380_v38 }
  0x56   : > { %8683 = vmatprep.mubr.msk.f32.mxu0 %vm562_vm2, %v10383_v39 }
  0x59   : > { %8684 = vmatmul.mubr.msk.f32.gmra.mrb[24].mxu0 %vm562_vm2, %v10390_v40 }
  0x5a   : > { %8686 = vmatprep.mubr.msk.f32.mxu0 %vm562_vm2, %v10393_v41 }
  0x5d   : > { %8687 = vmatmul.mubr.msk.f32.gmra.mrb[26].mxu0 %vm562_vm2, %v10400_v42 }
  0x5e   : > { %8689 = vmatprep.mubr.msk.f32.mxu0 %vm562_vm2, %v10403_v43 }
  0x61   : > { %8690 = vmatmul.mubr.msk.f32.gmra.mrb[28].mxu0 %vm562_vm2, %v10410_v44 }
  0x62   : > { %8692 = vmatprep.mubr.msk.f32.mxu0 %vm562_vm2, %v10413_v45 }
  0x65   : > { %8693 = vmatmul.mubr.msk.f32.gmra.mrb[30].mxu0 %vm562_vm2, %v10420_v46 }
  0x66   : > { %8697 = vmatprep.mubr.msk.f32.mxu0 %vm562_vm2, %v1151_v20  ;;  %v10510_v20 = vld [vmem:[%s10246_s29 + $0x130] sm:$0x3] }
  0x67   : > { %13043 = vst [vmem:[#allocation36_spill] sm:$0xff] %v10510_v20  ;;  %v1182_v47 = vrot.slane %v10510_v20, 2 }
  0x69   : > { %8698 = vmatmul.mubr.msk.f32.vlgmr.msra.gmra.mrb[0].mxu0 %vm562_vm2, %v10293_v21  ;;  %v10533_v57 = vsel %vm1148_vm3, %v1180_v16, %v1182_v47  ;;  %v10558_v16 = vld [vmem:[%s10246_s29 + $0x1c0] sm:$0x3]  ;;  %v10565_v47 = vsel %vm1148_vm3, %v1190_v63, %v1192_v6 }
  0x6a   : > { %8746 = vmatpush3.msk.msra.mxu0 %vm627_vm0, %v10267_v12  ;;  %8700 = vmatprep.mubr.msk.f32.mxu0 %vm562_vm2, %v10434_v53  ;;  %v1177_v12 = vrot.slane %v10494_v9, 2  ;;  %13047 = vst [vmem:[#allocation40_spill] sm:$0xff] %v10533_v57  ;;  %13052 = vst [vmem:[#allocation45_spill] sm:$0xff] %v10558_v16  ;;  %v1197_v48 = vrot.slane %v10558_v16, 2  ;;  %v10781_v53 = vld [vmem:[%s10246_s29 + $0x1d0] sm:$0xff] }
  0x6b   : > { %8795 = vmatprep.subr.msk.mxu0 %vm627_vm0, %v10442_v55  ;;  %13053 = vst [vmem:[#allocation46_spill] sm:$0xff] %v10565_v47  ;;  %13078 = vst [vmem:[#allocation71_spill] sm:$0xff] %v10781_v53  ;;  %v10846_v16 = vld [vmem:[%s10246_s29 + $0x2f0] sm:$0xff] }
  0x6c   : > { %v10517_v21 = vsel %vm1148_vm3, %v1175_v7, %v1177_v12  ;;  %v1194_v7 = vrot.slane %v10353_v33, 2  ;;  %v1195_v12 = vrot.slane %v10360_v34, 2  ;;  %13084 = vst [vmem:[#allocation77_spill] sm:$0xff] %v10846_v16  ;;  %v10853_v33 = vld [vmem:[%s10246_s29 + $0x58] sm:$0x3] }
  0x6d   : > { %8701 = vmatmul.mubr.msk.f32.gmra.mrb[2].mxu0 %vm562_vm2, %v10451_v56  ;;  %13044 = vst [vmem:[#allocation37_spill] sm:$0xff] %v10517_v21  ;;  %v10774_v56 = vld [vmem:[%s10246_s29 + $0x1c8] sm:$0xff]  ;;  %v1937_v32 = vrot.slane %v10853_v33, 1 }
  0x6e   : > { %8703 = vmatprep.mubr.msk.f32.mxu0 %vm562_vm2, %v10457_v60  ;;  %v10571_v59 = vsel %vm1148_vm3, %v1194_v7, %v1195_v12  ;;  %v10581_v63 = vsel %vm1148_vm3, %v1195_v12, %v1197_v48  ;;  %v10587_v7 = vsel %vm1148_vm3, %v1199_v50, %v1200_v58  ;;  %v10771_v60 = vld [vmem:[%s10246_s29 + $0x1a0] sm:$0xff] }
  0x6f   : > { %13054 = vst [vmem:[#allocation47_spill] sm:$0xff] %v10571_v59  ;;  %13056 = vst [vmem:[#allocation49_spill] sm:$0xff] %v10581_v63 }
  0x70   : > { %13057 = vst [vmem:[#allocation50_spill] sm:$0xff] %v10587_v7  ;;  %13077 = vst [vmem:[#allocation70_spill] sm:$0xff] %v10771_v60 }
  0x71   : > { %8704 = vmatmul.mubr.msk.f32.gmra.mrb[4].mxu0 %vm562_vm2, %v10469_v62  ;;  %v10764_v62 = vld [vmem:[%s10246_s29 + $0x198] sm:$0xff] }
  0x72   : > { %8706 = vmatprep.mubr.msk.f32.mxu0 %vm562_vm2, %v10475_v2  ;;  %v10761_v2 = vld [vmem:[%s10246_s29 + $0x170] sm:$0xff] }
  0x73   : > { %13076 = vst [vmem:[#allocation69_spill] sm:$0xff] %v10761_v2 }
  0x75   : > { %8707 = vmatmul.mubr.msk.f32.gmra.mrb[6].mxu0 %vm562_vm2, %v10485_v4  ;;  %v10754_v4 = vld [vmem:[%s10246_s29 + $0x168] sm:$0xff] }
  0x76   : > { %8709 = vmatprep.mubr.msk.f32.mxu0 %vm562_vm2, %v10491_v8  ;;  %v10751_v8 = vld [vmem:[%s10246_s29 + $0x140] sm:$0xff] }
  0x77   : > { %13075 = vst [vmem:[#allocation68_spill] sm:$0xff] %v10751_v8 }
  0x79   : > { %8710 = vmatmul.mubr.msk.f32.gmra.mrb[8].mxu0 %vm562_vm2, %v10501_v10  ;;  %v10654_v10 = vld [vmem:[%s10246_s29 + $0x2e0] sm:$0x3] }
  0x7a   : > { %8712 = vmatprep.mubr.msk.f32.mxu0 %vm562_vm2, %v10507_v17  ;;  %v10638_v17 = vld [vmem:[%s10246_s29 + $0x2b0] sm:$0x3]  ;;  %13070 = vst [vmem:[#allocation63_spill] sm:$0xff] %v10654_v10 }
  0x7b   : > { %13067 = vst [vmem:[#allocation60_spill] sm:$0xff] %v10638_v17 }
  0x7d   : > { %8713 = vmatmul.mubr.msk.f32.gmra.mrb[10].mxu0 %vm562_vm2, %v10517_v21  ;;  %v10622_v21 = vld [vmem:[%s10246_s29 + $0x280] sm:$0x3] }
  0x7e   : > { %8715 = vmatprep.mubr.msk.f32.mxu0 %vm562_vm2, %v10523_v51  ;;  %v10606_v51 = vld [vmem:[%s10246_s29 + $0x250] sm:$0x3]  ;;  %13064 = vst [vmem:[#allocation57_spill] sm:$0xff] %v10622_v21 }
  0x7f   : > { %13061 = vst [vmem:[#allocation54_spill] sm:$0xff] %v10606_v51 }
  0x81   : > { %8716 = vmatmul.mubr.msk.f32.gmra.mrb[12].mxu0 %vm562_vm2, %v10533_v57  ;;  %v10590_v57 = vld [vmem:[%s10246_s29 + $0x220] sm:$0x3] }
  0x82   : > { %8718 = vmatprep.mubr.msk.f32.mxu0 %vm562_vm2, %v10539_v0  ;;  %v10574_v0 = vld [vmem:[%s10246_s29 + $0x1f0] sm:$0x3]  ;;  %13058 = vst [vmem:[#allocation51_spill] sm:$0xff] %v10590_v57  ;;  %v1207_v48 = vrot.slane %v10590_v57, 2  ;;  %v10824_v57 = vld [vmem:[%s10246_s29 + $0x2b8] sm:$0xff] }
  0x83   : > { %13055 = vst [vmem:[#allocation48_spill] sm:$0xff] %v10574_v0  ;;  %v1202_v6 = vrot.slane %v10574_v0, 2  ;;  %13083 = vst [vmem:[#allocation76_spill] sm:$0xff] %v10824_v57  ;;  %v10835_v0 = vld [vmem:[%s10246_s29 + $0x2e8] sm:$0xff] }
  0x85   : > { %8719 = vmatmul.mubr.msk.f32.gmra.mrb[14].mxu0 %vm562_vm2, %v10549_v5  ;;  %v1205_v5 = vrot.slane %v10380_v38, 2  ;;  %v10597_v12 = vsel %vm1148_vm3, %v1200_v58, %v1202_v6  ;;  %v1212_v6 = vrot.slane %v10606_v51, 2  ;;  %v10811_v51 = vld [vmem:[%s10246_s29 + $0x260] sm:$0xff] }
  0x86   : > { %8721 = vmatprep.mubr.msk.f32.mxu0 %vm562_vm2, %v10555_v14  ;;  %v1204_v14 = vrot.slane %v10373_v37, 2  ;;  %13059 = vst [vmem:[#allocation52_spill] sm:$0xff] %v10597_v12  ;;  %13081 = vst [vmem:[#allocation74_spill] sm:$0xff] %v10811_v51  ;;  %v10839_v37 = vld [vmem:[%s10246_s29 + $0x28] sm:$0x3] }
  0x87   : > { %v10613_v58 = vsel %vm1148_vm3, %v1205_v5, %v1207_v48  ;;  %v1217_v48 = vrot.slane %v10622_v21, 2  ;;  %v10794_v21 = vld [vmem:[%s10246_s29 + $0x228] sm:$0xff]  ;;  %v1932_v36 = vrot.slane %v10839_v37, 1 }
  0x88   : > { %v10603_v50 = vsel %vm1148_vm3, %v1204_v14, %v1205_v5  ;;  %13062 = vst [vmem:[#allocation55_spill] sm:$0xff] %v10613_v58 }
  0x89   : > { %8722 = vmatmul.mubr.msk.f32.gmra.mrb[16].mxu0 %vm562_vm2, %v10565_v47  ;;  %v1210_v47 = vrot.slane %v10390_v40, 2  ;;  %13060 = vst [vmem:[#allocation53_spill] sm:$0xff] %v10603_v50  ;;  %v10831_v40 = vld [vmem:[%s10246_s29 + $0x2c0] sm:$0xff] }
  0x8a   : > { %8724 = vmatprep.mubr.msk.f32.mxu0 %vm562_vm2, %v10571_v59  ;;  %v1209_v59 = vrot.slane %v10383_v39, 2 }
  0x8b   : > { %v10629_v5 = vsel %vm1148_vm3, %v1210_v47, %v1212_v6  ;;  %v1222_v6 = vrot.slane %v10638_v17, 2  ;;  %v10791_v17 = vld [vmem:[%s10246_s29 + $0x200] sm:$0xff] }
  0x8c   : > { %v10619_v14 = vsel %vm1148_vm3, %v1209_v59, %v1210_v47  ;;  %13065 = vst [vmem:[#allocation58_spill] sm:$0xff] %v10629_v5  ;;  %13079 = vst [vmem:[#allocation72_spill] sm:$0xff] %v10791_v17 }
  0x8d   : > { %8725 = vmatmul.mubr.msk.f32.gmra.mrb[18].mxu0 %vm562_vm2, %v10581_v63  ;;  %v1215_v63 = vrot.slane %v10400_v42, 2  ;;  %13063 = vst [vmem:[#allocation56_spill] sm:$0xff] %v10619_v14  ;;  %v10814_v42 = vld [vmem:[%s10246_s29 + $0x288] sm:$0xff] }
  0x8e   : > { %8727 = vmatprep.mubr.msk.f32.mxu0 %vm562_vm2, %v10587_v7  ;;  %v1214_v7 = vrot.slane %v10393_v41, 2  ;;  %v10821_v41 = vld [vmem:[%s10246_s29 + $0x290] sm:$0xff] }
  0x8f   : > { %v10645_v47 = vsel %vm1148_vm3, %v1215_v63, %v1217_v48  ;;  %v10675_v48 = vld [vmem:[%s10246_s29 + $0x18] sm:$0xff]  ;;  %13082 = vst [vmem:[#allocation75_spill] sm:$0xff] %v10821_v41 }
  0x90   : > { %v10635_v59 = vsel %vm1148_vm3, %v1214_v7, %v1215_v63  ;;  %13068 = vst [vmem:[#allocation61_spill] sm:$0xff] %v10645_v47  ;;  %v1225_v7 = vrot.slane %v10420_v46, 2  ;;  %v1929_v39 = vrot.slane %v10675_v48, 1 }
  0x91   : > { %8728 = vmatmul.mubr.msk.f32.gmra.mrb[20].mxu0 %vm562_vm2, %v10597_v12  ;;  %v1220_v12 = vrot.slane %v10410_v44, 2  ;;  %13066 = vst [vmem:[#allocation59_spill] sm:$0xff] %v10635_v59  ;;  %v10801_v44 = vld [vmem:[%s10246_s29 + $0x230] sm:$0xff] }
  0x92   : > { %8730 = vmatprep.mubr.msk.f32.mxu0 %vm562_vm2, %v10603_v50  ;;  %v1219_v50 = vrot.slane %v10403_v43, 2  ;;  %13080 = vst [vmem:[#allocation73_spill] sm:$0xff] %v10801_v44  ;;  %v10804_v43 = vld [vmem:[%s10246_s29 + $0x258] sm:$0xff] }
  0x93   : > { %v10661_v63 = vsel %vm1148_vm3, %v1220_v12, %v1222_v6  ;;  %v10690_v6 = vld [vmem:[%s12915_s1 + $0x14] sm:$0xf] }
  0x94   : > { %13071 = vst [vmem:[#allocation64_spill] sm:$0xff] %v10661_v63 }
  0x95   : > { %8731 = vmatmul.mubr.msk.f32.gmra.mrb[22].mxu0 %vm562_vm2, %v10613_v58  ;;  %v10651_v58 = vsel %vm1148_vm3, %v1219_v50, %v1220_v12  ;;  %v10682_v12 = vld [vmem:[%s10246_s29 + $0x20] sm:$0xff] }
  0x96   : > { %8733 = vmatprep.mubr.msk.f32.mxu0 %vm562_vm2, %v10619_v14  ;;  %v1224_v14 = vrot.slane %v10413_v45, 2  ;;  %13069 = vst [vmem:[#allocation62_spill] sm:$0xff] %v10651_v58  ;;  %v1227_v45 = vrot.slane %v10654_v10, 2  ;;  %v10784_v10 = vld [vmem:[%s10246_s29 + $0x1f8] sm:$0xff]  ;;  %v1930_v38 = vrot.slane %v10682_v12, 1 }
  0x98   : > { %v10665_v46 = vsel %vm1148_vm3, %v1224_v14, %v1225_v7  ;;  %v10672_v50 = vsel %vm1148_vm3, %v1225_v7, %v1227_v45  ;;  %v10685_v14 = vld [vmem:[%s10246_s29 + $0x48] sm:$0xff]  ;;  %v10699_v7 = vld [vmem:[%s10246_s29 + $0x50] sm:$0xff]  ;;  %v10702_v45 = vld [vmem:[%s10246_s29 + $0x78] sm:$0xff]  ;;  %v1931_v34 = vsel %vm479_vm1, %v1929_v39, %v1930_v38  ;;  %v1933_v52 = vsel %vm479_vm1, %v1930_v38, %v1932_v36 }
  0x99   : > { %8734 = vmatmul.mubr.msk.f32.gmra.mrb[24].mxu0 %vm562_vm2, %v10629_v5  ;;  %13072 = vst [vmem:[#allocation65_spill] sm:$0xff] %v10665_v46  ;;  %13073 = vst [vmem:[#allocation66_spill] sm:$0xff] %v10672_v50  ;;  %v10744_v5 = vld [vmem:[%s10246_s29 + $0x138] sm:$0xff]  ;;  %v1934_v35 = vrot.slane %v10685_v14, 1  ;;  %v1935_v1 = vrot.slane %v10699_v7, 1  ;;  %v1939_v31 = vrot.slane %v10702_v45, 1 }
  0x9a   : > { %8736 = vmatprep.mubr.msk.f32.mxu0 %vm562_vm2, %v10635_v59  ;;  %v10741_v59 = vld [vmem:[%s10246_s29 + $0x110] sm:$0xff]  ;;  %v10869_v39 = vld [vmem:[%s12915_s1 + $0x18] sm:$0xf]  ;;  %v1942_v36 = vrot.slane %v10864_v29, 1 }
  0x9b   : > { %13074 = vst [vmem:[#allocation67_spill] sm:$0xff] %v10741_v59  ;;  %v1936_v30 = vsel %vm479_vm1, %v1934_v35, %v1935_v1 }
  0x9d   : > { %8737 = vmatmul.mubr.msk.f32.gmra.mrb[26].mxu0 %vm562_vm2, %v10645_v47  ;;  %v10734_v47 = vld [vmem:[%s10246_s29 + $0x108] sm:$0xff] }
  0x9e   : > { %8739 = vmatprep.mubr.msk.f32.mxu0 %vm562_vm2, %v10651_v58  ;;  %v10731_v58 = vld [vmem:[%s10246_s29 + $0xe0] sm:$0xff] }
  0xa1   : > { %8740 = vmatmul.mubr.msk.f32.gmra.mrb[28].mxu0 %vm562_vm2, %v10661_v63  ;;  %v10724_v63 = vld [vmem:[%s10246_s29 + $0xd8] sm:$0xff] }
  0xa2   : > { %8742 = vmatprep.mubr.msk.f32.mxu0 %vm562_vm2, %v10665_v46  ;;  %v10721_v46 = vld [vmem:[%s10246_s29 + $0xb0] sm:$0xff] }
  0xa3   : > { %v1945_v38 = vrot.slane %v10721_v46, 1 }
  0xa5   : > { %8743 = vmatmul.mubr.msk.f32.gmra.mrb[30].mxu0 %vm562_vm2, %v10672_v50  ;;  %v10714_v50 = vld [vmem:[%s10246_s29 + $0xa8] sm:$0xff] }
  0xa6   : > { %8747 = vmatprep.mubr.msk.f32.mxu0 %vm562_vm2, %v10675_v48  ;;  %v1944_v35 = vrot.slane %v10714_v50, 1 }
  0xa9   : > { %8748 = vmatmul.mubr.msk.f32.vlgmr.msra.gmra.mrb[0].mxu0 %vm562_vm2, %v10682_v12 }
  0xaa   : > { %8796 = vmatpush3.msk.msra.mxu0 %vm627_vm0, %v10442_v55  ;;  %8750 = vmatprep.mubr.msk.f32.mxu0 %vm562_vm2, %v10685_v14  ;;  %v10711_v55 = vld [vmem:[%s10246_s29 + $0x80] sm:$0xff] }
  0xab   : > { %8845 = vmatprep.subr.msk.mxu0 %vm627_vm0, %v10690_v6  ;;  %v1940_v20 = vrot.slane %v10711_v55, 1 }
  0xad   : > { %8751 = vmatmul.mubr.msk.f32.gmra.mrb[2].mxu0 %vm562_vm2, %v10699_v7  ;;  %v1941_v9 = vsel %vm479_vm1, %v1939_v31, %v1940_v20  ;;  %v1946_v31 = vsel %vm479_vm1, %v1944_v35, %v1945_v38 }
  0xae   : > { %8753 = vmatprep.mubr.msk.f32.mxu0 %vm562_vm2, %v10702_v45 }
  0xb1   : > { %8754 = vmatmul.mubr.msk.f32.gmra.mrb[4].mxu0 %vm562_vm2, %v10711_v55 }
  0xb2   : > { %8756 = vmatprep.mubr.msk.f32.mxu0 %vm562_vm2, %v10714_v50 }
  0xb5   : > { %8757 = vmatmul.mubr.msk.f32.gmra.mrb[6].mxu0 %vm562_vm2, %v10721_v46 }
  0xb6   : > { %8759 = vmatprep.mubr.msk.f32.mxu0 %vm562_vm2, %v10724_v63 }
  0xb9   : > { %8760 = vmatmul.mubr.msk.f32.gmra.mrb[8].mxu0 %vm562_vm2, %v10731_v58 }
  0xba   : > { %8762 = vmatprep.mubr.msk.f32.mxu0 %vm562_vm2, %v10734_v47 }
  0xbd   : > { %8763 = vmatmul.mubr.msk.f32.gmra.mrb[10].mxu0 %vm562_vm2, %v10741_v59 }
  0xbe   : > { %8765 = vmatprep.mubr.msk.f32.mxu0 %vm562_vm2, %v10744_v5 }
  0xc1   : > { %8766 = vmatmul.mubr.msk.f32.gmra.mrb[12].mxu0 %vm562_vm2, %v10751_v8 }
  0xc2   : > { %8768 = vmatprep.mubr.msk.f32.mxu0 %vm562_vm2, %v10754_v4 }
  0xc5   : > { %8769 = vmatmul.mubr.msk.f32.gmra.mrb[14].mxu0 %vm562_vm2, %v10761_v2 }
  0xc6   : > { %8771 = vmatprep.mubr.msk.f32.mxu0 %vm562_vm2, %v10764_v62 }
  0xc9   : > { %8772 = vmatmul.mubr.msk.f32.gmra.mrb[16].mxu0 %vm562_vm2, %v10771_v60 }
  0xca   : > { %8774 = vmatprep.mubr.msk.f32.mxu0 %vm562_vm2, %v10774_v56 }
  0xcd   : > { %8775 = vmatmul.mubr.msk.f32.gmra.mrb[18].mxu0 %vm562_vm2, %v10781_v53 }
  0xce   : > { %8777 = vmatprep.mubr.msk.f32.mxu0 %vm562_vm2, %v10784_v10 }
  0xd1   : > { %8778 = vmatmul.mubr.msk.f32.gmra.mrb[20].mxu0 %vm562_vm2, %v10791_v17 }
  0xd2   : > { %8780 = vmatprep.mubr.msk.f32.mxu0 %vm562_vm2, %v10794_v21 }
  0xd5   : > { %8781 = vmatmul.mubr.msk.f32.gmra.mrb[22].mxu0 %vm562_vm2, %v10801_v44 }
  0xd6   : > { %8783 = vmatprep.mubr.msk.f32.mxu0 %vm562_vm2, %v10804_v43 }
  0xd9   : > { %8784 = vmatmul.mubr.msk.f32.gmra.mrb[24].mxu0 %vm562_vm2, %v10811_v51 }
  0xda   : > { %8786 = vmatprep.mubr.msk.f32.mxu0 %vm562_vm2, %v10814_v42 }
  0xdd   : > { %8787 = vmatmul.mubr.msk.f32.gmra.mrb[26].mxu0 %vm562_vm2, %v10821_v41 }
  0xde   : > { %8789 = vmatprep.mubr.msk.f32.mxu0 %vm562_vm2, %v10824_v57 }
  0xe1   : > { %8790 = vmatmul.mubr.msk.f32.gmra.mrb[28].mxu0 %vm562_vm2, %v10831_v40 }
  0xe2   : > { %8792 = vmatprep.mubr.msk.f32.mxu0 %vm562_vm2, %v10835_v0 }
  0xe5   : > { %8793 = vmatmul.mubr.msk.f32.gmra.mrb[30].mxu0 %vm562_vm2, %v10846_v16 }
  0xe6   : > { %8797 = vmatprep.mubr.msk.f32.mxu0 %vm562_vm2, %v1931_v34  ;;  %v1938_v34 = vsel %vm479_vm1, %v1935_v1, %v1937_v32  ;;  %v1947_v32 = vrot.slane %v10881_v28, 1  ;;  %v1950_v1 = vrot.slane %v10731_v58, 1 }
  0xe9   : > { %8798 = vmatmul.mubr.msk.f32.vlgmr.msra.gmra.mrb[0].mxu0 %vm562_vm2, %v1933_v52  ;;  %v1949_v52 = vrot.slane %v10724_v63, 1 }
  0xea   : > { %8846 = vmatpush3.msk.msra.mxu0 %vm627_vm0, %v10690_v6  ;;  %8800 = vmatprep.mubr.msk.f32.mxu0 %vm562_vm2, %v1936_v30  ;;  %v1943_v30 = vsel %vm479_vm1, %v1940_v20, %v1942_v36  ;;  %v10893_v6 = vld [vmem:[%s10246_s29 + $0xe8] sm:$0x3]  ;;  %v1954_v20 = vrot.slane %v10734_v47, 1  ;;  %v1955_v36 = vrot.slane %v10741_v59, 1 }
  0xeb   : > { %8895 = vmatprep.subr.msk.mxu0 %vm627_vm0, %v10869_v39  ;;  %v1951_v27 = vsel %vm479_vm1, %v1949_v52, %v1950_v1  ;;  %v10913_v59 = vld [vmem:[%s10246_s29 + $0x148] sm:$0x3] }
  0xed   : > { %8801 = vmatmul.mubr.msk.f32.gmra.mrb[2].mxu0 %vm562_vm2, %v1938_v34  ;;  %v1948_v34 = vsel %vm479_vm1, %v1945_v38, %v1947_v32  ;;  %v1959_v38 = vrot.slane %v10744_v5, 1  ;;  %v1960_v32 = vrot.slane %v10751_v8, 1  ;;  %v10923_v8 = vld [vmem:[%s10246_s29 + $0x178] sm:$0x3] }
  0xee   : > { %8803 = vmatprep.mubr.msk.f32.mxu0 %vm562_vm2, %v1941_v9  ;;  %v1952_v9 = vrot.slane %v10893_v6, 1 }
  0xf0   : > { %v1953_v35 = vsel %vm479_vm1, %v1950_v1, %v1952_v9  ;;  %v1964_v1 = vrot.slane %v10754_v4, 1  ;;  %v1961_v9 = vsel %vm479_vm1, %v1959_v38, %v1960_v32 }
  0xf1   : > { %8804 = vmatmul.mubr.msk.f32.gmra.mrb[4].mxu0 %vm562_vm2, %v1943_v30  ;;  %v1957_v30 = vrot.slane %v10903_v3, 1 }
  0xf2   : > { %8806 = vmatprep.mubr.msk.f32.mxu0 %vm562_vm2, %v1946_v31  ;;  %v1956_v31 = vsel %vm479_vm1, %v1954_v20, %v1955_v36 }
  0xf3   : > { %v1958_v52 = vsel %vm479_vm1, %v1955_v36, %v1957_v30  ;;  %v1969_v36 = vrot.slane %v10764_v62, 1  ;;  %v1970_v30 = vrot.slane %v10771_v60, 1  ;;  %v10943_v60 = vld [vmem:[%s10246_s29 + $0x1d8] sm:$0x3] }
  0xf5   : > { %8807 = vmatmul.mubr.msk.f32.gmra.mrb[6].mxu0 %vm562_vm2, %v1948_v34  ;;  %v1965_v34 = vrot.slane %v10761_v2, 1  ;;  %v10933_v2 = vld [vmem:[%s10246_s29 + $0x1a8] sm:$0x3] }
  0xf6   : > { %8809 = vmatprep.mubr.msk.f32.mxu0 %vm562_vm2, %v1951_v27  ;;  %v1962_v27 = vrot.slane %v10913_v59, 1 }
  0xf8   : > { %v1963_v20 = vsel %vm479_vm1, %v1960_v32, %v1962_v27  ;;  %v1974_v32 = vrot.slane %v10774_v56, 1  ;;  %v1975_v27 = vrot.slane %v10781_v53, 1  ;;  %v10953_v53 = vld [vmem:[%s10246_s29 + $0x208] sm:$0x3] }
  0xf9   : > { %8810 = vmatmul.mubr.msk.f32.gmra.mrb[8].mxu0 %vm562_vm2, %v1953_v35  ;;  %v1967_v35 = vrot.slane %v10923_v8, 1 }
  0xfa   : > { %8812 = vmatprep.mubr.msk.f32.mxu0 %vm562_vm2, %v1956_v31  ;;  %v1966_v31 = vsel %vm479_vm1, %v1964_v1, %v1965_v34 }
  0xfb   : > { %v1968_v38 = vsel %vm479_vm1, %v1965_v34, %v1967_v35  ;;  %v1979_v34 = vrot.slane %v10784_v10, 1  ;;  %v1980_v35 = vrot.slane %v10791_v17, 1  ;;  %v10963_v17 = vld [vmem:[%s10246_s29 + $0x238] sm:$0x3] }
  0xfd   : > { %8813 = vmatmul.mubr.msk.f32.gmra.mrb[10].mxu0 %vm562_vm2, %v1958_v52  ;;  %v1972_v52 = vrot.slane %v10933_v2, 1 }
  0xfe   : > { %8815 = vmatprep.mubr.msk.f32.mxu0 %vm562_vm2, %v1961_v9  ;;  %v1971_v9 = vsel %vm479_vm1, %v1969_v36, %v1970_v30 }
  0xff   : > { %v1973_v1 = vsel %vm479_vm1, %v1970_v30, %v1972_v52  ;;  %v1984_v30 = vrot.slane %v10794_v21, 1  ;;  %v1985_v52 = vrot.slane %v10801_v44, 1  ;;  %v10973_v44 = vld [vmem:[%s10246_s29 + $0x268] sm:$0x3] }
 0x101   : > { %8816 = vmatmul.mubr.msk.f32.gmra.mrb[12].mxu0 %vm562_vm2, %v1963_v20  ;;  %v1977_v20 = vrot.slane %v10943_v60, 1 }
 0x102   : > { %8818 = vmatprep.mubr.msk.f32.mxu0 %vm562_vm2, %v1966_v31  ;;  %v1976_v31 = vsel %vm479_vm1, %v1974_v32, %v1975_v27 }
 0x103   : > { %v1978_v36 = vsel %vm479_vm1, %v1975_v27, %v1977_v20  ;;  %v1989_v27 = vrot.slane %v10804_v43, 1  ;;  %v1990_v20 = vrot.slane %v10811_v51, 1  ;;  %v10983_v51 = vld [vmem:[%s10246_s29 + $0x298] sm:$0x3] }
 0x105   : > { %8819 = vmatmul.mubr.msk.f32.gmra.mrb[14].mxu0 %vm562_vm2, %v1968_v38  ;;  %v1982_v38 = vrot.slane %v10953_v53, 1 }
 0x106   : > { %8821 = vmatprep.mubr.msk.f32.mxu0 %vm562_vm2, %v1971_v9  ;;  %v1981_v9 = vsel %vm479_vm1, %v1979_v34, %v1980_v35 }
 0x107   : > { %v1983_v32 = vsel %vm479_vm1, %v1980_v35, %v1982_v38  ;;  %v1994_v35 = vrot.slane %v10814_v42, 1  ;;  %v1995_v38 = vrot.slane %v10821_v41, 1  ;;  %v10993_v41 = vld [vmem:[%s10246_s29 + $0x2c8] sm:$0x3] }
 0x109   : > { %8822 = vmatmul.mubr.msk.f32.gmra.mrb[16].mxu0 %vm562_vm2, %v1973_v1  ;;  %v1987_v1 = vrot.slane %v10963_v17, 1 }
 0x10a   : > { %8824 = vmatprep.mubr.msk.f32.mxu0 %vm562_vm2, %v1976_v31  ;;  %v1986_v31 = vsel %vm479_vm1, %v1984_v30, %v1985_v52 }
 0x10b   : > { %v1988_v34 = vsel %vm479_vm1, %v1985_v52, %v1987_v1  ;;  %v1999_v52 = vrot.slane %v10824_v57, 1  ;;  %v2000_v1 = vrot.slane %v10831_v40, 1  ;;  %v11003_v57 = vld [vmem:[%s10246_s29 + $0x2f8] sm:$0x3] }
 0x10d   : > { %8825 = vmatmul.mubr.msk.f32.gmra.mrb[18].mxu0 %vm562_vm2, %v1978_v36  ;;  %v1992_v36 = vrot.slane %v10973_v44, 1 }
 0x10e   : > { %8827 = vmatprep.mubr.msk.f32.mxu0 %vm562_vm2, %v1981_v9  ;;  %v1991_v9 = vsel %vm479_vm1, %v1989_v27, %v1990_v20 }
 0x10f   : > { %v1993_v30 = vsel %vm479_vm1, %v1990_v20, %v1992_v36  ;;  %v2004_v20 = vrot.slane %v10835_v0, 1  ;;  %v2005_v36 = vrot.slane %v10846_v16, 1  ;;  %v485_v16 = vrot.slane %v10262_v11, 1 }
 0x110   : > { %v490_v11 = vrot.slane %v10277_v15, 1  ;;  %v2345_v15 = vrot.slane %v10702_v45, 2 }
 0x111   : > { %8828 = vmatmul.mubr.msk.f32.gmra.mrb[20].mxu0 %vm562_vm2, %v1983_v32  ;;  %v1997_v32 = vrot.slane %v10983_v51, 1 }
 0x112   : > { %8830 = vmatprep.mubr.msk.f32.mxu0 %vm562_vm2, %v1986_v31  ;;  %v1996_v31 = vsel %vm479_vm1, %v1994_v35, %v1995_v38 }
 0x113   : > { %v1998_v27 = vsel %vm479_vm1, %v1995_v38, %v1997_v32  ;;  %v2335_v38 = vrot.slane %v10675_v48, 2  ;;  %v2006_v32 = vsel %vm479_vm1, %v2004_v20, %v2005_v36  ;;  %v2340_v48 = vrot.slane %v10685_v14, 2 }
 0x114   : > { %v2341_v20 = vrot.slane %v10699_v7, 2  ;;  %v2346_v7 = vrot.slane %v10711_v55, 2  ;;  %v2348_v55 = vrot.slane %v10864_v29, 2  ;;  %v500_v29 = vrot.slane %v10303_v23, 1 }
 0x115   : > { %8831 = vmatmul.mubr.msk.f32.gmra.mrb[22].mxu0 %vm562_vm2, %v1988_v34  ;;  %v2002_v34 = vrot.slane %v10993_v41, 1  ;;  %v2355_v23 = vrot.slane %v10724_v63, 2  ;;  %v13085_v63 = vld [vmem:[#allocation30_spill] sm:$0xff] }
 0x116   : > { %8833 = vmatprep.mubr.msk.f32.mxu0 %vm562_vm2, %v1991_v9  ;;  %v2001_v9 = vsel %vm479_vm1, %v1999_v52, %v2000_v1  ;;  %v486_v52 = vrot.slane %v10274_v13, 1 }
 0x117   : > { %v2003_v35 = vsel %vm479_vm1, %v2000_v1, %v2002_v34  ;;  %v2338_v34 = vrot.slane %v10839_v37, 2  ;;  %v2343_v37 = vrot.slane %v10853_v33, 2  ;;  %v495_v33 = vrot.slane %v10289_v19, 1 }
 0x118   : > { %v11025_v13 = vsel %vm479_vm1, %v485_v16, %v486_v52  ;;  %v2342_v16 = vsel %vm1148_vm3, %v2340_v48, %v2341_v20  ;;  %v2350_v19 = vrot.slane %v10714_v50, 2  ;;  %v2353_v50 = vrot.slane %v10881_v28, 2 }
 0x119   : > { %8834 = vmatmul.mubr.msk.f32.gmra.mrb[24].mxu0 %vm562_vm2, %v1993_v30  ;;  %v2007_v30 = vrot.slane %v11003_v57, 1  ;;  %8600 = vmatprep.mubr.msk.f32.mxu1 %vm562_vm2, %v11025_v13  ;;  %v2344_v45 = vsel %vm1148_vm3, %v2341_v20, %v2343_v37  ;;  %v503_v48 = vrot.slane %v13085_v63, 1  ;;  %v13088_v37 = vld [vmem:[#allocation8_spill] sm:$0xff] }
 0x11a   : > { %8836 = vmatprep.mubr.msk.f32.mxu0 %vm562_vm2, %v1996_v31  ;;  %v2336_v31 = vrot.slane %v10682_v12, 2  ;;  %v13096_v63 = vld [vmem:[#allocation12_spill] sm:$0xff] }
 0x11b   : > { %v2008_v1 = vsel %vm479_vm1, %v2005_v36, %v2007_v30  ;;  %v493_v30 = vrot.slane %v10437_v54, 1 }
 0x11c   : > { %v2337_v12 = vsel %vm1148_vm3, %v2335_v38, %v2336_v31  ;;  %v2339_v36 = vsel %vm1148_vm3, %v2336_v31, %v2338_v34  ;;  %v2347_v38 = vsel %vm1148_vm3, %v2345_v15, %v2346_v7  ;;  %v498_v31 = vrot.slane %v10460_v61, 1 }
 0x11d   : > { %8837 = vmatmul.mubr.msk.f32.gmra.mrb[26].mxu0 %vm562_vm2, %v1998_v27  ;;  %v488_v27 = vrot.slane %v10425_v49, 1  ;;  %v491_v49 = vrot.slane %v10286_v18, 1  ;;  %v11044_v18 = vld [vmem:[%s12915_s1 + $0x1c] sm:$0xf]  ;;  %v506_v34 = vrot.slane %v10320_v26, 1  ;;  %v13086_v26 = vld [vmem:[#allocation67_spill] sm:$0xff] }
 0x11e   : > { %8839 = vmatprep.mubr.msk.f32.mxu0 %vm562_vm2, %v2001_v9  ;;  %v496_v9 = vrot.slane %v10300_v22, 1  ;;  %v2351_v22 = vrot.slane %v10721_v46, 2  ;;  %v2349_v46 = vsel %vm1148_vm3, %v2346_v7, %v2348_v55  ;;  %v2361_v20 = vrot.slane %v13086_v26, 2  ;;  %v13097_v26 = vld [vmem:[#allocation39_spill] sm:$0xff] }
 0x11f   : > { %v11032_v14 = vsel %vm479_vm1, %v486_v52, %v488_v27  ;;  %v511_v15 = vrot.slane %v13088_v37, 1  ;;  %v2363_v7 = vrot.slane %v10903_v3, 2 }
 0x120   : > { %8601 = vmatmul.mubr.msk.f32.vlgmr.msra.gmra.mrb[0].mxu1 %vm562_vm2, %v11032_v14  ;;  %v11072_v54 = vsel %vm479_vm1, %v495_v33, %v496_v9  ;;  %v2352_v52 = vsel %vm1148_vm3, %v2350_v19, %v2351_v22  ;;  %v11086_v27 = vsel %vm479_vm1, %v496_v9, %v498_v31  ;;  %v2354_v61 = vsel %vm1148_vm3, %v2351_v22, %v2353_v50  ;;  %v13091_v22 = vld [vmem:[#allocation9_spill] sm:$0xff]  ;;  %v13093_v50 = vld [vmem:[#allocation36_spill] sm:$0xff] }
 0x121   : > { %8840 = vmatmul.mubr.msk.f32.gmra.mrb[28].mxu0 %vm562_vm2, %v2003_v35  ;;  %v11055_v35 = vsel %vm479_vm1, %v490_v11, %v491_v49  ;;  %v2365_v9 = vrot.slane %v10744_v5, 2  ;;  %v2364_v5 = vsel %vm1148_vm3, %v2361_v20, %v2363_v7  ;;  %v513_v31 = vrot.slane %v13093_v50, 1  ;;  %v13104_v50 = vld [vmem:[#allocation16_spill] sm:$0xff] }
 0x122   : > { %8842 = vmatprep.mubr.msk.f32.mxu0 %vm562_vm2, %v2006_v32  ;;  %8603 = vmatprep.mubr.msk.f32.mxu1 %vm562_vm2, %v11055_v35  ;;  %v501_v32 = vrot.slane %v10310_v24, 1  ;;  %v2356_v24 = vrot.slane %v10731_v58, 2  ;;  %v2358_v58 = vrot.slane %v10893_v6, 2 }
 0x124   : > { %v11092_v28 = vsel %vm479_vm1, %v500_v29, %v501_v32  ;;  %v11106_v11 = vsel %vm479_vm1, %v501_v32, %v503_v48  ;;  %v13092_v29 = vld [vmem:[#allocation10_spill] sm:$0xff]  ;;  %v521_v48 = vrot.slane %v13096_v63, 1 }
 0x125   : > { %8843 = vmatmul.mubr.msk.f32.gmra.mrb[30].mxu0 %vm562_vm2, %v2008_v1  ;;  %v505_v1 = vrot.slane %v10313_v25, 1  ;;  %v2360_v25 = vrot.slane %v10734_v47, 2  ;;  %v2359_v47 = vsel %vm1148_vm3, %v2356_v24, %v2358_v58  ;;  %v516_v32 = vrot.slane %v13092_v29, 1 }
 0x126   : > { %8847 = vmatprep.mubr.msk.f32.mxu0 %vm562_vm2, %v2337_v12  ;;  %v2357_v12 = vsel %vm1148_vm3, %v2355_v23, %v2356_v24  ;;  %v2370_v23 = vrot.slane %v10754_v4, 2  ;;  %v13094_v24 = vld [vmem:[#allocation69_spill] sm:$0xff] }
 0x127   : > { %v11112_v6 = vsel %vm479_vm1, %v505_v1, %v506_v34 }
 0x129   : > { %8848 = vmatmul.mubr.msk.f32.vlgmr.msra.gmra.mrb[0].mxu0 %vm562_vm2, %v2339_v36 }
 0x12a   : > { %8896 = vmatpush3.msk.msra.mxu0 %vm627_vm0, %v10869_v39  ;;  %8850 = vmatprep.mubr.msk.f32.mxu0 %vm562_vm2, %v2342_v16  ;;  %v11066_v39 = vsel %vm479_vm1, %v491_v49, %v493_v30  ;;  %v13087_v49 = vld [vmem:[#allocation7_spill] sm:$0xff]  ;;  %v13089_v16 = vld [vmem:[#allocation33_spill] sm:$0xff]  ;;  %v2362_v30 = vsel %vm1148_vm3, %v2360_v25, %v2361_v20  ;;  %v2373_v25 = vrot.slane %v10923_v8, 2  ;;  %v518_v20 = vrot.slane %v13097_v26, 1  ;;  %v13108_v26 = vld [vmem:[#allocation18_spill] sm:$0xff] }
 0x12b   : > { %8945 = vmatprep.subr.msk.mxu0 %vm627_vm0, %v11044_v18  ;;  %8604 = vmatmul.mubr.msk.f32.gmra.mrb[2].mxu1 %vm562_vm2, %v11066_v39  ;;  %v510_v36 = vrot.slane %v13087_v49, 1  ;;  %v508_v33 = vrot.slane %v13089_v16, 1  ;;  %v13098_v49 = vld [vmem:[#allocation70_spill] sm:$0xff] }
 0x12c   : > { %8606 = vmatprep.mubr.msk.f32.mxu1 %vm562_vm2, %v11072_v54  ;;  %v13100_v16 = vld [vmem:[#allocation14_spill] sm:$0xff] }
 0x12d   : > { %8851 = vmatmul.mubr.msk.f32.gmra.mrb[2].mxu0 %vm562_vm2, %v2344_v45  ;;  %v13090_v45 = vld [vmem:[#allocation68_spill] sm:$0xff]  ;;  %v11126_v19 = vsel %vm479_vm1, %v506_v34, %v508_v33  ;;  %v11132_v3 = vsel %vm479_vm1, %v510_v36, %v511_v15  ;;  %v11146_v34 = vsel %vm479_vm1, %v511_v15, %v513_v31  ;;  %v2376_v36 = vrot.slane %v13098_v49, 2 }
 0x12e   : > { %8853 = vmatprep.mubr.msk.f32.mxu0 %vm562_vm2, %v2347_v38  ;;  %v2366_v55 = vrot.slane %v13090_v45, 2  ;;  %v515_v38 = vrot.slane %v13091_v22, 1  ;;  %v11166_v15 = vsel %vm479_vm1, %v516_v32, %v518_v20  ;;  %v526_v33 = vrot.slane %v13100_v16, 1  ;;  %v13101_v45 = vld [vmem:[#allocation42_spill] sm:$0xff]  ;;  %v13102_v22 = vld [vmem:[#allocation71_spill] sm:$0xff]  ;;  %v13109_v49 = vld [vmem:[#allocation48_spill] sm:$0xff] }
 0x12f   : > { %8607 = vmatmul.mubr.msk.f32.gmra.mrb[4].mxu1 %vm562_vm2, %v11086_v27  ;;  %v531_v31 = vrot.slane %v13104_v50, 1  ;;  %v536_v20 = vrot.slane %v13108_v26, 1 }
 0x130   : > { %8609 = vmatprep.mubr.msk.f32.mxu1 %vm562_vm2, %v11092_v28  ;;  %v2367_v1 = vsel %vm1148_vm3, %v2365_v9, %v2366_v55  ;;  %v2378_v9 = vrot.slane %v10933_v2, 2 }
 0x131   : > { %8854 = vmatmul.mubr.msk.f32.gmra.mrb[4].mxu0 %vm562_vm2, %v2349_v46  ;;  %v2368_v46 = vrot.slane %v10913_v59, 2  ;;  %v11152_v59 = vsel %vm479_vm1, %v515_v38, %v516_v32  ;;  %v2381_v38 = vrot.slane %v13102_v22, 2  ;;  %v13113_v22 = vld [vmem:[#allocation51_spill] sm:$0xff] }
 0x132   : > { %8856 = vmatprep.mubr.msk.f32.mxu0 %vm562_vm2, %v2352_v52  ;;  %v2371_v52 = vrot.slane %v13094_v24, 2  ;;  %v13105_v24 = vld [vmem:[#allocation45_spill] sm:$0xff] }
 0x133   : > { %8610 = vmatmul.mubr.msk.f32.gmra.mrb[6].mxu1 %vm562_vm2, %v11106_v11  ;;  %v2369_v4 = vsel %vm1148_vm3, %v2366_v55, %v2368_v46  ;;  %v523_v55 = vrot.slane %v13101_v45, 1  ;;  %v13112_v45 = vld [vmem:[#allocation20_spill] sm:$0xff] }
 0x134   : > { %8612 = vmatprep.mubr.msk.f32.mxu1 %vm562_vm2, %v11112_v6  ;;  %v2372_v37 = vsel %vm1148_vm3, %v2370_v23, %v2371_v52  ;;  %v2383_v23 = vrot.slane %v10943_v60, 2 }
 0x135   : > { %8857 = vmatmul.mubr.msk.f32.gmra.mrb[6].mxu0 %vm562_vm2, %v2354_v61  ;;  %v13095_v61 = vld [vmem:[#allocation11_spill] sm:$0xff]  ;;  %v11186_v32 = vsel %vm479_vm1, %v521_v48, %v523_v55  ;;  %v541_v55 = vrot.slane %v13112_v45, 1 }
 0x136   : > { %8859 = vmatprep.mubr.msk.f32.mxu0 %vm562_vm2, %v2357_v12  ;;  %v520_v58 = vrot.slane %v13095_v61, 1  ;;  %v2375_v12 = vrot.slane %v10764_v62, 2  ;;  %v2374_v62 = vsel %vm1148_vm3, %v2371_v52, %v2373_v25  ;;  %v528_v52 = vrot.slane %v13105_v24, 1  ;;  %v13106_v61 = vld [vmem:[#allocation72_spill] sm:$0xff]  ;;  %v13116_v24 = vld [vmem:[#allocation22_spill] sm:$0xff] }
 0x137   : > { %8613 = vmatmul.mubr.msk.f32.gmra.mrb[8].mxu1 %vm562_vm2, %v11126_v19 }
 0x138   : > { %8615 = vmatprep.mubr.msk.f32.mxu1 %vm562_vm2, %v11132_v3  ;;  %v11172_v8 = vsel %vm479_vm1, %v520_v58, %v521_v48  ;;  %v2377_v29 = vsel %vm1148_vm3, %v2375_v12, %v2376_v36  ;;  %v2386_v58 = vrot.slane %v13106_v61, 2  ;;  %v11206_v48 = vsel %vm479_vm1, %v526_v33, %v528_v52  ;;  %v13117_v61 = vld [vmem:[#allocation54_spill] sm:$0xff] }
 0x139   : > { %8860 = vmatmul.mubr.msk.f32.gmra.mrb[8].mxu0 %vm562_vm2, %v2359_v47  ;;  %v13099_v47 = vld [vmem:[#allocation13_spill] sm:$0xff]  ;;  %v2388_v12 = vrot.slane %v10953_v53, 2  ;;  %v546_v52 = vrot.slane %v13116_v24, 1 }
 0x13a   : > { %8862 = vmatprep.mubr.msk.f32.mxu0 %vm562_vm2, %v2362_v30  ;;  %v525_v7 = vrot.slane %v13099_v47, 1  ;;  %v2380_v30 = vrot.slane %v10774_v56, 2  ;;  %v2379_v56 = vsel %vm1148_vm3, %v2376_v36, %v2378_v9  ;;  %v533_v36 = vrot.slane %v13109_v49, 1  ;;  %v13110_v47 = vld [vmem:[#allocation73_spill] sm:$0xff]  ;;  %v13120_v49 = vld [vmem:[#allocation24_spill] sm:$0xff] }
 0x13b   : > { %8616 = vmatmul.mubr.msk.f32.gmra.mrb[10].mxu1 %vm562_vm2, %v11146_v34 }
 0x13c   : > { %8618 = vmatprep.mubr.msk.f32.mxu1 %vm562_vm2, %v11152_v59  ;;  %v11192_v2 = vsel %vm479_vm1, %v525_v7, %v526_v33  ;;  %v2382_v63 = vsel %vm1148_vm3, %v2380_v30, %v2381_v38  ;;  %v2391_v7 = vrot.slane %v13110_v47, 2  ;;  %v11226_v33 = vsel %vm479_vm1, %v531_v31, %v533_v36  ;;  %v13121_v47 = vld [vmem:[#allocation57_spill] sm:$0xff] }
 0x13d   : > { %8863 = vmatmul.mubr.msk.f32.gmra.mrb[10].mxu0 %vm562_vm2, %v2364_v5  ;;  %v13103_v5 = vld [vmem:[#allocation15_spill] sm:$0xff]  ;;  %v2393_v30 = vrot.slane %v10963_v17, 2 }
 0x13e   : > { %8865 = vmatprep.mubr.msk.f32.mxu0 %vm562_vm2, %v2367_v1  ;;  %v530_v46 = vrot.slane %v13103_v5, 1  ;;  %v2385_v1 = vrot.slane %v10784_v10, 2  ;;  %v2384_v10 = vsel %vm1148_vm3, %v2381_v38, %v2383_v23  ;;  %v538_v38 = vrot.slane %v13113_v22, 1  ;;  %v13114_v5 = vld [vmem:[#allocation74_spill] sm:$0xff]  ;;  %v11293_v22 = vld [vmem:[%s10246_s29 + $0x2d8] sm:$0xff] }
 0x13f   : > { %8619 = vmatmul.mubr.msk.f32.gmra.mrb[12].mxu1 %vm562_vm2, %v11166_v15 }
 0x140   : > { %8621 = vmatprep.mubr.msk.f32.mxu1 %vm562_vm2, %v11172_v8  ;;  %v11212_v60 = vsel %vm479_vm1, %v530_v46, %v531_v31  ;;  %v2387_v16 = vsel %vm1148_vm3, %v2385_v1, %v2386_v58  ;;  %v2396_v46 = vrot.slane %v13114_v5, 2  ;;  %v11246_v31 = vsel %vm479_vm1, %v536_v20, %v538_v38  ;;  %v13123_v5 = vld [vmem:[#allocation60_spill] sm:$0xff] }
 0x141   : > { %8866 = vmatmul.mubr.msk.f32.gmra.mrb[12].mxu0 %vm562_vm2, %v2369_v4  ;;  %v13107_v4 = vld [vmem:[#allocation17_spill] sm:$0xff]  ;;  %v2398_v1 = vrot.slane %v10973_v44, 2  ;;  %v551_v44 = vrot.slane %v13120_v49, 1  ;;  %v10040_v49 = vld [vmem:[%s10246_s29 + $0x90] sm:$0xff] }
 0x142   : > { %8868 = vmatprep.mubr.msk.f32.mxu0 %vm562_vm2, %v2372_v37  ;;  %v535_v25 = vrot.slane %v13107_v4, 1  ;;  %v2390_v37 = vrot.slane %v10794_v21, 2  ;;  %v2389_v21 = vsel %vm1148_vm3, %v2386_v58, %v2388_v12  ;;  %v543_v58 = vrot.slane %v13117_v61, 1  ;;  %v13118_v4 = vld [vmem:[#allocation75_spill] sm:$0xff] }
 0x143   : > { %8622 = vmatmul.mubr.msk.f32.gmra.mrb[14].mxu1 %vm562_vm2, %v11186_v32 }
 0x144   : > { %8624 = vmatprep.mubr.msk.f32.mxu1 %vm562_vm2, %v11192_v2  ;;  %v11232_v53 = vsel %vm479_vm1, %v535_v25, %v536_v20  ;;  %v2392_v50 = vsel %vm1148_vm3, %v2390_v37, %v2391_v7  ;;  %v2401_v25 = vrot.slane %v13118_v4, 2  ;;  %v11266_v20 = vsel %vm479_vm1, %v541_v55, %v543_v58  ;;  %v10036_v4 = vld [vmem:[%s10246_s29 + $0x30] sm:$0xff] }
 0x145   : > { %8869 = vmatmul.mubr.msk.f32.gmra.mrb[14].mxu0 %vm562_vm2, %v2374_v62  ;;  %v13111_v62 = vld [vmem:[#allocation19_spill] sm:$0xff]  ;;  %v2403_v37 = vrot.slane %v10983_v51, 2  ;;  %v556_v51 = vrot.slane %v11293_v22, 1 }
 0x146   : > { %8871 = vmatprep.mubr.msk.f32.mxu0 %vm562_vm2, %v2377_v29  ;;  %v540_v9 = vrot.slane %v13111_v62, 1  ;;  %v2395_v29 = vrot.slane %v10804_v43, 2  ;;  %v2394_v43 = vsel %vm1148_vm3, %v2391_v7, %v2393_v30  ;;  %v548_v7 = vrot.slane %v13121_v47, 1  ;;  %v10045_v47 = vld [vmem:[%s10246_s29 + $0xf8] sm:$0xff] }
 0x147   : > { %8625 = vmatmul.mubr.msk.f32.gmra.mrb[16].mxu1 %vm562_vm2, %v11206_v48 }
 0x148   : > { %8627 = vmatprep.mubr.msk.f32.mxu1 %vm562_vm2, %v11212_v60  ;;  %v11252_v17 = vsel %vm479_vm1, %v540_v9, %v541_v55  ;;  %v2397_v26 = vsel %vm1148_vm3, %v2395_v29, %v2396_v46  ;;  %v2406_v9 = vrot.slane %v10831_v40, 2  ;;  %v11286_v55 = vsel %vm479_vm1, %v546_v52, %v548_v7  ;;  %v10046_v7 = vld [vmem:[%s10246_s29 + $0x120] sm:$0xff] }
 0x149   : > { %8872 = vmatmul.mubr.msk.f32.gmra.mrb[16].mxu0 %vm562_vm2, %v2379_v56  ;;  %v13115_v56 = vld [vmem:[#allocation21_spill] sm:$0xff]  ;;  %v2404_v40 = vsel %vm1148_vm3, %v2401_v25, %v2403_v37  ;;  %v2408_v29 = vrot.slane %v10993_v41, 2  ;;  %v10044_v37 = vld [vmem:[%s10246_s29 + $0xf0] sm:$0xff] }
 0x14a   : > { %8874 = vmatprep.mubr.msk.f32.mxu0 %vm562_vm2, %v2382_v63  ;;  %v545_v23 = vrot.slane %v13115_v56, 1  ;;  %v2400_v63 = vrot.slane %v10814_v42, 2  ;;  %v2399_v42 = vsel %vm1148_vm3, %v2396_v46, %v2398_v1  ;;  %v553_v46 = vrot.slane %v13123_v5, 1  ;;  %v13124_v56 = vld [vmem:[#allocation77_spill] sm:$0xff]  ;;  %v13125_v1 = vld [vmem:[#allocation63_spill] sm:$0xff]  ;;  %v10055_v5 = vld [vmem:[%s10246_s29 + $0x1e8] sm:$0xff] }
 0x14b   : > { %8628 = vmatmul.mubr.msk.f32.gmra.mrb[18].mxu1 %vm562_vm2, %v11226_v33  ;;  %v2409_v41 = vsel %vm1148_vm3, %v2406_v9, %v2408_v29  ;;  %v558_v61 = vrot.slane %v13125_v1, 1  ;;  %v10054_v29 = vld [vmem:[%s10246_s29 + $0x1e0] sm:$0xff]  ;;  %v10063_v1 = vld [vmem:[%s10246_s29 + $0x2a8] sm:$0xff] }
 0x14c   : > { %8630 = vmatprep.mubr.msk.f32.mxu1 %vm562_vm2, %v11232_v53  ;;  %v11272_v36 = vsel %vm479_vm1, %v545_v23, %v546_v52  ;;  %v2402_v45 = vsel %vm1148_vm3, %v2400_v63, %v2401_v25  ;;  %v2411_v23 = vrot.slane %v13124_v56, 2  ;;  %v11312_v52 = vsel %vm479_vm1, %v551_v44, %v553_v46  ;;  %v11341_v25 = vld [vmem:[%s12915_s1 + $0x20] sm:$0xf]  ;;  %v10056_v46 = vld [vmem:[%s10246_s29 + $0x210] sm:$0xff] }
 0x14d   : > { %8875 = vmatmul.mubr.msk.f32.gmra.mrb[18].mxu0 %vm562_vm2, %v2384_v10  ;;  %v13119_v10 = vld [vmem:[#allocation23_spill] sm:$0xff]  ;;  %v11328_v63 = vsel %vm479_vm1, %v556_v51, %v558_v61  ;;  %v10058_v56 = vld [vmem:[%s10246_s29 + $0x240] sm:$0xff] }
 0x14e   : > { %8877 = vmatprep.mubr.msk.f32.mxu0 %vm562_vm2, %v2387_v16  ;;  %v550_v12 = vrot.slane %v13119_v10, 1  ;;  %v13122_v16 = vld [vmem:[#allocation76_spill] sm:$0xff]  ;;  %v10038_v10 = vld [vmem:[%s10246_s29 + $0x60] sm:$0xff] }
 0x14f   : > { %8631 = vmatmul.mubr.msk.f32.gmra.mrb[20].mxu1 %vm562_vm2, %v11246_v31  ;;  %v2405_v62 = vrot.slane %v13122_v16, 2  ;;  %v10047_v16 = vld [vmem:[%s10246_s29 + $0x128] sm:$0xff]  ;;  %v11404_v61 = vld [vmem:[%s10246_s29 + $0x300] sm:$0xff] }
 0x150   : > { %8633 = vmatprep.mubr.msk.f32.mxu1 %vm562_vm2, %v11252_v17  ;;  %v11298_v38 = vsel %vm479_vm1, %v550_v12, %v551_v44  ;;  %v10039_v12 = vld [vmem:[%s10246_s29 + $0x68] sm:$0xff]  ;;  %v10041_v44 = vld [vmem:[%s10246_s29 + $0x98] sm:$0xff] }
 0x151   : > { %8878 = vmatmul.mubr.msk.f32.gmra.mrb[20].mxu0 %vm562_vm2, %v2389_v21  ;;  %v11289_v21 = vld [vmem:[%s10246_s29 + $0x2d0] sm:$0xff]  ;;  %v2407_v24 = vsel %vm1148_vm3, %v2405_v62, %v2406_v9  ;;  %v10049_v9 = vld [vmem:[%s10246_s29 + $0x158] sm:$0xff] }
 0x152   : > { %8880 = vmatprep.mubr.msk.f32.mxu0 %vm562_vm2, %v2392_v50  ;;  %v555_v30 = vrot.slane %v11289_v21, 1  ;;  %v2410_v50 = vrot.slane %v10835_v0, 2  ;;  %v2413_v0 = vrot.slane %v11003_v57, 2  ;;  %v10048_v62 = vld [vmem:[%s10246_s29 + $0x150] sm:$0xff] }
 0x153   : > { %8634 = vmatmul.mubr.msk.f32.gmra.mrb[22].mxu1 %vm562_vm2, %v11266_v20 }
 0x154   : > { %8636 = vmatprep.mubr.msk.f32.mxu1 %vm562_vm2, %v11272_v36  ;;  %v2412_v58 = vsel %vm1148_vm3, %v2410_v50, %v2411_v23  ;;  %v2414_v57 = vsel %vm1148_vm3, %v2411_v23, %v2413_v0  ;;  %v10057_v50 = vld [vmem:[%s10246_s29 + $0x218] sm:$0xff]  ;;  %v10059_v23 = vld [vmem:[%s10246_s29 + $0x248] sm:$0xff]  ;;  %v10062_v0 = vld [vmem:[%s10246_s29 + $0x2a0] sm:$0xff] }
 0x155   : > { %8881 = vmatmul.mubr.msk.f32.gmra.mrb[22].mxu0 %vm562_vm2, %v2394_v43  ;;  %v11316_v43 = vsel %vm479_vm1, %v555_v30, %v556_v51  ;;  %v10051_v30 = vld [vmem:[%s10246_s29 + $0x188] sm:$0xff]  ;;  %v10052_v51 = vld [vmem:[%s10246_s29 + $0x1b0] sm:$0xff] }
 0x156   : > { %8883 = vmatprep.mubr.msk.f32.mxu0 %vm562_vm2, %v2397_v26  ;;  %v10037_v26 = vld [vmem:[%s10246_s29 + $0x38] sm:$0xff] }
 0x157   : > { %8637 = vmatmul.mubr.msk.f32.gmra.mrb[24].mxu1 %vm562_vm2, %v11286_v55 }
 0x158   : > { %8639 = vmatprep.mubr.msk.f32.mxu1 %vm562_vm2, %v11298_v38 }
 0x159   : > { %8884 = vmatmul.mubr.msk.f32.gmra.mrb[24].mxu0 %vm562_vm2, %v2399_v42  ;;  %v10043_v42 = vld [vmem:[%s10246_s29 + $0xc8] sm:$0xff] }
 0x15a   : > { %8886 = vmatprep.mubr.msk.f32.mxu0 %vm562_vm2, %v2402_v45  ;;  %v10050_v45 = vld [vmem:[%s10246_s29 + $0x180] sm:$0xff] }
 0x15b   : > { %8640 = vmatmul.mubr.msk.f32.gmra.mrb[26].mxu1 %vm562_vm2, %v11312_v52 }
 0x15c   : > { %8642 = vmatprep.mubr.msk.f32.mxu1 %vm562_vm2, %v11316_v43 }
 0x15d   : > { %8887 = vmatmul.mubr.msk.f32.gmra.mrb[26].mxu0 %vm562_vm2, %v2404_v40  ;;  %v10053_v40 = vld [vmem:[%s10246_s29 + $0x1b8] sm:$0xff] }
 0x15e   : > { %8889 = vmatprep.mubr.msk.f32.mxu0 %vm562_vm2, %v2407_v24  ;;  %v10060_v24 = vld [vmem:[%s10246_s29 + $0x270] sm:$0xff] }
 0x15f   : > { %8643 = vmatmul.mubr.msk.f32.gmra.mrb[28].mxu1 %vm562_vm2, %v11328_v63 }
 0x161   : > { %8890 = vmatmul.mubr.msk.f32.gmra.mrb[28].mxu0 %vm562_vm2, %v2409_v41  ;;  %v10061_v41 = vld [vmem:[%s10246_s29 + $0x278] sm:$0xff] }
 0x162   : > { %8892 = vmatprep.mubr.msk.f32.mxu0 %vm562_vm2, %v2412_v58  ;;  %v11411_v58 = vld [vmem:[%s10246_s29 + $0x308] sm:$0xff] }
 0x165   : > { %8893 = vmatmul.mubr.msk.f32.gmra.mrb[30].mxu0 %vm562_vm2, %v2414_v57  ;;  %v7762_v57 = vld [vmem:[%s12917_s3 + $0x8] sm:$0xff] }
 0x166   : > { %8897 = vmatprep.mubr.msk.f32.mxu0 %vm562_vm2, %v10036_v4  ;;  %9045 = vmatprep.subr.mxu1 %v7762_v57  ;;  %v13152_v4 = vld [vmem:[#allocation62_spill] sm:$0xff] }
 0x167   : > { %9046 = vmatpush3.msra.mxu1 %v7762_v57 }
 0x169   : > { %8898 = vmatmul.mubr.msk.f32.vlgmr.msra.gmra.mrb[0].mxu0 %vm562_vm2, %v10037_v26  ;;  %v3282_v26 = vrot.slane %v11411_v58, 2 }
 0x16a   : > { %8946 = vmatpush3.msk.msra.mxu0 %vm627_vm0, %v11044_v18  ;;  %8900 = vmatprep.mubr.msk.f32.mxu0 %vm562_vm2, %v10038_v10  ;;  %v10042_v18 = vld [vmem:[%s10246_s29 + $0xc0] sm:$0xff]  ;;  %v13153_v10 = vld [vmem:[#allocation64_spill] sm:$0xff] }
 0x16b   : > { %8995 = vmatprep.subr.msk.mxu0 %vm627_vm0, %v11341_v25 }
 0x16d   : > { %8901 = vmatmul.mubr.msk.f32.gmra.mrb[2].mxu0 %vm562_vm2, %v10039_v12  ;;  %v13154_v12 = vld [vmem:[#allocation65_spill] sm:$0xff] }
 0x16e   : > { %8903 = vmatprep.mubr.msk.f32.mxu0 %vm562_vm2, %v10040_v49 }
 0x171   : > { %8904 = vmatmul.mubr.msk.f32.gmra.mrb[4].mxu0 %vm562_vm2, %v10041_v44 }
 0x172   : > { %8906 = vmatprep.mubr.msk.f32.mxu0 %vm562_vm2, %v10042_v18  ;;  %v13155_v18 = vld [vmem:[#allocation66_spill] sm:$0xff] }
 0x175   : > { %8907 = vmatmul.mubr.msk.f32.gmra.mrb[6].mxu0 %vm562_vm2, %v10043_v42 }
 0x176   : > { %8909 = vmatprep.mubr.msk.f32.mxu0 %vm562_vm2, %v10044_v37 }
 0x179   : > { %8910 = vmatmul.mubr.msk.f32.gmra.mrb[8].mxu0 %vm562_vm2, %v10045_v47  ;;  %v12995_v47 = vmov 0.0  }
 0x17a   : > { %8912 = vmatprep.mubr.msk.f32.mxu0 %vm562_vm2, %v10046_v7  ;;  %3629 = vst.msk [vmem:[#allocation2 + $0x20] sm:$0xff] %vm3623_vm4, %v12995_v47  ;;  %3624 = vst.msk [vmem:[#allocation2] sm:$0xff] %vm3623_vm4, %v12995_v47 }
 0x17b   : > { %3630 = vst.msk [vmem:[#allocation2 + $0x28] sm:$0x3] %vm3626_vm5, %v12995_v47  ;;  %3627 = vst.msk [vmem:[#allocation2 + $0x10] sm:$0x3] %vm3626_vm5, %v12995_v47 }
 0x17c   : > { %3625 = vst.msk [vmem:[#allocation2 + $0x8] sm:$0xff] %vm3623_vm4, %v12995_v47  ;;  %3628 = vst.msk [vmem:[#allocation2 + $0x18] sm:$0xff] %vm3623_vm4, %v12995_v47 }
 0x17d   : > { %8913 = vmatmul.mubr.msk.f32.gmra.mrb[10].mxu0 %vm562_vm2, %v10047_v16  ;;  %3631 = vst.msk [vmem:[#allocation2 + $0x30] sm:$0xff] %vm3623_vm4, %v12995_v47  ;;  %3632 = vst.msk [vmem:[#allocation2 + $0x38] sm:$0xff] %vm3623_vm4, %v12995_v47 }
 0x17e   : > { %8915 = vmatprep.mubr.msk.f32.mxu0 %vm562_vm2, %v10048_v62  ;;  %3633 = vst.msk [vmem:[#allocation2 + $0x40] sm:$0x3] %vm3626_vm5, %v12995_v47  ;;  %3636 = vst.msk [vmem:[#allocation2 + $0x58] sm:$0x3] %vm3626_vm5, %v12995_v47 }
 0x17f   : > { %3634 = vst.msk [vmem:[#allocation2 + $0x48] sm:$0xff] %vm3623_vm4, %v12995_v47  ;;  %3635 = vst.msk [vmem:[#allocation2 + $0x50] sm:$0xff] %vm3623_vm4, %v12995_v47 }
 0x180   : > { %3637 = vst.msk [vmem:[#allocation2 + $0x60] sm:$0xff] %vm3623_vm4, %v12995_v47  ;;  %3638 = vst.msk [vmem:[#allocation2 + $0x68] sm:$0xff] %vm3623_vm4, %v12995_v47 }
 0x181   : > { %8916 = vmatmul.mubr.msk.f32.gmra.mrb[12].mxu0 %vm562_vm2, %v10049_v9  ;;  %3639 = vst.msk [vmem:[#allocation2 + $0x70] sm:$0x3] %vm3626_vm5, %v12995_v47  ;;  %3642 = vst.msk [vmem:[#allocation2 + $0x88] sm:$0x3] %vm3626_vm5, %v12995_v47 }
 0x182   : > { %8918 = vmatprep.mubr.msk.f32.mxu0 %vm562_vm2, %v10050_v45  ;;  %3640 = vst.msk [vmem:[#allocation2 + $0x78] sm:$0xff] %vm3623_vm4, %v12995_v47  ;;  %3641 = vst.msk [vmem:[#allocation2 + $0x80] sm:$0xff] %vm3623_vm4, %v12995_v47 }
 0x183   : > { %3643 = vst.msk [vmem:[#allocation2 + $0x90] sm:$0xff] %vm3623_vm4, %v12995_v47  ;;  %3644 = vst.msk [vmem:[#allocation2 + $0x98] sm:$0xff] %vm3623_vm4, %v12995_v47 }
 0x184   : > { %3645 = vst.msk [vmem:[#allocation2 + $0xa0] sm:$0x3] %vm3626_vm5, %v12995_v47  ;;  %3648 = vst.msk [vmem:[#allocation2 + $0xb8] sm:$0x3] %vm3626_vm5, %v12995_v47 }
 0x185   : > { %8919 = vmatmul.mubr.msk.f32.gmra.mrb[14].mxu0 %vm562_vm2, %v10051_v30  ;;  %3646 = vst.msk [vmem:[#allocation2 + $0xa8] sm:$0xff] %vm3623_vm4, %v12995_v47  ;;  %3647 = vst.msk [vmem:[#allocation2 + $0xb0] sm:$0xff] %vm3623_vm4, %v12995_v47 }
 0x186   : > { %8921 = vmatprep.mubr.msk.f32.mxu0 %vm562_vm2, %v10052_v51  ;;  %3649 = vst.msk [vmem:[#allocation2 + $0xc0] sm:$0xff] %vm3623_vm4, %v12995_v47  ;;  %3650 = vst.msk [vmem:[#allocation2 + $0xc8] sm:$0xff] %vm3623_vm4, %v12995_v47  ;;  %v11663_v51 = vld [vmem:[#allocation2] sm:$0xff] }
 0x187   : > { %3651 = vst.msk [vmem:[#allocation2 + $0xd0] sm:$0x3] %vm3626_vm5, %v12995_v47  ;;  %3654 = vst.msk [vmem:[#allocation2 + $0xe8] sm:$0x3] %vm3626_vm5, %v12995_v47 }
 0x188   : > { %3652 = vst.msk [vmem:[#allocation2 + $0xd8] sm:$0xff] %vm3623_vm4, %v12995_v47  ;;  %3653 = vst.msk [vmem:[#allocation2 + $0xe0] sm:$0xff] %vm3623_vm4, %v12995_v47 }
 0x189   : > { %8922 = vmatmul.mubr.msk.f32.gmra.mrb[16].mxu0 %vm562_vm2, %v10053_v40  ;;  %3655 = vst.msk [vmem:[#allocation2 + $0xf0] sm:$0xff] %vm3623_vm4, %v12995_v47  ;;  %3656 = vst.msk [vmem:[#allocation2 + $0xf8] sm:$0xff] %vm3623_vm4, %v12995_v47  ;;  %v11665_v40 = vld [vmem:[#allocation2 + $0x8] sm:$0xff] }
 0x18a   : > { %8924 = vmatprep.mubr.msk.f32.mxu0 %vm562_vm2, %v10054_v29  ;;  %3657 = vst.msk [vmem:[#allocation2 + $0x100] sm:$0x3] %vm3626_vm5, %v12995_v47  ;;  %3660 = vst.msk [vmem:[#allocation2 + $0x118] sm:$0x3] %vm3626_vm5, %v12995_v47 }
 0x18b   : > { %3658 = vst.msk [vmem:[#allocation2 + $0x108] sm:$0xff] %vm3623_vm4, %v12995_v47  ;;  %3659 = vst.msk [vmem:[#allocation2 + $0x110] sm:$0xff] %vm3623_vm4, %v12995_v47 }
 0x18c   : > { %3661 = vst.msk [vmem:[#allocation2 + $0x120] sm:$0xff] %vm3623_vm4, %v12995_v47  ;;  %3662 = vst.msk [vmem:[#allocation2 + $0x128] sm:$0xff] %vm3623_vm4, %v12995_v47 }
 0x18d   : > { %8925 = vmatmul.mubr.msk.f32.gmra.mrb[18].mxu0 %vm562_vm2, %v10055_v5  ;;  %3663 = vst.msk [vmem:[#allocation2 + $0x130] sm:$0x3] %vm3626_vm5, %v12995_v47  ;;  %3666 = vst.msk [vmem:[#allocation2 + $0x148] sm:$0x3] %vm3626_vm5, %v12995_v47  ;;  %v3788_v5 = vrot.slane %v11663_v51, 1 }
 0x18e   : > { %8927 = vmatprep.mubr.msk.f32.mxu0 %vm562_vm2, %v10056_v46  ;;  %3664 = vst.msk [vmem:[#allocation2 + $0x138] sm:$0xff] %vm3623_vm4, %v12995_v47  ;;  %3665 = vst.msk [vmem:[#allocation2 + $0x140] sm:$0xff] %vm3623_vm4, %v12995_v47  ;;  %v3789_v46 = vrot.slane %v11665_v40, 1 }
 0x18f   : > { %3667 = vst.msk [vmem:[#allocation2 + $0x150] sm:$0xff] %vm3623_vm4, %v12995_v47  ;;  %3668 = vst.msk [vmem:[#allocation2 + $0x158] sm:$0xff] %vm3623_vm4, %v12995_v47 }
 0x190   : > { %3669 = vst.msk [vmem:[#allocation2 + $0x160] sm:$0x3] %vm3626_vm5, %v12995_v47  ;;  %3672 = vst.msk [vmem:[#allocation2 + $0x178] sm:$0x3] %vm3626_vm5, %v12995_v47 }
 0x191   : > { %8928 = vmatmul.mubr.msk.f32.gmra.mrb[20].mxu0 %vm562_vm2, %v10057_v50  ;;  %3670 = vst.msk [vmem:[#allocation2 + $0x168] sm:$0xff] %vm3623_vm4, %v12995_v47  ;;  %3671 = vst.msk [vmem:[#allocation2 + $0x170] sm:$0xff] %vm3623_vm4, %v12995_v47  ;;  %v11671_v50 = vld [vmem:[#allocation2 + $0x10] sm:$0x3] }
 0x192   : > { %8930 = vmatprep.mubr.msk.f32.mxu0 %vm562_vm2, %v10058_v56  ;;  %3673 = vst.msk [vmem:[#allocation2 + $0x180] sm:$0xff] %vm3623_vm4, %v12995_v47  ;;  %3674 = vst.msk [vmem:[#allocation2 + $0x188] sm:$0xff] %vm3623_vm4, %v12995_v47  ;;  %v3791_v56 = vrot.slane %v11671_v50, 1 }
 0x193   : > { %3675 = vst.msk [vmem:[#allocation2 + $0x190] sm:$0x3] %vm3626_vm5, %v12995_v47 }
 0x195   : > { %8931 = vmatmul.mubr.msk.f32.gmra.mrb[22].mxu0 %vm562_vm2, %v10059_v23  ;;  %v3790_v23 = vsel %vm479_vm1, %v3788_v5, %v3789_v46 }
 0x196   : > { %8933 = vmatprep.mubr.msk.f32.mxu0 %vm562_vm2, %v10060_v24  ;;  %9047 = vmatprep.mubr.msk.f32.mxu1 %vm3623_vm4, %v3790_v23 }
 0x199   : > { %8934 = vmatmul.mubr.msk.f32.gmra.mrb[24].mxu0 %vm562_vm2, %v10061_v41  ;;  %v3792_v41 = vsel %vm479_vm1, %v3789_v46, %v3791_v56 }
 0x19a   : > { %8936 = vmatprep.mubr.msk.f32.mxu0 %vm562_vm2, %v10062_v0  ;;  %9048 = vmatmul.mubr.msk.f32.vlgmr.msra.gmra.mrb[30].mxu1 %vm3623_vm4, %v3792_v41 }
 0x19d   : > { %8937 = vmatmul.mubr.msk.f32.gmra.mrb[26].mxu0 %vm562_vm2, %v10063_v1 }
 0x19e   : > { %8939 = vmatprep.mubr.msk.f32.mxu0 %vm562_vm2, %v11289_v21  ;;  %v13146_v21 = vld [vmem:[#allocation53_spill] sm:$0xff] }
 0x1a1   : > { %8940 = vmatmul.mubr.msk.f32.gmra.mrb[28].mxu0 %vm562_vm2, %v11293_v22  ;;  %v13147_v22 = vld [vmem:[#allocation55_spill] sm:$0xff] }
 0x1a2   : > { %8942 = vmatprep.mubr.msk.f32.mxu0 %vm562_vm2, %v11404_v61 }
 0x1a5   : > { %8943 = vmatmul.mubr.msk.f32.gmra.mrb[30].mxu0 %vm562_vm2, %v11411_v58 }
 0x1a6   : > { %8947 = vmatprep.mubr.msk.f32.mxu0 %vm562_vm2, %v11025_v13  ;;  %v3010_v13 = vrot.slane %v11404_v61, 1 }
 0x1a9   : > { %8948 = vmatmul.mubr.msk.f32.vlgmr.msra.gmra.mrb[0].mxu0 %vm562_vm2, %v11032_v14  ;;  %v3011_v14 = vrot.slane %v11411_v58, 1 }
 0x1aa   : > { %8996 = vmatpush3.msk.msra.mxu0 %vm627_vm0, %v11341_v25  ;;  %8950 = vmatprep.mubr.msk.f32.mxu0 %vm562_vm2, %v11055_v35  ;;  %v429_v35 = vld [vmem:[%s10246_s29 + $0x310] sm:$0x3]  ;;  %v3281_v25 = vrot.slane %v11404_v61, 2  ;;  %s8030_s29 = sshll.u32 %s10203_s13, 8  ;;  %s10064_s13 = scalar_lea.vmem %s12866_s22, 256 }
 0x1ab   : > { %v3284_v49 = vrot.slane %v429_v35, 2  ;;  %s12871_s25 = scalar_lea.hbm %s12923_s9, %s8030_s29  ;;  %p10065_p11 = scmp.ne.s32.totalorder %s12866_s22, %s10064_s13 }
 0x1ac   : > { %v3283_v44 = vsel %vm1148_vm3, %v3281_v25, %v3282_v26  ;;  %p10072_p1 = scmp.lt.s32.totalorder %s10070_s16, %s10064_s13 }
 0x1ad   : > { %8951 = vmatmul.mubr.msk.f32.gmra.mrb[2].mxu0 %vm562_vm2, %v11066_v39  ;;  %v3013_v39 = vrot.slane %v429_v35, 1  ;;  %v3285_v42 = vsel %vm1148_vm3, %v3282_v26, %v3284_v49  ;;  %p10066_p12 = pnand %p10065_p11, %p10220_p5 }
 0x1ae   : > { %8953 = vmatprep.mubr.msk.f32.mxu0 %vm562_vm2, %v11072_v54  ;;  %v3012_v54 = vsel %vm479_vm1, %v3010_v13, %v3011_v14  ;;  %p10073_p2 = por %p10072_p1, %p10071_p0 }
 0x1af   : > { %p10067_p13 = pneg %p10066_p12 }
 0x1b1   : > { %8954 = vmatmul.mubr.msk.f32.gmra.mrb[4].mxu0 %vm562_vm2, %v11086_v27  ;;  %v3014_v27 = vsel %vm479_vm1, %v3011_v14, %v3013_v39  ;;  %p10074_p3 = pnand %p10073_p2, %p10067_p13 }
 0x1b2   : > { %8956 = vmatprep.mubr.msk.f32.mxu0 %vm562_vm2, %v11092_v28  ;;  %v13126_v28 = vld [vmem:[#allocation25_spill] sm:$0xff] }
 0x1b5   : > { %8957 = vmatmul.mubr.msk.f32.gmra.mrb[6].mxu0 %vm562_vm2, %v11106_v11  ;;  %v13127_v11 = vld [vmem:[#allocation26_spill] sm:$0xff] }
 0x1b6   : > { %8959 = vmatprep.mubr.msk.f32.mxu0 %vm562_vm2, %v11112_v6  ;;  %v13128_v6 = vld [vmem:[#allocation27_spill] sm:$0xff] }
 0x1b9   : > { %8960 = vmatmul.mubr.msk.f32.gmra.mrb[8].mxu0 %vm562_vm2, %v11126_v19  ;;  %v13129_v19 = vld [vmem:[#allocation28_spill] sm:$0xff] }
 0x1ba   : > { %8962 = vmatprep.mubr.msk.f32.mxu0 %vm562_vm2, %v11132_v3  ;;  %v13130_v3 = vld [vmem:[#allocation29_spill] sm:$0xff] }
 0x1bd   : > { %8963 = vmatmul.mubr.msk.f32.gmra.mrb[10].mxu0 %vm562_vm2, %v11146_v34  ;;  %v13131_v34 = vld [vmem:[#allocation31_spill] sm:$0xff] }
 0x1be   : > { %8965 = vmatprep.mubr.msk.f32.mxu0 %vm562_vm2, %v11152_v59  ;;  %v13132_v59 = vld [vmem:[#allocation32_spill] sm:$0xff] }
 0x1c1   : > { %8966 = vmatmul.mubr.msk.f32.gmra.mrb[12].mxu0 %vm562_vm2, %v11166_v15  ;;  %v13133_v15 = vld [vmem:[#allocation34_spill] sm:$0xff] }
 0x1c2   : > { %8968 = vmatprep.mubr.msk.f32.mxu0 %vm562_vm2, %v11172_v8  ;;  %v13134_v8 = vld [vmem:[#allocation35_spill] sm:$0xff] }
 0x1c5   : > { %8969 = vmatmul.mubr.msk.f32.gmra.mrb[14].mxu0 %vm562_vm2, %v11186_v32  ;;  %v13135_v32 = vld [vmem:[#allocation37_spill] sm:$0xff] }
 0x1c6   : > { %8971 = vmatprep.mubr.msk.f32.mxu0 %vm562_vm2, %v11192_v2  ;;  %v13136_v2 = vld [vmem:[#allocation38_spill] sm:$0xff] }
 0x1c9   : > { %8972 = vmatmul.mubr.msk.f32.gmra.mrb[16].mxu0 %vm562_vm2, %v11206_v48  ;;  %v13137_v48 = vld [vmem:[#allocation40_spill] sm:$0xff] }
 0x1ca   : > { %8974 = vmatprep.mubr.msk.f32.mxu0 %vm562_vm2, %v11212_v60  ;;  %v13138_v60 = vld [vmem:[#allocation41_spill] sm:$0xff] }
 0x1cd   : > { %8975 = vmatmul.mubr.msk.f32.gmra.mrb[18].mxu0 %vm562_vm2, %v11226_v33  ;;  %v13139_v33 = vld [vmem:[#allocation43_spill] sm:$0xff] }
 0x1ce   : > { %8977 = vmatprep.mubr.msk.f32.mxu0 %vm562_vm2, %v11232_v53  ;;  %v13140_v53 = vld [vmem:[#allocation44_spill] sm:$0xff] }
 0x1d1   : > { %8978 = vmatmul.mubr.msk.f32.gmra.mrb[20].mxu0 %vm562_vm2, %v11246_v31  ;;  %v13141_v31 = vld [vmem:[#allocation46_spill] sm:$0xff] }
 0x1d2   : > { %8980 = vmatprep.mubr.msk.f32.mxu0 %vm562_vm2, %v11252_v17  ;;  %v13142_v17 = vld [vmem:[#allocation47_spill] sm:$0xff] }
 0x1d5   : > { %8981 = vmatmul.mubr.msk.f32.gmra.mrb[22].mxu0 %vm562_vm2, %v11266_v20  ;;  %v13143_v20 = vld [vmem:[#allocation49_spill] sm:$0xff] }
 0x1d6   : > { %8983 = vmatprep.mubr.msk.f32.mxu0 %vm562_vm2, %v11272_v36  ;;  %v13144_v36 = vld [vmem:[#allocation50_spill] sm:$0xff] }
 0x1d9   : > { %8984 = vmatmul.mubr.msk.f32.gmra.mrb[24].mxu0 %vm562_vm2, %v11286_v55  ;;  %v13145_v55 = vld [vmem:[#allocation52_spill] sm:$0xff] }
 0x1da   : > { %8986 = vmatprep.mubr.msk.f32.mxu0 %vm562_vm2, %v11298_v38  ;;  %v13148_v38 = vld [vmem:[#allocation56_spill] sm:$0xff] }
 0x1dd   : > { %8987 = vmatmul.mubr.msk.f32.gmra.mrb[26].mxu0 %vm562_vm2, %v11312_v52  ;;  %v13149_v52 = vld [vmem:[#allocation58_spill] sm:$0xff] }
 0x1de   : > { %8989 = vmatprep.mubr.msk.f32.mxu0 %vm562_vm2, %v11316_v43  ;;  %v13150_v43 = vld [vmem:[#allocation59_spill] sm:$0xff] }
 0x1e1   : > { %8990 = vmatmul.mubr.msk.f32.gmra.mrb[28].mxu0 %vm562_vm2, %v11328_v63  ;;  %v13151_v63 = vld [vmem:[#allocation61_spill] sm:$0xff] }
 0x1e2   : > { %8992 = vmatprep.mubr.msk.f32.mxu0 %vm562_vm2, %v3012_v54 }
 0x1e5   : > { %8993 = vmatmul.mubr.msk.f32.gmra.mrb[30].mxu0 %vm562_vm2, %v3014_v27 }
 0x1e6   : > { %8997 = vmatprep.mubr.msk.f32.mxu0 %vm562_vm2, %v13126_v28 }
 0x1e9   : > { %8998 = vmatmul.mubr.msk.f32.vlgmr.msra.gmra.mrb[0].mxu0 %vm562_vm2, %v13127_v11 }
 0x1ea   : > { %9000 = vmatprep.mubr.msk.f32.mxu0 %vm562_vm2, %v13128_v6 }
 0x1ed   : > { %9001 = vmatmul.mubr.msk.f32.gmra.mrb[2].mxu0 %vm562_vm2, %v13129_v19  ;;  %v3763_v19 = vld [vmem:[%s12917_s3] sm:$0xff] }
 0x1ee   : > { %9003 = vmatprep.mubr.msk.f32.mxu0 %vm562_vm2, %v13130_v3  ;;  %9071 = vmatprep.subr.mxu1 %v3763_v19 }
 0x1ef   : > { %9072 = vmatpush3.msra.mxu1 %v3763_v19 }
 0x1f1   : > { %9004 = vmatmul.mubr.msk.f32.gmra.mrb[4].mxu0 %vm562_vm2, %v13131_v34 }
 0x1f2   : > { %9006 = vmatprep.mubr.msk.f32.mxu0 %vm562_vm2, %v13132_v59 }
 0x1f3   : > { %v11553_v37 = vpop.f32.mrb[0].mxu1 }
 0x1f4   : > { %v707_v7 = vpop.f32.mrb[1].mxu1 }
 0x1f5   : > { %9007 = vmatmul.mubr.msk.f32.gmra.mrb[6].mxu0 %vm562_vm2, %v13133_v15 }
 0x1f6   : > { %9009 = vmatprep.mubr.msk.f32.mxu0 %vm562_vm2, %v13134_v8 }
 0x1f9   : > { %9010 = vmatmul.mubr.msk.f32.gmra.mrb[8].mxu0 %vm562_vm2, %v13135_v32 }
 0x1fa   : > { %9012 = vmatprep.mubr.msk.f32.mxu0 %vm562_vm2, %v13136_v2 }
 0x1fd   : > { %9013 = vmatmul.mubr.msk.f32.gmra.mrb[10].mxu0 %vm562_vm2, %v13137_v48  ;;  %v11728_v48 = vld [vmem:[%s12917_s3 + $0x10] sm:$0xff] }
 0x1fe   : > { %9015 = vmatprep.mubr.msk.f32.mxu0 %vm562_vm2, %v13138_v60  ;;  %v8605_v16 = vpop.f32.mrb[2].mxu1  ;;  %9097 = vmatprep.subr.mxu1 %v11728_v48  ;;  %v11734_v60 = vld [vmem:[%s12916_s2] ss:$0 sm:$0xff] }
 0x1ff   : > { %v717_v62 = vpop.f32.mrb[3].mxu1 }
 0x201   : > { %9016 = vmatmul.mubr.msk.f32.gmra.mrb[12].mxu0 %vm562_vm2, %v13139_v33 }
 0x202   : > { %9018 = vmatprep.mubr.msk.f32.mxu0 %vm562_vm2, %v13140_v53  ;;  %v11657_v9 = vpop.f32.mrb[4].mxu1 }
 0x203   : > { %v11659_v45 = vpop.f32.mrb[5].mxu1 }
 0x205   : > { %9019 = vmatmul.mubr.msk.f32.gmra.mrb[14].mxu0 %vm562_vm2, %v13141_v31 }
 0x206   : > { %9021 = vmatprep.mubr.msk.f32.mxu0 %vm562_vm2, %v13142_v17  ;;  %v11661_v30 = vpop.f32.mrb[6].mxu1 }
 0x207   : > { %v11667_v29 = vpop.f32.mrb[7].mxu1 }
 0x209   : > { %9022 = vmatmul.mubr.msk.f32.gmra.mrb[16].mxu0 %vm562_vm2, %v13143_v20 }
 0x20a   : > { %9024 = vmatprep.mubr.msk.f32.mxu0 %vm562_vm2, %v13144_v36  ;;  %v11675_v24 = vpop.f32.mrb[8].mxu1 }
 0x20b   : > { %v11679_v0 = vpop.f32.mrb[9].mxu1 }
 0x20d   : > { %9025 = vmatmul.mubr.msk.f32.gmra.mrb[18].mxu0 %vm562_vm2, %v13145_v55 }
 0x20e   : > { %9027 = vmatprep.mubr.msk.f32.mxu0 %vm562_vm2, %v13146_v21  ;;  %v11682_v1 = vpop.f32.mrb[10].mxu1 }
 0x20f   : > { %v11684_v61 = vpop.f32.mrb[11].mxu1 }
 0x211   : > { %9028 = vmatmul.mubr.msk.f32.gmra.mrb[20].mxu0 %vm562_vm2, %v13147_v22 }
 0x212   : > { %9030 = vmatprep.mubr.msk.f32.mxu0 %vm562_vm2, %v13148_v38  ;;  %v11686_v58 = vpop.f32.mrb[12].mxu1 }
 0x213   : > { %v11688_v57 = vpop.f32.mrb[13].mxu1 }
 0x215   : > { %9031 = vmatmul.mubr.msk.f32.gmra.mrb[22].mxu0 %vm562_vm2, %v13149_v52 }
 0x216   : > { %9033 = vmatprep.mubr.msk.f32.mxu0 %vm562_vm2, %v13150_v43  ;;  %v11690_v13 = vpop.f32.mrb[14].mxu1 }
 0x217   : > { %v11692_v14 = vpop.f32.mrb[15].mxu1 }
 0x219   : > { %9034 = vmatmul.mubr.msk.f32.gmra.mrb[24].mxu0 %vm562_vm2, %v13151_v63 }
 0x21a   : > { %9036 = vmatprep.mubr.msk.f32.mxu0 %vm562_vm2, %v13152_v4  ;;  %v11694_v35 = vpop.f32.mrb[16].mxu1 }
 0x21b   : > { %v11696_v39 = vpop.f32.mrb[17].mxu1 }
 0x21d   : > { %9037 = vmatmul.mubr.msk.f32.gmra.mrb[26].mxu0 %vm562_vm2, %v13153_v10 }
 0x21e   : > { %9039 = vmatprep.mubr.msk.f32.mxu0 %vm562_vm2, %v13154_v12  ;;  %v11698_v54 = vpop.f32.mrb[18].mxu1 }
 0x21f   : > { %v11700_v27 = vpop.f32.mrb[19].mxu1 }
 0x221   : > { %9040 = vmatmul.mubr.msk.f32.gmra.mrb[28].mxu0 %vm562_vm2, %v13155_v18 }
 0x222   : > { %9042 = vmatprep.mubr.msk.f32.mxu0 %vm562_vm2, %v3283_v44  ;;  %v11702_v28 = vpop.f32.mrb[20].mxu1 }
 0x223   : > { %v11704_v11 = vpop.f32.mrb[21].mxu1 }
 0x225   : > { %9043 = vmatmul.mubr.msk.f32.gmra.mrb[30].mxu0 %vm562_vm2, %v3285_v42 }
 0x226   : > { %v11706_v6 = vpop.f32.mrb[22].mxu1 }
 0x227   : > { %v11711_v3 = vpop.f32.mrb[23].mxu1 }
 0x22a   : > { %v11713_v34 = vpop.f32.mrb[24].mxu1 }
 0x22b   : > { %v11715_v59 = vpop.f32.mrb[25].mxu1 }
 0x22e   : > { %v11717_v15 = vpop.f32.mrb[26].mxu1 }
 0x22f   : > { %v11719_v8 = vpop.f32.mrb[27].mxu1 }
 0x232   : > { %v11721_v32 = vpop.f32.mrb[28].mxu1 }
 0x233   : > { %v11723_v2 = vpop.f32.mrb[29].mxu1 }
 0x2bc   : > { %v8999_v33 = vpop.f32.mrb[0].mxu0 }
 0x2bd   : > { %v3560_v53 = vadd.f32 %v8999_v33, %v11734_v60  ;;  %v3361_v31 = vpop.f32.mrb[1].mxu0 }
 0x2be   : > { %v3559_v17 = vadd.f32 %v11734_v60, %v3361_v31 }
 0x2bf   : > { %v3592_v20 = vmax.f32 %v3560_v53, 0.0 }
 0x2c0   : > { %v3591_v36 = vmax.f32 %v3559_v17, 0.0  ;;  %v9002_v55 = vpop.f32.mrb[2].mxu0 }
 0x2c1   : > { %3681 = vst.msk [vmem:[#allocation2 + $0x21] sm:$0xff] %vm3623_vm4, %v3592_v20  ;;  %v9537_v21 = vadd.f32 %v9002_v55, %v11553_v37  ;;  %v3371_v22 = vpop.f32.mrb[3].mxu0 }
 0x2c2   : > { %3680 = vst.msk [vmem:[#allocation2 + $0x19] sm:$0xff] %vm3623_vm4, %v3591_v36  ;;  %v9538_v38 = vadd.f32 %v3371_v22, %v707_v7 }
 0x2c3   : > { %v3562_v52 = vadd.f32 %v9537_v21, %v11734_v60 }
 0x2c4   : > { %v3561_v43 = vadd.f32 %v9538_v38, %v11734_v60  ;;  %v9005_v63 = vpop.f32.mrb[4].mxu0 }
 0x2c5   : > { %v3594_v4 = vmax.f32 %v3562_v52, 0.0  ;;  %v9539_v25 = vadd.f32 %v9005_v63, %v8605_v16  ;;  %v3381_v26 = vpop.f32.mrb[5].mxu0 }
 0x2c6   : > { %v3593_v10 = vmax.f32 %v3561_v43, 0.0  ;;  %v9540_v12 = vadd.f32 %v3381_v26, %v717_v62 }
 0x2c7   : > { %3683 = vst.msk [vmem:[#allocation2 + $0x39] sm:$0xff] %vm3623_vm4, %v3594_v4  ;;  %v3564_v49 = vadd.f32 %v9539_v25, %v11734_v60 }
 0x2c8   : > { %3682 = vst.msk [vmem:[#allocation2 + $0x31] sm:$0xff] %vm3623_vm4, %v3593_v10  ;;  %v3563_v44 = vadd.f32 %v9540_v12, %v11734_v60  ;;  %v9008_v18 = vpop.f32.mrb[6].mxu0 }
 0x2c9   : > { %v3596_v42 = vmax.f32 %v3564_v49, 0.0  ;;  %v9541_v37 = vadd.f32 %v9008_v18, %v11657_v9  ;;  %v3391_v7 = vpop.f32.mrb[7].mxu0 }
 0x2ca   : > { %v3595_v5 = vmax.f32 %v3563_v44, 0.0  ;;  %v9542_v46 = vadd.f32 %v3391_v7, %v11659_v45 }
 0x2cb   : > { %3685 = vst.msk [vmem:[#allocation2 + $0x51] sm:$0xff] %vm3623_vm4, %v3596_v42  ;;  %v3566_v16 = vadd.f32 %v9541_v37, %v11734_v60 }
 0x2cc   : > { %3684 = vst.msk [vmem:[#allocation2 + $0x49] sm:$0xff] %vm3623_vm4, %v3595_v5  ;;  %v3565_v62 = vadd.f32 %v9542_v46, %v11734_v60  ;;  %v9011_v56 = vpop.f32.mrb[8].mxu0 }
 0x2cd   : > { %v3598_v23 = vmax.f32 %v3566_v16, 0.0  ;;  %v9543_v41 = vadd.f32 %v9011_v56, %v11661_v30  ;;  %v3401_v19 = vpop.f32.mrb[9].mxu0 }
 0x2ce   : > { %v3597_v33 = vmax.f32 %v3565_v62, 0.0  ;;  %v9544_v9 = vadd.f32 %v3401_v19, %v11667_v29  ;;  %v11755_v53 = vld [vmem:[#allocation2 + $0x40] sm:$0x3] }
 0x2cf   : > { %3687 = vst.msk [vmem:[#allocation2 + $0x69] sm:$0xff] %vm3623_vm4, %v3598_v23  ;;  %v3568_v45 = vadd.f32 %v9543_v41, %v11734_v60  ;;  %v11759_v31 = vld [vmem:[#allocation2 + $0x30] sm:$0xff]  ;;  %v11761_v17 = vld [vmem:[#allocation2 + $0x38] sm:$0xff]  ;;  %v3796_v20 = vrot.slane %v11755_v53, 1 }
 0x2d0   : > { %3686 = vst.msk [vmem:[#allocation2 + $0x61] sm:$0xff] %vm3623_vm4, %v3597_v33  ;;  %v3567_v30 = vadd.f32 %v9544_v9, %v11734_v60  ;;  %v9014_v36 = vpop.f32.mrb[10].mxu0  ;;  %v3793_v55 = vrot.slane %v11759_v31, 1  ;;  %v3794_v29 = vrot.slane %v11761_v17, 1 }
 0x2d1   : > { %v3600_v21 = vmax.f32 %v3568_v45, 0.0  ;;  %v9545_v22 = vadd.f32 %v9014_v36, %v11675_v24  ;;  %v3411_v38 = vpop.f32.mrb[11].mxu0 }
 0x2d2   : > { %v3599_v52 = vmax.f32 %v3567_v30, 0.0  ;;  %v9546_v43 = vadd.f32 %v3411_v38, %v11679_v0  ;;  %v11771_v63 = vsel %vm479_vm1, %v3793_v55, %v3794_v29  ;;  %v11774_v4 = vsel %vm479_vm1, %v3794_v29, %v3796_v20 }
 0x2d3   : > { %3689 = vst.msk [vmem:[#allocation2 + $0x81] sm:$0xff] %vm3623_vm4, %v3600_v21  ;;  %v3570_v25 = vadd.f32 %v9545_v22, %v11734_v60  ;;  %9050 = vmatprep.mubr.msk.f32.mxu1 %vm3623_vm4, %v11771_v63 }
 0x2d4   : > { %3688 = vst.msk [vmem:[#allocation2 + $0x79] sm:$0xff] %vm3623_vm4, %v3599_v52  ;;  %v3569_v24 = vadd.f32 %v9546_v43, %v11734_v60  ;;  %v9017_v26 = vpop.f32.mrb[12].mxu0  ;;  %9051 = vmatmul.mubr.msk.f32.gmra.mrb[32].mxu1 %vm3623_vm4, %v11774_v4 }
 0x2d5   : > { %v3602_v0 = vmax.f32 %v3570_v25, 0.0  ;;  %v9547_v10 = vadd.f32 %v9017_v26, %v11682_v1  ;;  %v3421_v12 = vpop.f32.mrb[13].mxu0 }
 0x2d6   : > { %v3601_v49 = vmax.f32 %v3569_v24, 0.0  ;;  %v9548_v44 = vadd.f32 %v3421_v12, %v11684_v61  ;;  %v11786_v18 = vld [vmem:[#allocation2 + $0x70] sm:$0x3] }
 0x2d7   : > { %3691 = vst.msk [vmem:[#allocation2 + $0x99] sm:$0xff] %vm3623_vm4, %v3602_v0  ;;  %v3572_v42 = vadd.f32 %v9547_v10, %v11734_v60  ;;  %v11790_v37 = vld [vmem:[#allocation2 + $0x60] sm:$0xff]  ;;  %v11792_v7 = vld [vmem:[#allocation2 + $0x68] sm:$0xff]  ;;  %v3801_v5 = vrot.slane %v11786_v18, 1 }
 0x2d8   : > { %3690 = vst.msk [vmem:[#allocation2 + $0x91] sm:$0xff] %vm3623_vm4, %v3601_v49  ;;  %v3571_v1 = vadd.f32 %v9548_v44, %v11734_v60  ;;  %v9020_v46 = vpop.f32.mrb[14].mxu0  ;;  %v3798_v16 = vrot.slane %v11790_v37, 1  ;;  %v3799_v61 = vrot.slane %v11792_v7, 1 }
 0x2d9   : > { %v3604_v62 = vmax.f32 %v3572_v42, 0.0  ;;  %v9549_v56 = vadd.f32 %v9020_v46, %v11686_v58  ;;  %v3431_v23 = vpop.f32.mrb[15].mxu0 }
 0x2da   : > { %v3603_v41 = vmax.f32 %v3571_v1, 0.0  ;;  %v9550_v19 = vadd.f32 %v3431_v23, %v11688_v57  ;;  %v11802_v33 = vsel %vm479_vm1, %v3798_v16, %v3799_v61  ;;  %v11805_v9 = vsel %vm479_vm1, %v3799_v61, %v3801_v5 }
 0x2db   : > { %3693 = vst.msk [vmem:[#allocation2 + $0xb1] sm:$0xff] %vm3623_vm4, %v3604_v62  ;;  %v3574_v45 = vadd.f32 %v9549_v56, %v11734_v60  ;;  %9053 = vmatprep.mubr.msk.f32.mxu1 %vm3623_vm4, %v11802_v33 }
 0x2dc   : > { %3692 = vst.msk [vmem:[#allocation2 + $0xa9] sm:$0xff] %vm3623_vm4, %v3603_v41  ;;  %v3573_v58 = vadd.f32 %v9550_v19, %v11734_v60  ;;  %v9023_v20 = vpop.f32.mrb[16].mxu0  ;;  %9054 = vmatmul.mubr.msk.f32.gmra.mrb[34].mxu1 %vm3623_vm4, %v11805_v9 }
 0x2dd   : > { %v3606_v57 = vmax.f32 %v3574_v45, 0.0  ;;  %v9551_v30 = vadd.f32 %v9023_v20, %v11690_v13  ;;  %v3441_v36 = vpop.f32.mrb[17].mxu0 }
 0x2de   : > { %v3605_v55 = vmax.f32 %v3573_v58, 0.0  ;;  %v9552_v29 = vadd.f32 %v3441_v36, %v11692_v14  ;;  %v11817_v21 = vld [vmem:[#allocation2 + $0xa0] sm:$0x3] }
 0x2df   : > { %3695 = vst.msk [vmem:[#allocation2 + $0xc9] sm:$0xff] %vm3623_vm4, %v3606_v57  ;;  %v3576_v22 = vadd.f32 %v9551_v30, %v11734_v60  ;;  %v11821_v38 = vld [vmem:[#allocation2 + $0x90] sm:$0xff]  ;;  %v11823_v52 = vld [vmem:[#allocation2 + $0x98] sm:$0xff]  ;;  %v3806_v43 = vrot.slane %v11817_v21, 1 }
 0x2e0   : > { %3694 = vst.msk [vmem:[#allocation2 + $0xc1] sm:$0xff] %vm3623_vm4, %v3605_v55  ;;  %v3575_v13 = vadd.f32 %v9552_v29, %v11734_v60  ;;  %v9026_v25 = vpop.f32.mrb[18].mxu0  ;;  %v3803_v24 = vrot.slane %v11821_v38, 1  ;;  %v3804_v14 = vrot.slane %v11823_v52, 1 }
 0x2e1   : > { %v3608_v26 = vmax.f32 %v3576_v22, 0.0  ;;  %v9553_v0 = vadd.f32 %v9026_v25, %v11694_v35  ;;  %v3451_v10 = vpop.f32.mrb[19].mxu0 }
 0x2e2   : > { %v3607_v12 = vmax.f32 %v3575_v13, 0.0  ;;  %v9554_v49 = vadd.f32 %v3451_v10, %v11696_v39  ;;  %v11833_v44 = vsel %vm479_vm1, %v3803_v24, %v3804_v14  ;;  %v11836_v42 = vsel %vm479_vm1, %v3804_v14, %v3806_v43 }
 0x2e3   : > { %3697 = vst.msk [vmem:[#allocation2 + $0xe1] sm:$0xff] %vm3623_vm4, %v3608_v26  ;;  %v3578_v5 = vadd.f32 %v9553_v0, %v11734_v60  ;;  %9056 = vmatprep.mubr.msk.f32.mxu1 %vm3623_vm4, %v11833_v44 }
 0x2e4   : > { %3696 = vst.msk [vmem:[#allocation2 + $0xd9] sm:$0xff] %vm3623_vm4, %v3607_v12  ;;  %v3577_v35 = vadd.f32 %v9554_v49, %v11734_v60  ;;  %v9029_v1 = vpop.f32.mrb[20].mxu0  ;;  %9057 = vmatmul.mubr.msk.f32.gmra.mrb[36].mxu1 %vm3623_vm4, %v11836_v42 }
 0x2e5   : > { %v3610_v39 = vmax.f32 %v3578_v5, 0.0  ;;  %v9555_v46 = vadd.f32 %v9029_v1, %v11698_v54  ;;  %v3461_v16 = vpop.f32.mrb[21].mxu0 }
 0x2e6   : > { %v3609_v61 = vmax.f32 %v3577_v35, 0.0  ;;  %v9556_v62 = vadd.f32 %v3461_v16, %v11700_v27  ;;  %v11848_v56 = vld [vmem:[#allocation2 + $0xd0] sm:$0x3] }
 0x2e7   : > { %3699 = vst.msk [vmem:[#allocation2 + $0xf9] sm:$0xff] %vm3623_vm4, %v3610_v39  ;;  %v3580_v23 = vadd.f32 %v9555_v46, %v11734_v60  ;;  %v11852_v41 = vld [vmem:[#allocation2 + $0xc0] sm:$0xff]  ;;  %v11854_v19 = vld [vmem:[#allocation2 + $0xc8] sm:$0xff]  ;;  %v3811_v45 = vrot.slane %v11848_v56, 1 }
 0x2e8   : > { %3698 = vst.msk [vmem:[#allocation2 + $0xf1] sm:$0xff] %vm3623_vm4, %v3609_v61  ;;  %v3579_v54 = vadd.f32 %v9556_v62, %v11734_v60  ;;  %v9032_v58 = vpop.f32.mrb[22].mxu0  ;;  %v3808_v20 = vrot.slane %v11852_v41, 1  ;;  %v3809_v27 = vrot.slane %v11854_v19, 1 }
 0x2e9   : > { %v3612_v57 = vmax.f32 %v3580_v23, 0.0  ;;  %v9557_v30 = vadd.f32 %v9032_v58, %v11702_v28  ;;  %v3471_v36 = vpop.f32.mrb[23].mxu0 }
 0x2ea   : > { %v3611_v55 = vmax.f32 %v3579_v54, 0.0  ;;  %v9558_v29 = vadd.f32 %v3471_v36, %v11704_v11  ;;  %v11864_v22 = vsel %vm479_vm1, %v3808_v20, %v3809_v27  ;;  %v11867_v43 = vsel %vm479_vm1, %v3809_v27, %v3811_v45 }
 0x2eb   : > { %3701 = vst.msk [vmem:[#allocation2 + $0x111] sm:$0xff] %vm3623_vm4, %v3612_v57  ;;  %v3582_v13 = vadd.f32 %v9557_v30, %v11734_v60  ;;  %9059 = vmatprep.mubr.msk.f32.mxu1 %vm3623_vm4, %v11864_v22 }
 0x2ec   : > { %3700 = vst.msk [vmem:[#allocation2 + $0x109] sm:$0xff] %vm3623_vm4, %v3611_v55  ;;  %v3581_v28 = vadd.f32 %v9558_v29, %v11734_v60  ;;  %v9035_v25 = vpop.f32.mrb[24].mxu0  ;;  %9060 = vmatmul.mubr.msk.f32.gmra.mrb[38].mxu1 %vm3623_vm4, %v11867_v43 }
 0x2ed   : > { %v3614_v11 = vmax.f32 %v3582_v13, 0.0  ;;  %v9559_v24 = vadd.f32 %v9035_v25, %v11706_v6  ;;  %v3481_v14 = vpop.f32.mrb[25].mxu0 }
 0x2ee   : > { %v3613_v26 = vmax.f32 %v3581_v28, 0.0  ;;  %v9560_v0 = vadd.f32 %v3481_v14, %v11711_v3  ;;  %v11879_v10 = vld [vmem:[#allocation2 + $0x100] sm:$0x3] }
 0x2ef   : > { %3703 = vst.msk [vmem:[#allocation2 + $0x129] sm:$0xff] %vm3623_vm4, %v3614_v11  ;;  %v3584_v12 = vadd.f32 %v9559_v24, %v11734_v60  ;;  %v11883_v49 = vld [vmem:[#allocation2 + $0xf0] sm:$0xff]  ;;  %v11885_v5 = vld [vmem:[#allocation2 + $0xf8] sm:$0xff]  ;;  %v3816_v35 = vrot.slane %v11879_v10, 1 }
 0x2f0   : > { %3702 = vst.msk [vmem:[#allocation2 + $0x121] sm:$0xff] %vm3623_vm4, %v3613_v26  ;;  %v3583_v6 = vadd.f32 %v9560_v0, %v11734_v60  ;;  %v9038_v1 = vpop.f32.mrb[26].mxu0  ;;  %v3813_v39 = vrot.slane %v11883_v49, 1  ;;  %v3814_v3 = vrot.slane %v11885_v5, 1 }
 0x2f1   : > { %v3616_v46 = vmax.f32 %v3584_v12, 0.0  ;;  %v9561_v16 = vadd.f32 %v9038_v1, %v11713_v34  ;;  %v3491_v61 = vpop.f32.mrb[27].mxu0 }
 0x2f2   : > { %v3615_v62 = vmax.f32 %v3583_v6, 0.0  ;;  %v9562_v23 = vadd.f32 %v3491_v61, %v11715_v59  ;;  %v11895_v45 = vsel %vm479_vm1, %v3813_v39, %v3814_v3  ;;  %v11898_v54 = vsel %vm479_vm1, %v3814_v3, %v3816_v35 }
 0x2f3   : > { %3705 = vst.msk [vmem:[#allocation2 + $0x141] sm:$0xff] %vm3623_vm4, %v3616_v46  ;;  %v3586_v58 = vadd.f32 %v9561_v16, %v11734_v60  ;;  %9062 = vmatprep.mubr.msk.f32.mxu1 %vm3623_vm4, %v11895_v45 }
 0x2f4   : > { %3704 = vst.msk [vmem:[#allocation2 + $0x139] sm:$0xff] %vm3623_vm4, %v3615_v62  ;;  %v3585_v34 = vadd.f32 %v9562_v23, %v11734_v60  ;;  %v9041_v20 = vpop.f32.mrb[28].mxu0  ;;  %9063 = vmatmul.mubr.msk.f32.gmra.mrb[40].mxu1 %vm3623_vm4, %v11898_v54 }
 0x2f5   : > { %v3618_v59 = vmax.f32 %v3586_v58, 0.0  ;;  %v9563_v27 = vadd.f32 %v9041_v20, %v11717_v15  ;;  %v3501_v57 = vpop.f32.mrb[29].mxu0  ;;  %v7812_v20 = vld [vmem:[%s12917_s3 + $0x18] sm:$0xff] }
 0x2f6   : > { %v3617_v30 = vmax.f32 %v3585_v34, 0.0  ;;  %v9564_v36 = vadd.f32 %v3501_v57, %v11719_v8  ;;  %v11910_v55 = vld [vmem:[#allocation2 + $0x130] sm:$0x3] }
 0x2f7   : > { %3707 = vst.msk [vmem:[#allocation2 + $0x159] sm:$0xff] %vm3623_vm4, %v3618_v59  ;;  %v3588_v29 = vadd.f32 %v9563_v27, %v11734_v60  ;;  %v11914_v13 = vld [vmem:[#allocation2 + $0x120] sm:$0xff]  ;;  %v11916_v28 = vld [vmem:[#allocation2 + $0x128] sm:$0xff]  ;;  %v3821_v25 = vrot.slane %v11910_v55, 1  ;;  %v4185_v59 = vrot.slane %v11665_v40, 2  ;;  %v4187_v27 = vrot.slane %v11671_v50, 2 }
 0x2f8   : > { %3706 = vst.msk [vmem:[#allocation2 + $0x151] sm:$0xff] %vm3623_vm4, %v3617_v30  ;;  %v3587_v15 = vadd.f32 %v9564_v36, %v11734_v60  ;;  %v9044_v11 = vpop.f32.mrb[30].mxu0  ;;  %v3818_v24 = vrot.slane %v11914_v13, 1  ;;  %v3819_v8 = vrot.slane %v11916_v28, 1  ;;  %v4189_v30 = vrot.slane %v11759_v31, 2 }
 0x2f9   : > { %v3620_v14 = vmax.f32 %v3588_v29, 0.0  ;;  %v9565_v26 = vadd.f32 %v9044_v11, %v11721_v32  ;;  %v3511_v0 = vpop.f32.mrb[31].mxu0  ;;  %v4190_v36 = vrot.slane %v11761_v17, 2  ;;  %v7829_v29 = vld [vmem:[%s12917_s3 + $0x20] sm:$0xff]  ;;  %v4197_v11 = vrot.slane %v11786_v18, 2 }
 0x2fa   : > { %v3619_v12 = vmax.f32 %v3587_v15, 0.0  ;;  %v9566_v35 = vadd.f32 %v3511_v0, %v11723_v2  ;;  %v11926_v6 = vsel %vm479_vm1, %v3818_v24, %v3819_v8  ;;  %v11929_v1 = vsel %vm479_vm1, %v3819_v8, %v3821_v25 }
 0x2fb   : > { %3709 = vst.msk [vmem:[#allocation2 + $0x171] sm:$0xff] %vm3623_vm4, %v3620_v14  ;;  %v3590_v39 = vadd.f32 %v9565_v26, %v11734_v60  ;;  %9065 = vmatprep.mubr.msk.f32.mxu1 %vm3623_vm4, %v11926_v6  ;;  %v12010_v50 = vsel %vm1148_vm3, %v4189_v30, %v4190_v36  ;;  %v4194_v25 = vrot.slane %v11790_v37, 2  ;;  %v4195_v15 = vrot.slane %v11792_v7, 2 }
 0x2fc   : > { %3708 = vst.msk [vmem:[#allocation2 + $0x169] sm:$0xff] %vm3623_vm4, %v3619_v12  ;;  %v3589_v32 = vadd.f32 %v9566_v35, %v11734_v60  ;;  %9066 = vmatmul.mubr.msk.f32.gmra.mrb[42].mxu1 %vm3623_vm4, %v11929_v1  ;;  %13157 = vst [vmem:[#allocation67_spill] sm:$0xff] %v12010_v50  ;;  %v4199_v8 = vrot.slane %v11821_v38, 2  ;;  %v4200_v14 = vrot.slane %v11823_v52, 2  ;;  %v4202_v0 = vrot.slane %v11817_v21, 2 }
 0x2fd   : > { %v3622_v2 = vmax.f32 %v3590_v39, 0.0  ;;  %v12023_v24 = vsel %vm1148_vm3, %v4194_v25, %v4195_v15  ;;  %v12030_v26 = vsel %vm1148_vm3, %v4195_v15, %v4197_v11  ;;  %v4204_v12 = vrot.slane %v11852_v41, 2  ;;  %v7846_v25 = vld [vmem:[%s12917_s3 + $0x28] sm:$0xff]  ;;  %v12108_v15 = vld [vmem:[#allocation2 + $0x48] sm:$0xff]  ;;  %v12112_v11 = vld [vmem:[#allocation2 + $0x50] sm:$0xff] }
 0x2fe   : > { %v3621_v3 = vmax.f32 %v3589_v32, 0.0  ;;  %v11939_v46 = vld [vmem:[#allocation2 + $0x160] sm:$0x3]  ;;  %13159 = vst [vmem:[#allocation8_spill] sm:$0xff] %v12023_v24  ;;  %13160 = vst [vmem:[#allocation33_spill] sm:$0xff] %v12030_v26  ;;  %v12036_v18 = vsel %vm1148_vm3, %v4199_v8, %v4200_v14  ;;  %v4205_v35 = vrot.slane %v11854_v19, 2  ;;  %v12043_v39 = vsel %vm1148_vm3, %v4200_v14, %v4202_v0 }
 0x2ff   : > { %3711 = vst.msk [vmem:[#allocation2 + $0x189] sm:$0xff] %vm3623_vm4, %v3622_v2  ;;  %v11942_v16 = vld [vmem:[#allocation2 + $0x150] sm:$0xff]  ;;  %v11944_v61 = vld [vmem:[#allocation2 + $0x158] sm:$0xff]  ;;  %v3826_v62 = vrot.slane %v11939_v46, 1  ;;  %13161 = vst [vmem:[#allocation68_spill] sm:$0xff] %v12036_v18  ;;  %v4207_v32 = vrot.slane %v11848_v56, 2 }
 0x300   : > { %3710 = vst.msk [vmem:[#allocation2 + $0x181] sm:$0xff] %vm3623_vm4, %v3621_v3  ;;  %v3823_v23 = vrot.slane %v11942_v16, 1  ;;  %v3824_v60 = vrot.slane %v11944_v61, 1  ;;  %13162 = vst [vmem:[#allocation9_spill] sm:$0xff] %v12043_v39  ;;  %v12049_v21 = vsel %vm1148_vm3, %v4204_v12, %v4205_v35  ;;  %v4209_v2 = vrot.slane %v11883_v49, 2  ;;  %v12116_v8 = vld [vmem:[#allocation2 + $0x78] sm:$0xff] }
 0x301   : > { %13163 = vst [vmem:[#allocation10_spill] sm:$0xff] %v12049_v21  ;;  %v4210_v3 = vrot.slane %v11885_v5, 2  ;;  %v12120_v14 = vld [vmem:[#allocation2 + $0x80] sm:$0xff]  ;;  %v12128_v0 = vld [vmem:[#allocation2 + $0xb0] sm:$0xff]  ;;  %v12132_v12 = vld [vmem:[#allocation2 + $0xd8] sm:$0xff]  ;;  %v4643_v47 = vrot.slane %v12108_v15, 1 }
 0x302   : > { %v11951_v58 = vsel %vm479_vm1, %v3823_v23, %v3824_v60  ;;  %v11954_v34 = vsel %vm479_vm1, %v3824_v60, %v3826_v62  ;;  %v12056_v62 = vsel %vm1148_vm3, %v4205_v35, %v4207_v32  ;;  %v4212_v23 = vrot.slane %v11879_v10, 2  ;;  %v12136_v35 = vld [vmem:[#allocation2 + $0xe0] sm:$0xff]  ;;  %v12140_v32 = vld [vmem:[#allocation2 + $0x108] sm:$0xff] }
 0x303   : > { %13156 = vst [vmem:[#allocation30_spill] sm:$0xff] %v11954_v34  ;;  %9068 = vmatprep.mubr.msk.f32.mxu1 %vm3623_vm4, %v11951_v58  ;;  %13164 = vst [vmem:[#allocation36_spill] sm:$0xff] %v12056_v62  ;;  %v12062_v56 = vsel %vm1148_vm3, %v4209_v2, %v4210_v3  ;;  %v4214_v60 = vrot.slane %v11914_v13, 2  ;;  %v12144_v2 = vld [vmem:[#allocation2 + $0x110] sm:$0xff] }
 0x304   : > { %9069 = vmatmul.mubr.msk.f32.gmra.mrb[44].mxu1 %vm3623_vm4, %v11954_v34  ;;  %13165 = vst [vmem:[#allocation69_spill] sm:$0xff] %v12062_v56  ;;  %v12232_v34 = vld [vmem:[#allocation2 + $0x178] sm:$0x3] }
 0x305   : > { %9073 = vmatprep.mubr.msk.f32.mxu1 %vm3623_vm4, %v11663_v51 }
 0x308   : > { %9074 = vmatmul.mubr.msk.f32.vlgmr.msra.gmra.mrb[30].mxu1 %vm3623_vm4, %v11665_v40  ;;  %v4192_v40 = vrot.slane %v11755_v53, 2 }
 0x309   : > { %9098 = vmatpush3.msra.mxu1 %v11728_v48  ;;  %9076 = vmatprep.mubr.msk.f32.mxu1 %vm3623_vm4, %v11759_v31  ;;  %v4184_v48 = vrot.slane %v11663_v51, 2  ;;  %v4188_v51 = vsel %vm1148_vm3, %v4185_v59, %v4187_v27  ;;  %v4219_v27 = vrot.slane %v11942_v16, 2 }
 0x30a   : > { %9123 = vmatprep.subr.mxu1 %v7812_v20  ;;  %v12017_v53 = vsel %vm1148_vm3, %v4190_v36, %v4192_v40  ;;  %v4222_v36 = vrot.slane %v11939_v46, 2  ;;  %v12097_v40 = vld [vmem:[#allocation2 + $0x18] sm:$0xff]  ;;  %v12101_v46 = vld [vmem:[#allocation2 + $0x20] sm:$0xff] }
 0x30b   : > { %v4186_v57 = vsel %vm1148_vm3, %v4184_v48, %v4185_v59  ;;  %13158 = vst [vmem:[#allocation7_spill] sm:$0xff] %v12017_v53  ;;  %v12069_v48 = vsel %vm1148_vm3, %v4210_v3, %v4212_v23  ;;  %v4217_v59 = vrot.slane %v11910_v55, 2  ;;  %v12148_v3 = vld [vmem:[#allocation2 + $0x138] sm:$0xff]  ;;  %v12152_v23 = vld [vmem:[#allocation2 + $0x140] sm:$0xff] }
 0x30c   : > { %9077 = vmatmul.mubr.msk.f32.gmra.mrb[32].mxu1 %vm3623_vm4, %v11761_v17  ;;  %13166 = vst [vmem:[#allocation11_spill] sm:$0xff] %v12069_v48 }
 0x30d   : > { %9079 = vmatprep.mubr.msk.f32.mxu1 %vm3623_vm4, %v11790_v37 }
 0x310   : > { %9080 = vmatmul.mubr.msk.f32.gmra.mrb[34].mxu1 %vm3623_vm4, %v11792_v7 }
 0x311   : > { %9082 = vmatprep.mubr.msk.f32.mxu1 %vm3623_vm4, %v11821_v38 }
 0x314   : > { %9083 = vmatmul.mubr.msk.f32.gmra.mrb[36].mxu1 %vm3623_vm4, %v11823_v52 }
 0x315   : > { %9085 = vmatprep.mubr.msk.f32.mxu1 %vm3623_vm4, %v11852_v41 }
 0x318   : > { %9086 = vmatmul.mubr.msk.f32.gmra.mrb[38].mxu1 %vm3623_vm4, %v11854_v19 }
 0x319   : > { %9088 = vmatprep.mubr.msk.f32.mxu1 %vm3623_vm4, %v11883_v49 }
 0x31c   : > { %9089 = vmatmul.mubr.msk.f32.gmra.mrb[40].mxu1 %vm3623_vm4, %v11885_v5 }
 0x31d   : > { %9091 = vmatprep.mubr.msk.f32.mxu1 %vm3623_vm4, %v11914_v13 }
 0x320   : > { %9092 = vmatmul.mubr.msk.f32.gmra.mrb[42].mxu1 %vm3623_vm4, %v11916_v28 }
 0x321   : > { %9094 = vmatprep.mubr.msk.f32.mxu1 %vm3623_vm4, %v11942_v16 }
 0x324   : > { %9095 = vmatmul.mubr.msk.f32.gmra.mrb[44].mxu1 %vm3623_vm4, %v11944_v61 }
 0x325   : > { %9099 = vmatprep.mubr.msk.f32.mxu1 %vm3623_vm4, %v4186_v57  ;;  %v4220_v57 = vrot.slane %v11944_v61, 2 }
 0x327   : > { %v12088_v55 = vsel %vm1148_vm3, %v4219_v27, %v4220_v57  ;;  %v12160_v27 = vld [vmem:[#allocation2 + $0x28] sm:$0x3] }
 0x328   : > { %9100 = vmatmul.mubr.msk.f32.vlgmr.msra.gmra.mrb[30].mxu1 %vm3623_vm4, %v4188_v51  ;;  %13169 = vst [vmem:[#allocation70_spill] sm:$0xff] %v12088_v55  ;;  %v12093_v51 = vsel %vm1148_vm3, %v4220_v57, %v4222_v36  ;;  %v12164_v57 = vld [vmem:[#allocation2 + $0x170] sm:$0xff]  ;;  %v4641_v36 = vrot.slane %v12160_v27, 1 }
 0x329   : > { %9124 = vmatpush3.msra.mxu1 %v7812_v20  ;;  %9102 = vmatprep.mubr.msk.f32.mxu1 %vm3623_vm4, %v12010_v50  ;;  %v4215_v20 = vrot.slane %v11916_v28, 2  ;;  %13170 = vst [vmem:[#allocation13_spill] sm:$0xff] %v12093_v51  ;;  %v12223_v50 = vld [vmem:[#allocation2 + $0x148] sm:$0x3] }
 0x32a   : > { %9149 = vmatprep.subr.mxu1 %v7829_v29 }
 0x32b   : > { %v12075_v10 = vsel %vm1148_vm3, %v4214_v60, %v4215_v20  ;;  %v12082_v30 = vsel %vm1148_vm3, %v4215_v20, %v4217_v59  ;;  %v4638_v60 = vrot.slane %v12097_v40, 1  ;;  %v12157_v20 = vld [vmem:[#allocation2 + $0x168] sm:$0xff]  ;;  %v4639_v59 = vrot.slane %v12101_v46, 1 }
 0x32c   : > { %9103 = vmatmul.mubr.msk.f32.gmra.mrb[32].mxu1 %vm3623_vm4, %v12017_v53  ;;  %13167 = vst [vmem:[#allocation12_spill] sm:$0xff] %v12075_v10  ;;  %13168 = vst [vmem:[#allocation39_spill] sm:$0xff] %v12082_v30  ;;  %v12214_v53 = vld [vmem:[#allocation2 + $0x118] sm:$0x3] }
 0x32d   : > { %9105 = vmatprep.mubr.msk.f32.mxu1 %vm3623_vm4, %v12023_v24  ;;  %v12205_v24 = vld [vmem:[#allocation2 + $0xe8] sm:$0x3] }
 0x330   : > { %9106 = vmatmul.mubr.msk.f32.gmra.mrb[34].mxu1 %vm3623_vm4, %v12030_v26 }
 0x331   : > { %9108 = vmatprep.mubr.msk.f32.mxu1 %vm3623_vm4, %v12036_v18  ;;  %v4654_v18 = vrot.slane %v12128_v0, 1 }
 0x334   : > { %9109 = vmatmul.mubr.msk.f32.gmra.mrb[36].mxu1 %vm3623_vm4, %v12043_v39  ;;  %v12186_v39 = vld [vmem:[#allocation2 + $0x88] sm:$0x3] }
 0x335   : > { %9111 = vmatprep.mubr.msk.f32.mxu1 %vm3623_vm4, %v12049_v21  ;;  %v4649_v21 = vrot.slane %v12120_v14, 1 }
 0x338   : > { %9112 = vmatmul.mubr.msk.f32.gmra.mrb[38].mxu1 %vm3623_vm4, %v12056_v62  ;;  %v4648_v62 = vrot.slane %v12116_v8, 1 }
 0x339   : > { %9114 = vmatprep.mubr.msk.f32.mxu1 %vm3623_vm4, %v12062_v56  ;;  %v12180_v56 = vld [vmem:[%s12917_s3 + $0x30] sm:$0xff] }
 0x33c   : > { %9115 = vmatmul.mubr.msk.f32.gmra.mrb[40].mxu1 %vm3623_vm4, %v12069_v48 }
 0x33d   : > { %9117 = vmatprep.mubr.msk.f32.mxu1 %vm3623_vm4, %v12075_v10  ;;  %v4642_v10 = vsel %vm479_vm1, %v4639_v59, %v4641_v36 }
 0x340   : > { %9118 = vmatmul.mubr.msk.f32.gmra.mrb[42].mxu1 %vm3623_vm4, %v12082_v30  ;;  %v12172_v30 = vld [vmem:[#allocation2 + $0x58] sm:$0x3] }
 0x341   : > { %9120 = vmatprep.mubr.msk.f32.mxu1 %vm3623_vm4, %v12088_v55  ;;  %v4640_v55 = vsel %vm479_vm1, %v4638_v60, %v4639_v59  ;;  %v4646_v48 = vrot.slane %v12172_v30, 1  ;;  %v4651_v59 = vrot.slane %v12186_v39, 1 }
 0x344   : > { %9121 = vmatmul.mubr.msk.f32.gmra.mrb[44].mxu1 %vm3623_vm4, %v12093_v51  ;;  %v4644_v51 = vrot.slane %v12112_v11, 1 }
 0x345   : > { %9125 = vmatprep.mubr.msk.f32.mxu1 %vm3623_vm4, %v12097_v40 }
 0x346   : > { %v4645_v60 = vsel %vm479_vm1, %v4643_v47, %v4644_v51  ;;  %v12196_v47 = vld [vmem:[#allocation2 + $0xb8] sm:$0x3] }
 0x348   : > { %9126 = vmatmul.mubr.msk.f32.vlgmr.msra.gmra.mrb[30].mxu1 %vm3623_vm4, %v12101_v46 }
 0x349   : > { %9150 = vmatpush3.msra.mxu1 %v7829_v29  ;;  %9128 = vmatprep.mubr.msk.f32.mxu1 %vm3623_vm4, %v12108_v15  ;;  %v12124_v29 = vld [vmem:[#allocation2 + $0xa8] sm:$0xff] }
 0x34a   : > { %9175 = vmatprep.subr.mxu1 %v7846_v25  ;;  %v4653_v36 = vrot.slane %v12124_v29, 1 }
 0x34c   : > { %9129 = vmatmul.mubr.msk.f32.gmra.mrb[32].mxu1 %vm3623_vm4, %v12112_v11  ;;  %v4655_v26 = vsel %vm479_vm1, %v4653_v36, %v4654_v18 }
 0x34d   : > { %9131 = vmatprep.mubr.msk.f32.mxu1 %vm3623_vm4, %v12116_v8 }
 0x350   : > { %9132 = vmatmul.mubr.msk.f32.gmra.mrb[34].mxu1 %vm3623_vm4, %v12120_v14 }
 0x351   : > { %9134 = vmatprep.mubr.msk.f32.mxu1 %vm3623_vm4, %v12124_v29 }
 0x354   : > { %9135 = vmatmul.mubr.msk.f32.gmra.mrb[36].mxu1 %vm3623_vm4, %v12128_v0 }
 0x355   : > { %9137 = vmatprep.mubr.msk.f32.mxu1 %vm3623_vm4, %v12132_v12 }
 0x358   : > { %9138 = vmatmul.mubr.msk.f32.gmra.mrb[38].mxu1 %vm3623_vm4, %v12136_v35 }
 0x359   : > { %9140 = vmatprep.mubr.msk.f32.mxu1 %vm3623_vm4, %v12140_v32 }
 0x35c   : > { %9141 = vmatmul.mubr.msk.f32.gmra.mrb[40].mxu1 %vm3623_vm4, %v12144_v2 }
 0x35d   : > { %9143 = vmatprep.mubr.msk.f32.mxu1 %vm3623_vm4, %v12148_v3 }
 0x360   : > { %9144 = vmatmul.mubr.msk.f32.gmra.mrb[42].mxu1 %vm3623_vm4, %v12152_v23 }
 0x361   : > { %9146 = vmatprep.mubr.msk.f32.mxu1 %vm3623_vm4, %v12157_v20 }
 0x364   : > { %9147 = vmatmul.mubr.msk.f32.gmra.mrb[44].mxu1 %vm3623_vm4, %v12164_v57 }
 0x365   : > { %9151 = vmatprep.mubr.msk.f32.mxu1 %vm3623_vm4, %v4640_v55  ;;  %v4647_v55 = vsel %vm479_vm1, %v4644_v51, %v4646_v48  ;;  %v4658_v48 = vrot.slane %v12132_v12, 1  ;;  %v4659_v51 = vrot.slane %v12136_v35, 1 }
 0x368   : > { %9152 = vmatmul.mubr.msk.f32.vlgmr.msra.gmra.mrb[30].mxu1 %vm3623_vm4, %v4642_v10  ;;  %v4650_v10 = vsel %vm479_vm1, %v4648_v62, %v4649_v21 }
 0x369   : > { %9176 = vmatpush3.msra.mxu1 %v7846_v25  ;;  %9154 = vmatprep.mubr.msk.f32.mxu1 %vm3623_vm4, %v4645_v60  ;;  %v4652_v25 = vsel %vm479_vm1, %v4649_v21, %v4651_v59  ;;  %v4656_v60 = vrot.slane %v12196_v47, 1  ;;  %v4663_v21 = vrot.slane %v12140_v32, 1  ;;  %v4664_v59 = vrot.slane %v12144_v2, 1 }
 0x36a   : > { %9201 = vmatprep.subr.mxu1 %v12180_v56 }
 0x36b   : > { %v4657_v62 = vsel %vm479_vm1, %v4654_v18, %v4656_v60  ;;  %v4668_v18 = vrot.slane %v12148_v3, 1  ;;  %v4665_v60 = vsel %vm479_vm1, %v4663_v21, %v4664_v59 }
 0x36c   : > { %9155 = vmatmul.mubr.msk.f32.gmra.mrb[32].mxu1 %vm3623_vm4, %v4647_v55  ;;  %v4661_v55 = vrot.slane %v12205_v24, 1 }
 0x36d   : > { %9157 = vmatprep.mubr.msk.f32.mxu1 %vm3623_vm4, %v4650_v10  ;;  %v4660_v10 = vsel %vm479_vm1, %v4658_v48, %v4659_v51 }
 0x36e   : > { %v4662_v36 = vsel %vm479_vm1, %v4659_v51, %v4661_v55  ;;  %v4673_v51 = vrot.slane %v12157_v20, 1  ;;  %v4674_v55 = vrot.slane %v12164_v57, 1 }
 0x370   : > { %9158 = vmatmul.mubr.msk.f32.gmra.mrb[34].mxu1 %vm3623_vm4, %v4652_v25  ;;  %v4669_v25 = vrot.slane %v12152_v23, 1 }
 0x371   : > { %9160 = vmatprep.mubr.msk.f32.mxu1 %vm3623_vm4, %v4655_v26  ;;  %v4666_v26 = vrot.slane %v12214_v53, 1 }
 0x373   : > { %v4667_v48 = vsel %vm479_vm1, %v4664_v59, %v4666_v26  ;;  %v4873_v59 = vrot.slane %v12097_v40, 2  ;;  %v4675_v26 = vsel %vm479_vm1, %v4673_v51, %v4674_v55  ;;  %v7880_v51 = vld [vmem:[%s12917_s3 + $0x38] sm:$0xff] }
 0x374   : > { %9161 = vmatmul.mubr.msk.f32.gmra.mrb[36].mxu1 %vm3623_vm4, %v4657_v62  ;;  %v4671_v62 = vrot.slane %v12223_v50, 1 }
 0x375   : > { %9163 = vmatprep.mubr.msk.f32.mxu1 %vm3623_vm4, %v4660_v10  ;;  %v4670_v10 = vsel %vm479_vm1, %v4668_v18, %v4669_v25 }
 0x376   : > { %v4672_v21 = vsel %vm479_vm1, %v4669_v25, %v4671_v62  ;;  %v4879_v25 = vrot.slane %v12112_v11, 2 }
 0x378   : > { %9164 = vmatmul.mubr.msk.f32.gmra.mrb[38].mxu1 %vm3623_vm4, %v4662_v36  ;;  %v4676_v36 = vrot.slane %v12232_v34, 1 }
 0x379   : > { %9166 = vmatprep.mubr.msk.f32.mxu1 %vm3623_vm4, %v4665_v60  ;;  %v4874_v60 = vrot.slane %v12101_v46, 2  ;;  %v4881_v46 = vrot.slane %v12172_v30, 2  ;;  %v4886_v30 = vrot.slane %v12186_v39, 2 }
 0x37a   : > { %v4677_v18 = vsel %vm479_vm1, %v4674_v55, %v4676_v36  ;;  %v4889_v36 = vrot.slane %v12128_v0, 2  ;;  %v4896_v0 = vrot.slane %v12205_v24, 2 }
 0x37b   : > { %v4875_v40 = vsel %vm1148_vm3, %v4873_v59, %v4874_v60  ;;  %v4882_v55 = vsel %vm1148_vm3, %v4879_v25, %v4881_v46  ;;  %v4893_v59 = vrot.slane %v12132_v12, 2 }
 0x37c   : > { %9167 = vmatmul.mubr.msk.f32.gmra.mrb[40].mxu1 %vm3623_vm4, %v4667_v48  ;;  %v4876_v48 = vrot.slane %v12160_v27, 2  ;;  %v4883_v27 = vrot.slane %v12116_v8, 2 }
 0x37d   : > { %9169 = vmatprep.mubr.msk.f32.mxu1 %vm3623_vm4, %v4670_v10  ;;  %v4878_v10 = vrot.slane %v12108_v15, 2  ;;  %v4884_v15 = vrot.slane %v12120_v14, 2 }
 0x37e   : > { %v4877_v62 = vsel %vm1148_vm3, %v4874_v60, %v4876_v48  ;;  %v4898_v60 = vrot.slane %v12140_v32, 2  ;;  %v4903_v48 = vrot.slane %v12148_v3, 2 }
 0x37f   : > { %v4880_v11 = vsel %vm1148_vm3, %v4878_v10, %v4879_v25  ;;  %v4885_v8 = vsel %vm1148_vm3, %v4883_v27, %v4884_v15  ;;  %v4887_v14 = vsel %vm1148_vm3, %v4884_v15, %v4886_v30  ;;  %v4904_v10 = vrot.slane %v12152_v23, 2 }
 0x380   : > { %9170 = vmatmul.mubr.msk.f32.gmra.mrb[42].mxu1 %vm3623_vm4, %v4672_v21  ;;  %v4888_v21 = vrot.slane %v12124_v29, 2  ;;  %v4908_v25 = vrot.slane %v12157_v20, 2  ;;  %v4911_v23 = vrot.slane %v12232_v34, 2  ;;  %v7897_v20 = vld [vmem:[%s12917_s3 + $0x40] sm:$0xff]  ;;  %v13186_v27 = vmov 0.0  }
 0x381   : > { %9172 = vmatprep.mubr.msk.f32.mxu1 %vm3623_vm4, %v4675_v26  ;;  %v4894_v26 = vrot.slane %v12136_v35, 2  ;;  %5667 = vst.msk [vmem:[#allocation3 + $0x20] sm:$0xff] %vm5661_vm6, %v13186_v27  ;;  %5662 = vst.msk [vmem:[#allocation3] sm:$0xff] %vm5661_vm6, %v13186_v27 }
 0x382   : > { %v4890_v39 = vsel %vm1148_vm3, %v4888_v21, %v4889_v36  ;;  %5668 = vst.msk [vmem:[#allocation3 + $0x28] sm:$0x3] %vm5664_vm7, %v13186_v27  ;;  %5665 = vst.msk [vmem:[#allocation3 + $0x10] sm:$0x3] %vm5664_vm7, %v13186_v27 }
 0x383   : > { %v4895_v12 = vsel %vm1148_vm3, %v4893_v59, %v4894_v26  ;;  %v4897_v35 = vsel %vm1148_vm3, %v4894_v26, %v4896_v0  ;;  %5663 = vst.msk [vmem:[#allocation3 + $0x8] sm:$0xff] %vm5661_vm6, %v13186_v27  ;;  %5666 = vst.msk [vmem:[#allocation3 + $0x18] sm:$0xff] %vm5661_vm6, %v13186_v27  ;;  %v5738_v59 = vld [vmem:[%s12919_s5 + $0x8] sm:$0xff] }
 0x384   : > { %9173 = vmatmul.mubr.msk.f32.gmra.mrb[44].mxu1 %vm3623_vm4, %v4677_v18  ;;  %v4899_v18 = vrot.slane %v12144_v2, 2  ;;  %v4906_v2 = vrot.slane %v12223_v50, 2  ;;  %5669 = vst.msk [vmem:[#allocation3 + $0x30] sm:$0xff] %vm5661_vm6, %v13186_v27  ;;  %5670 = vst.msk [vmem:[#allocation3 + $0x38] sm:$0xff] %vm5661_vm6, %v13186_v27 }
 0x385   : > { %9177 = vmatprep.mubr.msk.f32.mxu1 %vm3623_vm4, %v4875_v40  ;;  %v4909_v40 = vrot.slane %v12164_v57, 2  ;;  %v13185_v57 = vld [vmem:[#allocation13_spill] sm:$0xff]  ;;  %5671 = vst.msk [vmem:[#allocation3 + $0x40] sm:$0x3] %vm5664_vm7, %v13186_v27  ;;  %5674 = vst.msk [vmem:[#allocation3 + $0x58] sm:$0x3] %vm5664_vm7, %v13186_v27 }
 0x386   : > { %v4900_v24 = vsel %vm1148_vm3, %v4898_v60, %v4899_v18  ;;  %v4907_v3 = vsel %vm1148_vm3, %v4904_v10, %v4906_v2  ;;  %5672 = vst.msk [vmem:[#allocation3 + $0x48] sm:$0xff] %vm5661_vm6, %v13186_v27  ;;  %5673 = vst.msk [vmem:[#allocation3 + $0x50] sm:$0xff] %vm5661_vm6, %v13186_v27  ;;  %v12490_v60 = vld [vmem:[%s12918_s4] ss:$0 sm:$0xff] }
 0x387   : > { %v4912_v50 = vsel %vm1148_vm3, %v4909_v40, %v4911_v23  ;;  %5675 = vst.msk [vmem:[#allocation3 + $0x60] sm:$0xff] %vm5661_vm6, %v13186_v27  ;;  %5676 = vst.msk [vmem:[#allocation3 + $0x68] sm:$0xff] %vm5661_vm6, %v13186_v27 }
 0x388   : > { %9178 = vmatmul.mubr.msk.f32.vlgmr.msra.gmra.mrb[30].mxu1 %vm3623_vm4, %v4877_v62  ;;  %v4910_v62 = vsel %vm1148_vm3, %v4908_v25, %v4909_v40  ;;  %5677 = vst.msk [vmem:[#allocation3 + $0x70] sm:$0x3] %vm5664_vm7, %v13186_v27  ;;  %5680 = vst.msk [vmem:[#allocation3 + $0x88] sm:$0x3] %vm5664_vm7, %v13186_v27  ;;  %v12459_v15 = vld [vmem:[#allocation3] sm:$0xff] }
 0x389   : > { %9202 = vmatpush3.msra.mxu1 %v12180_v56  ;;  %9180 = vmatprep.mubr.msk.f32.mxu1 %vm3623_vm4, %v4880_v11  ;;  %v4891_v56 = vrot.slane %v12196_v47, 2  ;;  %v4901_v47 = vrot.slane %v12214_v53, 2  ;;  %v4905_v53 = vsel %vm1148_vm3, %v4903_v48, %v4904_v10  ;;  %5678 = vst.msk [vmem:[#allocation3 + $0x78] sm:$0xff] %vm5661_vm6, %v13186_v27  ;;  %5679 = vst.msk [vmem:[#allocation3 + $0x80] sm:$0xff] %vm5661_vm6, %v13186_v27  ;;  %v12465_v21 = vld [vmem:[#allocation3 + $0x10] sm:$0x3] }
 0x38a   : > { %9227 = vmatprep.subr.mxu1 %v7880_v51  ;;  %5681 = vst.msk [vmem:[#allocation3 + $0x90] sm:$0xff] %vm5661_vm6, %v13186_v27  ;;  %5682 = vst.msk [vmem:[#allocation3 + $0x98] sm:$0xff] %vm5661_vm6, %v13186_v27  ;;  %v12461_v11 = vld [vmem:[#allocation3 + $0x8] sm:$0xff] }
 0x38b   : > { %v4892_v29 = vsel %vm1148_vm3, %v4889_v36, %v4891_v56  ;;  %v4902_v32 = vsel %vm1148_vm3, %v4899_v18, %v4901_v47  ;;  %5683 = vst.msk [vmem:[#allocation3 + $0xa0] sm:$0x3] %vm5664_vm7, %v13186_v27  ;;  %5686 = vst.msk [vmem:[#allocation3 + $0xb8] sm:$0x3] %vm5664_vm7, %v13186_v27  ;;  %v5752_v30 = vrot.slane %v12461_v11, 1  ;;  %v5754_v36 = vrot.slane %v12465_v21, 1 }
 0x38c   : > { %9181 = vmatmul.mubr.msk.f32.gmra.mrb[32].mxu1 %vm3623_vm4, %v4882_v55  ;;  %5684 = vst.msk [vmem:[#allocation3 + $0xa8] sm:$0xff] %vm5661_vm6, %v13186_v27  ;;  %5685 = vst.msk [vmem:[#allocation3 + $0xb0] sm:$0xff] %vm5661_vm6, %v13186_v27  ;;  %v5751_v55 = vrot.slane %v12459_v15, 1  ;;  %v5737_v56 = vld [vmem:[%s12919_s5] sm:$0xff] }
 0x38d   : > { %9183 = vmatprep.mubr.msk.f32.mxu1 %vm3623_vm4, %v4885_v8  ;;  %5687 = vst.msk [vmem:[#allocation3 + $0xc0] sm:$0xff] %vm5661_vm6, %v13186_v27  ;;  %5688 = vst.msk [vmem:[#allocation3 + $0xc8] sm:$0xff] %vm5661_vm6, %v13186_v27  ;;  %v9471_v26 = vpack.c.bf16 %v5738_v59, %v5737_v56 }
 0x38e   : > { %5689 = vst.msk [vmem:[#allocation3 + $0xd0] sm:$0x3] %vm5664_vm7, %v13186_v27  ;;  %v5753_v8 = vsel %vm479_vm1, %v5751_v55, %v5752_v30 }
 0x390   : > { %9184 = vmatmul.mubr.msk.f32.gmra.mrb[34].mxu1 %vm3623_vm4, %v4887_v14  ;;  %v5755_v14 = vsel %vm479_vm1, %v5752_v30, %v5754_v36 }
 0x391   : > { %9186 = vmatprep.mubr.msk.f32.mxu1 %vm3623_vm4, %v4890_v39  ;;  %v7933_v39 = vld [vmem:[%s12919_s5 + $0x20] sm:$0xff] }
 0x394   : > { %9187 = vmatmul.mubr.msk.f32.gmra.mrb[36].mxu1 %vm3623_vm4, %v4892_v29  ;;  %v7934_v29 = vld [vmem:[%s12919_s5 + $0x28] sm:$0xff] }
 0x395   : > { %9189 = vmatprep.mubr.msk.f32.mxu1 %vm3623_vm4, %v4895_v12  ;;  %v12484_v0 = vpack.c.bf16 %v7934_v29, %v7933_v39 }
 0x398   : > { %9190 = vmatmul.mubr.msk.f32.gmra.mrb[38].mxu1 %vm3623_vm4, %v4897_v35 }
 0x399   : > { %9192 = vmatprep.mubr.msk.f32.mxu1 %vm3623_vm4, %v4900_v24 }
 0x39c   : > { %9193 = vmatmul.mubr.msk.f32.gmra.mrb[40].mxu1 %vm3623_vm4, %v4902_v32 }
 0x39d   : > { %9195 = vmatprep.mubr.msk.f32.mxu1 %vm3623_vm4, %v4905_v53 }
 0x3a0   : > { %9196 = vmatmul.mubr.msk.f32.gmra.mrb[42].mxu1 %vm3623_vm4, %v4907_v3 }
 0x3a1   : > { %9198 = vmatprep.mubr.msk.f32.mxu1 %vm3623_vm4, %v4910_v62 }
 0x3a4   : > { %9199 = vmatmul.mubr.msk.f32.gmra.mrb[44].mxu1 %vm3623_vm4, %v4912_v50 }
 0x3a5   : > { %9203 = vmatprep.mubr.msk.f32.mxu1 %vm3623_vm4, %v11759_v31  ;;  %v3760_v31 = vld [vmem:[#allocation2 + $0x180] sm:$0xff] }
 0x3a8   : > { %9204 = vmatmul.mubr.msk.f32.vlgmr.msra.gmra.mrb[30].mxu1 %vm3623_vm4, %v11761_v17  ;;  %v3761_v17 = vld [vmem:[#allocation2 + $0x188] sm:$0xff] }
 0x3a9   : > { %9228 = vmatpush3.msra.mxu1 %v7880_v51  ;;  %9206 = vmatprep.mubr.msk.f32.mxu1 %vm3623_vm4, %v11790_v37  ;;  %v7915_v37 = vld [vmem:[%s12919_s5 + $0x10] sm:$0xff] }
 0x3aa   : > { %9253 = vmatprep.subr.mxu1 %v7897_v20 }
 0x3ac   : > { %9207 = vmatmul.mubr.msk.f32.gmra.mrb[32].mxu1 %vm3623_vm4, %v11792_v7  ;;  %v7916_v7 = vld [vmem:[%s12919_s5 + $0x18] sm:$0xff] }
 0x3ad   : > { %9209 = vmatprep.mubr.msk.f32.mxu1 %vm3623_vm4, %v11821_v38  ;;  %v9467_v38 = vpack.c.bf16 %v7916_v7, %v7915_v37 }
 0x3b0   : > { %9210 = vmatmul.mubr.msk.f32.gmra.mrb[34].mxu1 %vm3623_vm4, %v11823_v52  ;;  %v13171_v52 = vld [vmem:[#allocation30_spill] sm:$0xff] }
 0x3b1   : > { %9212 = vmatprep.mubr.msk.f32.mxu1 %vm3623_vm4, %v11852_v41  ;;  %v13172_v41 = vld [vmem:[#allocation67_spill] sm:$0xff] }
 0x3b4   : > { %9213 = vmatmul.mubr.msk.f32.gmra.mrb[36].mxu1 %vm3623_vm4, %v11854_v19  ;;  %v13173_v19 = vld [vmem:[#allocation7_spill] sm:$0xff] }
 0x3b5   : > { %9215 = vmatprep.mubr.msk.f32.mxu1 %vm3623_vm4, %v11883_v49  ;;  %v13176_v49 = vld [vmem:[#allocation68_spill] sm:$0xff] }
 0x3b8   : > { %9216 = vmatmul.mubr.msk.f32.gmra.mrb[38].mxu1 %vm3623_vm4, %v11885_v5  ;;  %v13177_v5 = vld [vmem:[#allocation9_spill] sm:$0xff] }
 0x3b9   : > { %9218 = vmatprep.mubr.msk.f32.mxu1 %vm3623_vm4, %v11914_v13  ;;  %v13180_v13 = vld [vmem:[#allocation69_spill] sm:$0xff] }
 0x3bc   : > { %9219 = vmatmul.mubr.msk.f32.gmra.mrb[40].mxu1 %vm3623_vm4, %v11916_v28  ;;  %v13181_v28 = vld [vmem:[#allocation11_spill] sm:$0xff] }
 0x3bd   : > { %9221 = vmatprep.mubr.msk.f32.mxu1 %vm3623_vm4, %v11942_v16  ;;  %v5451_v16 = vrot.slane %v3761_v17, 2 }
 0x3c0   : > { %9222 = vmatmul.mubr.msk.f32.gmra.mrb[42].mxu1 %vm3623_vm4, %v11944_v61  ;;  %v13183_v61 = vld [vmem:[#allocation39_spill] sm:$0xff] }
 0x3c1   : > { %9224 = vmatprep.mubr.msk.f32.mxu1 %vm3623_vm4, %v3760_v31 }
 0x3c4   : > { %9225 = vmatmul.mubr.msk.f32.gmra.mrb[44].mxu1 %vm3623_vm4, %v3761_v17 }
 0x3c5   : > { %9229 = vmatprep.mubr.msk.f32.mxu1 %vm3623_vm4, %v11771_v63  ;;  %v5278_v63 = vrot.slane %v3760_v31, 1 }
 0x3c8   : > { %9230 = vmatmul.mubr.msk.f32.vlgmr.msra.gmra.mrb[30].mxu1 %vm3623_vm4, %v11774_v4  ;;  %v5279_v4 = vrot.slane %v3761_v17, 1 }
 0x3c9   : > { %9254 = vmatpush3.msra.mxu1 %v7897_v20  ;;  %9232 = vmatprep.mubr.msk.f32.mxu1 %vm3623_vm4, %v11802_v33  ;;  %v3762_v33 = vld [vmem:[#allocation2 + $0x190] sm:$0x3] }
 0x3ca   : > { %9468 = vmatprep.subr.bf16.mxu1 %v9467_v38  ;;  %v5453_v34 = vrot.slane %v3762_v33, 2 }
 0x3cc   : > { %9233 = vmatmul.mubr.msk.f32.gmra.mrb[32].mxu1 %vm3623_vm4, %v11805_v9  ;;  %v5281_v9 = vrot.slane %v3762_v33, 1  ;;  %v5454_v51 = vsel %vm1148_vm3, %v5451_v16, %v5453_v34 }
 0x3cd   : > { %9235 = vmatprep.mubr.msk.f32.mxu1 %vm3623_vm4, %v11833_v44  ;;  %v5280_v44 = vsel %vm479_vm1, %v5278_v63, %v5279_v4 }
 0x3d0   : > { %9236 = vmatmul.mubr.msk.f32.gmra.mrb[34].mxu1 %vm3623_vm4, %v11836_v42  ;;  %v5282_v42 = vsel %vm479_vm1, %v5279_v4, %v5281_v9 }
 0x3d1   : > { %9238 = vmatprep.mubr.msk.f32.mxu1 %vm3623_vm4, %v11864_v22  ;;  %v13174_v22 = vld [vmem:[#allocation8_spill] sm:$0xff] }
 0x3d4   : > { %9239 = vmatmul.mubr.msk.f32.gmra.mrb[36].mxu1 %vm3623_vm4, %v11867_v43  ;;  %v13175_v43 = vld [vmem:[#allocation33_spill] sm:$0xff] }
 0x3d5   : > { %9241 = vmatprep.mubr.msk.f32.mxu1 %vm3623_vm4, %v11895_v45  ;;  %v13178_v45 = vld [vmem:[#allocation10_spill] sm:$0xff] }
 0x3d8   : > { %9242 = vmatmul.mubr.msk.f32.gmra.mrb[38].mxu1 %vm3623_vm4, %v11898_v54  ;;  %v13179_v54 = vld [vmem:[#allocation36_spill] sm:$0xff] }
 0x3d9   : > { %9244 = vmatprep.mubr.msk.f32.mxu1 %vm3623_vm4, %v11926_v6  ;;  %v13182_v6 = vld [vmem:[#allocation12_spill] sm:$0xff] }
 0x3dc   : > { %9245 = vmatmul.mubr.msk.f32.gmra.mrb[40].mxu1 %vm3623_vm4, %v11929_v1  ;;  %v5450_v1 = vrot.slane %v3760_v31, 2 }
 0x3dd   : > { %9247 = vmatprep.mubr.msk.f32.mxu1 %vm3623_vm4, %v11951_v58  ;;  %v13184_v58 = vld [vmem:[#allocation70_spill] sm:$0xff] }
 0x3de   : > { %v5452_v46 = vsel %vm1148_vm3, %v5450_v1, %v5451_v16 }
 0x3e0   : > { %9248 = vmatmul.mubr.msk.f32.gmra.mrb[42].mxu1 %vm3623_vm4, %v13171_v52 }
 0x3e1   : > { %9250 = vmatprep.mubr.msk.f32.mxu1 %vm3623_vm4, %v5280_v44 }
 0x3e4   : > { %9251 = vmatmul.mubr.msk.f32.gmra.mrb[44].mxu1 %vm3623_vm4, %v5282_v42 }
 0x3e5   : > { %9255 = vmatprep.mubr.msk.f32.mxu1 %vm3623_vm4, %v13172_v41 }
 0x3e8   : > { %9256 = vmatmul.mubr.msk.f32.vlgmr.msra.gmra.mrb[30].mxu1 %vm3623_vm4, %v13173_v19 }
 0x3e9   : > { %9258 = vmatprep.mubr.msk.f32.mxu1 %vm3623_vm4, %v13174_v22  ;;  %9470 = vmatpush3.bf16.msra.mxu1 %v9467_v38 }
 0x3ea   : > { %9472 = vmatprep.subr.bf16.mxu1 %v9471_v26 }
 0x3ec   : > { %9259 = vmatmul.mubr.msk.f32.gmra.mrb[32].mxu1 %vm3623_vm4, %v13175_v43 }
 0x3ed   : > { %9261 = vmatprep.mubr.msk.f32.mxu1 %vm3623_vm4, %v13176_v49 }
 0x3f0   : > { %9262 = vmatmul.mubr.msk.f32.gmra.mrb[34].mxu1 %vm3623_vm4, %v13177_v5 }
 0x3f1   : > { %9264 = vmatprep.mubr.msk.f32.mxu1 %vm3623_vm4, %v13178_v45 }
 0x3f4   : > { %9265 = vmatmul.mubr.msk.f32.gmra.mrb[36].mxu1 %vm3623_vm4, %v13179_v54 }
 0x3f5   : > { %9267 = vmatprep.mubr.msk.f32.mxu1 %vm3623_vm4, %v13180_v13 }
 0x3f8   : > { %9268 = vmatmul.mubr.msk.f32.gmra.mrb[38].mxu1 %vm3623_vm4, %v13181_v28 }
 0x3f9   : > { %9270 = vmatprep.mubr.msk.f32.mxu1 %vm3623_vm4, %v13182_v6 }
 0x3fc   : > { %9271 = vmatmul.mubr.msk.f32.gmra.mrb[40].mxu1 %vm3623_vm4, %v13183_v61 }
 0x3fd   : > { %9273 = vmatprep.mubr.msk.f32.mxu1 %vm3623_vm4, %v13184_v58 }
 0x400   : > { %9274 = vmatmul.mubr.msk.f32.gmra.mrb[42].mxu1 %vm3623_vm4, %v13185_v57 }
 0x401   : > { %9276 = vmatprep.mubr.msk.f32.mxu1 %vm3623_vm4, %v5452_v46 }
 0x404   : > { %9277 = vmatmul.mubr.msk.f32.gmra.mrb[44].mxu1 %vm3623_vm4, %v5454_v51 }
 0x405   : > { %9283 = vmatprep.mubr.msk.f32.mxu1 %vm5661_vm6, %v5753_v8 }
 0x408   : > { %9284 = vmatmul.mubr.msk.f32.vlgmr.msra.gmra.mrb[46].mxu1 %vm5661_vm6, %v5755_v14 }
 0x409   : > { %9474 = vmatpush3.bf16.msra.mxu1 %v9471_v26 }
 0x40a   : > { %9476 = vmatprep.subr.bf16.mxu1 %v12484_v0 }
 0x4bb   : > { %v9257_v18 = vpop.f32.mrb[30].mxu1 }
 0x4bc   : > { %v5630_v12 = vadd.f32 %v9257_v18, %v12490_v60  ;;  %v5527_v35 = vpop.f32.mrb[31].mxu1 }
 0x4bd   : > { %v5629_v47 = vadd.f32 %v12490_v60, %v5527_v35 }
 0x4be   : > { %v5646_v48 = vmax.f32 %v5630_v12, 0.0 }
 0x4bf   : > { %v5645_v10 = vmax.f32 %v5629_v47, 0.0  ;;  %v9260_v24 = vpop.f32.mrb[32].mxu1 }
 0x4c0   : > { %5695 = vst.msk [vmem:[#allocation3 + $0x21] sm:$0xff] %vm5661_vm6, %v5646_v48  ;;  %v5632_v32 = vadd.f32 %v9260_v24, %v12490_v60  ;;  %v5537_v2 = vpop.f32.mrb[33].mxu1 }
 0x4c1   : > { %5694 = vst.msk [vmem:[#allocation3 + $0x19] sm:$0xff] %vm5661_vm6, %v5645_v10  ;;  %v5631_v25 = vadd.f32 %v12490_v60, %v5537_v2 }
 0x4c2   : > { %v5648_v40 = vmax.f32 %v5632_v32, 0.0 }
 0x4c3   : > { %v5647_v53 = vmax.f32 %v5631_v25, 0.0  ;;  %v9263_v3 = vpop.f32.mrb[34].mxu1 }
 0x4c4   : > { %5697 = vst.msk [vmem:[#allocation3 + $0x39] sm:$0xff] %vm5661_vm6, %v5648_v40  ;;  %v5634_v23 = vadd.f32 %v9263_v3, %v12490_v60  ;;  %v5547_v62 = vpop.f32.mrb[35].mxu1  ;;  %v7943_v3 = vld [vmem:[%s12919_s5 + $0x30] sm:$0xff] }
 0x4c5   : > { %5696 = vst.msk [vmem:[#allocation3 + $0x31] sm:$0xff] %vm5661_vm6, %v5647_v53  ;;  %v5633_v50 = vadd.f32 %v12490_v60, %v5547_v62 }
 0x4c6   : > { %v5650_v20 = vmax.f32 %v5634_v23, 0.0  ;;  %v7944_v23 = vld [vmem:[%s12919_s5 + $0x38] sm:$0xff] }
 0x4c7   : > { %v5649_v31 = vmax.f32 %v5633_v50, 0.0  ;;  %v9266_v17 = vpop.f32.mrb[36].mxu1  ;;  %v9479_v62 = vpack.c.bf16 %v7944_v23, %v7943_v3  ;;  %v6016_v50 = vrot.slane %v12459_v15, 2 }
 0x4c8   : > { %5699 = vst.msk [vmem:[#allocation3 + $0x51] sm:$0xff] %vm5661_vm6, %v5650_v20  ;;  %v5636_v37 = vadd.f32 %v9266_v17, %v12490_v60  ;;  %v5557_v7 = vpop.f32.mrb[37].mxu1  ;;  %v6017_v20 = vrot.slane %v12461_v11, 2  ;;  %v7953_v17 = vld [vmem:[%s12919_s5 + $0x40] sm:$0xff] }
 0x4c9   : > { %5698 = vst.msk [vmem:[#allocation3 + $0x49] sm:$0xff] %vm5661_vm6, %v5649_v31  ;;  %v5635_v38 = vadd.f32 %v12490_v60, %v5557_v7 }
 0x4ca   : > { %v5652_v63 = vmax.f32 %v5636_v37, 0.0  ;;  %v6018_v31 = vsel %vm1148_vm3, %v6016_v50, %v6017_v20 }
 0x4cb   : > { %v5651_v4 = vmax.f32 %v5635_v38, 0.0  ;;  %v9269_v33 = vpop.f32.mrb[38].mxu1  ;;  %v12506_v9 = vld [vmem:[#allocation3 + $0x40] sm:$0x3] }
 0x4cc   : > { %5701 = vst.msk [vmem:[#allocation3 + $0x69] sm:$0xff] %vm5661_vm6, %v5652_v63  ;;  %v5638_v52 = vadd.f32 %v9269_v33, %v12490_v60  ;;  %v5567_v44 = vpop.f32.mrb[39].mxu1  ;;  %v12510_v42 = vld [vmem:[#allocation3 + $0x30] sm:$0xff]  ;;  %v12512_v41 = vld [vmem:[#allocation3 + $0x38] sm:$0xff]  ;;  %v5759_v19 = vrot.slane %v12506_v9, 1  ;;  %v6024_v38 = vrot.slane %v12506_v9, 2 }
 0x4cd   : > { %5700 = vst.msk [vmem:[#allocation3 + $0x61] sm:$0xff] %vm5661_vm6, %v5651_v4  ;;  %v5637_v22 = vadd.f32 %v12490_v60, %v5567_v44  ;;  %v5756_v43 = vrot.slane %v12510_v42, 1  ;;  %v5757_v49 = vrot.slane %v12512_v41, 1  ;;  %v6022_v37 = vrot.slane %v12512_v41, 2 }
 0x4ce   : > { %v5654_v5 = vmax.f32 %v5638_v52, 0.0 }
 0x4cf   : > { %v5653_v45 = vmax.f32 %v5637_v22, 0.0  ;;  %v9272_v54 = vpop.f32.mrb[40].mxu1  ;;  %v12520_v13 = vsel %vm479_vm1, %v5756_v43, %v5757_v49  ;;  %v12523_v28 = vsel %vm479_vm1, %v5757_v49, %v5759_v19  ;;  %v12625_v52 = vsel %vm1148_vm3, %v6022_v37, %v6024_v38 }
 0x4d0   : > { %5703 = vst.msk [vmem:[#allocation3 + $0x81] sm:$0xff] %vm5661_vm6, %v5654_v5  ;;  %v5640_v6 = vadd.f32 %v9272_v54, %v12490_v60  ;;  %v5577_v1 = vpop.f32.mrb[41].mxu1  ;;  %9286 = vmatprep.mubr.msk.f32.mxu1 %vm5661_vm6, %v12520_v13  ;;  %v7963_v54 = vld [vmem:[%s12919_s5 + $0x50] sm:$0xff] }
 0x4d1   : > { %5702 = vst.msk [vmem:[#allocation3 + $0x79] sm:$0xff] %vm5661_vm6, %v5653_v45  ;;  %v5639_v16 = vadd.f32 %v12490_v60, %v5577_v1  ;;  %9287 = vmatmul.mubr.msk.f32.gmra.mrb[48].mxu1 %vm5661_vm6, %v12523_v28  ;;  %v12658_v1 = vld [vmem:[#allocation3 + $0x18] sm:$0xff] }
 0x4d2   : > { %v5656_v61 = vmax.f32 %v5640_v6, 0.0  ;;  %v7964_v6 = vld [vmem:[%s12919_s5 + $0x58] sm:$0xff] }
 0x4d3   : > { %v5655_v58 = vmax.f32 %v5639_v16, 0.0  ;;  %v9275_v34 = vpop.f32.mrb[42].mxu1  ;;  %v12533_v57 = vld [vmem:[#allocation3 + $0x70] sm:$0x3]  ;;  %v9487_v16 = vpack.c.bf16 %v7964_v6, %v7963_v54 }
 0x4d4   : > { %5705 = vst.msk [vmem:[#allocation3 + $0x99] sm:$0xff] %vm5661_vm6, %v5656_v61  ;;  %v5642_v46 = vadd.f32 %v9275_v34, %v12490_v60  ;;  %v5587_v51 = vpop.f32.mrb[43].mxu1  ;;  %v12537_v27 = vld [vmem:[#allocation3 + $0x60] sm:$0xff]  ;;  %v12539_v55 = vld [vmem:[#allocation3 + $0x68] sm:$0xff]  ;;  %v5764_v30 = vrot.slane %v12533_v57, 1  ;;  %v6029_v44 = vrot.slane %v12533_v57, 2 }
 0x4d5   : > { %5704 = vst.msk [vmem:[#allocation3 + $0x91] sm:$0xff] %vm5661_vm6, %v5655_v58  ;;  %v5641_v36 = vadd.f32 %v12490_v60, %v5587_v51  ;;  %v5761_v8 = vrot.slane %v12537_v27, 1  ;;  %v5762_v14 = vrot.slane %v12539_v55, 1  ;;  %v6026_v4 = vrot.slane %v12537_v27, 2  ;;  %v12662_v61 = vld [vmem:[#allocation3 + $0x20] sm:$0xff]  ;;  %v12666_v58 = vld [vmem:[#allocation3 + $0x48] sm:$0xff] }
 0x4d6   : > { %v5658_v56 = vmax.f32 %v5642_v46, 0.0  ;;  %v6027_v33 = vrot.slane %v12539_v55, 2  ;;  %v12670_v34 = vld [vmem:[#allocation3 + $0x50] sm:$0xff]  ;;  %v6312_v51 = vrot.slane %v12658_v1, 1 }
 0x4d7   : > { %v5657_v59 = vmax.f32 %v5641_v36, 0.0  ;;  %v9278_v26 = vpop.f32.mrb[44].mxu1  ;;  %v12547_v39 = vsel %vm479_vm1, %v5761_v8, %v5762_v14  ;;  %v12550_v29 = vsel %vm479_vm1, %v5762_v14, %v5764_v30  ;;  %v6313_v36 = vrot.slane %v12662_v61, 1  ;;  %v5715_v8 = vld [vmem:[#allocation3 + $0x28] sm:$0x3] }
 0x4d8   : > { %5707 = vst.msk [vmem:[#allocation3 + $0xb1] sm:$0xff] %vm5661_vm6, %v5658_v56  ;;  %v5644_v18 = vadd.f32 %v9278_v26, %v12490_v60  ;;  %v5597_v12 = vpop.f32.mrb[45].mxu1  ;;  %9289 = vmatprep.mubr.msk.f32.mxu1 %vm5661_vm6, %v12547_v39  ;;  %v12631_v9 = vsel %vm1148_vm3, %v6026_v4, %v6027_v33  ;;  %v12638_v43 = vsel %vm1148_vm3, %v6027_v33, %v6029_v44  ;;  %v12674_v57 = vld [vmem:[#allocation3 + $0x78] sm:$0xff]  ;;  %v12678_v46 = vld [vmem:[#allocation3 + $0x80] sm:$0xff]  ;;  %v6315_v56 = vrot.slane %v5715_v8, 1  ;;  %v7974_v26 = vld [vmem:[%s12919_s5 + $0x68] sm:$0xff] }
 0x4d9   : > { %5706 = vst.msk [vmem:[#allocation3 + $0xa9] sm:$0xff] %vm5661_vm6, %v5657_v59  ;;  %v5643_v35 = vadd.f32 %v12490_v60, %v5597_v12  ;;  %9290 = vmatmul.mubr.msk.f32.gmra.mrb[50].mxu1 %vm5661_vm6, %v12550_v29  ;;  %v7973_v59 = vld [vmem:[%s12919_s5 + $0x60] sm:$0xff]  ;;  %v6318_v12 = vrot.slane %v12670_v34, 1  ;;  %v5727_v23 = vld [vmem:[#allocation3 + $0x88] sm:$0x3]  ;;  %v6467_v4 = vrot.slane %v5715_v8, 2 }
 0x4da   : > { %v5660_v47 = vmax.f32 %v5644_v18, 0.0  ;;  %v6317_v18 = vrot.slane %v12666_v58, 1  ;;  %v6325_v50 = vrot.slane %v5727_v23, 1  ;;  %v7983_v33 = vld [vmem:[%s12919_s5 + $0x70] sm:$0xff]  ;;  %v7984_v44 = vld [vmem:[%s12919_s5 + $0x78] sm:$0xff] }
 0x4db   : > { %v5659_v48 = vmax.f32 %v5643_v35, 0.0  ;;  %v5730_v10 = vld [vmem:[#allocation3 + $0xa0] sm:$0x3]  ;;  %v6314_v35 = vsel %vm479_vm1, %v6312_v51, %v6313_v36  ;;  %v9495_v54 = vpack.c.bf16 %v7984_v44, %v7983_v33  ;;  %v6477_v51 = vrot.slane %v5727_v23, 2 }
 0x4dc   : > { %5709 = vst.msk [vmem:[#allocation3 + $0xc9] sm:$0xff] %vm5661_vm6, %v5660_v47  ;;  %v12561_v24 = vld [vmem:[#allocation3 + $0x90] sm:$0xff]  ;;  %v12563_v32 = vld [vmem:[#allocation3 + $0x98] sm:$0xff]  ;;  %v5769_v2 = vrot.slane %v5730_v10, 1  ;;  %v6034_v49 = vrot.slane %v5730_v10, 2  ;;  %v6316_v10 = vsel %vm479_vm1, %v6313_v36, %v6315_v56  ;;  %v6319_v3 = vsel %vm479_vm1, %v6317_v18, %v6318_v12 }
 0x4dd   : > { %5708 = vst.msk [vmem:[#allocation3 + $0xc1] sm:$0xff] %vm5661_vm6, %v5659_v48  ;;  %v5766_v25 = vrot.slane %v12561_v24, 1  ;;  %v5767_v40 = vrot.slane %v12563_v32, 1  ;;  %v6031_v19 = vrot.slane %v12561_v24, 2  ;;  %v6032_v22 = vrot.slane %v12563_v32, 2 }
 0x4de   : > { %v5721_v47 = vld [vmem:[#allocation3 + $0x58] sm:$0x3]  ;;  %v9491_v48 = vpack.c.bf16 %v7974_v26, %v7973_v59 }
 0x4df   : > { %v12569_v60 = vsel %vm479_vm1, %v5766_v25, %v5767_v40  ;;  %v12572_v53 = vsel %vm479_vm1, %v5767_v40, %v5769_v2  ;;  %v12643_v5 = vsel %vm1148_vm3, %v6031_v19, %v6032_v22  ;;  %v12648_v45 = vsel %vm1148_vm3, %v6032_v22, %v6034_v49 }
 0x4e0   : > { %9292 = vmatprep.mubr.msk.f32.mxu1 %vm5661_vm6, %v12569_v60  ;;  %v12683_v30 = vld [vmem:[#allocation3 + $0xa8] sm:$0xff]  ;;  %v12688_v14 = vld [vmem:[#allocation3 + $0xb0] sm:$0xff]  ;;  %v6320_v2 = vrot.slane %v5721_v47, 1  ;;  %v6322_v25 = vrot.slane %v12674_v57, 1  ;;  %v6323_v40 = vrot.slane %v12678_v46, 1  ;;  %v6469_v19 = vrot.slane %v12666_v58, 2 }
 0x4e1   : > { %9293 = vmatmul.mubr.msk.f32.gmra.mrb[52].mxu1 %vm5661_vm6, %v12572_v53  ;;  %v6470_v22 = vrot.slane %v12670_v34, 2  ;;  %v6479_v36 = vrot.slane %v12683_v30, 2  ;;  %v6480_v8 = vrot.slane %v12688_v14, 2 }
 0x4e2   : > { %9299 = vmatprep.mubr.msk.f32.mxu1 %vm5661_vm6, %v12459_v15  ;;  %v7954_v15 = vld [vmem:[%s12919_s5 + $0x48] sm:$0xff] }
 0x4e3   : > { %v9483_v7 = vpack.c.bf16 %v7954_v15, %v7953_v17  ;;  %v5733_v17 = vld [vmem:[#allocation3 + $0xb8] sm:$0x3]  ;;  %v6326_v15 = vsel %vm479_vm1, %v6323_v40, %v6325_v50  ;;  %v6481_v59 = vsel %vm1148_vm3, %v6479_v36, %v6480_v8 }
 0x4e4   : > { %v6482_v56 = vrot.slane %v5733_v17, 2 }
 0x4e5   : > { %9300 = vmatmul.mubr.msk.f32.vlgmr.msra.gmra.mrb[46].mxu1 %vm5661_vm6, %v12461_v11  ;;  %v6021_v11 = vrot.slane %v12510_v42, 2 }
 0x4e6   : > { %9478 = vmatpush3.bf16.msra.mxu1 %v12484_v0  ;;  %9302 = vmatprep.mubr.msk.f32.mxu1 %vm5661_vm6, %v12510_v42  ;;  %v6019_v0 = vrot.slane %v12465_v21, 2  ;;  %v6483_v26 = vsel %vm1148_vm3, %v6480_v8, %v6482_v56  ;;  %v8020_v8 = vld [vmem:[%s12921_s7 + $0x70] sm:$0xff] }
 0x4e7   : > { %9480 = vmatprep.subr.bf16.mxu1 %v9479_v62  ;;  %v12618_v63 = vsel %vm1148_vm3, %v6021_v11, %v6022_v37  ;;  %v6330_v11 = vrot.slane %v5733_v17, 1  ;;  %v6464_v37 = vrot.slane %v12658_v1, 2 }
 0x4e8   : > { %v6020_v21 = vsel %vm1148_vm3, %v6017_v20, %v6019_v0  ;;  %v6327_v20 = vrot.slane %v12683_v30, 1  ;;  %v6328_v0 = vrot.slane %v12688_v14, 1 }
 0x4e9   : > { %9303 = vmatmul.mubr.msk.f32.gmra.mrb[48].mxu1 %vm5661_vm6, %v12512_v41 }
 0x4ea   : > { %9305 = vmatprep.mubr.msk.f32.mxu1 %vm5661_vm6, %v12537_v27  ;;  %v6331_v38 = vsel %vm479_vm1, %v6328_v0, %v6330_v11 }
 0x4ed   : > { %9306 = vmatmul.mubr.msk.f32.gmra.mrb[50].mxu1 %vm5661_vm6, %v12539_v55 }
 0x4ee   : > { %9308 = vmatprep.mubr.msk.f32.mxu1 %vm5661_vm6, %v12561_v24 }
 0x4f1   : > { %9309 = vmatmul.mubr.msk.f32.gmra.mrb[52].mxu1 %vm5661_vm6, %v12563_v32 }
 0x4f2   : > { %9315 = vmatprep.mubr.msk.f32.mxu1 %vm5661_vm6, %v6018_v31  ;;  %v6324_v31 = vsel %vm479_vm1, %v6322_v25, %v6323_v40  ;;  %v8003_v25 = vld [vmem:[%s12920_s6] ss:$0 sm:$0xff] }
 0x4f5   : > { %9316 = vmatmul.mubr.msk.f32.vlgmr.msra.gmra.mrb[46].mxu1 %vm5661_vm6, %v6020_v21  ;;  %v6329_v21 = vsel %vm479_vm1, %v6327_v20, %v6328_v0  ;;  %v7014_v20 = vld [vmem:[%s12921_s7 + $0x10] sm:$0xff]  ;;  %v7015_v0 = vld [vmem:[%s12921_s7 + $0x18] sm:$0xff] }
 0x4f6   : > { %9482 = vmatpush3.bf16.msra.mxu1 %v9479_v62  ;;  %9318 = vmatprep.mubr.msk.f32.mxu1 %vm5661_vm6, %v12618_v63  ;;  %v6321_v62 = vsel %vm479_vm1, %v6318_v12, %v6320_v2  ;;  %v5734_v12 = vld [vmem:[#allocation3 + $0xc0] sm:$0xff] }
 0x4f7   : > { %9484 = vmatprep.subr.bf16.mxu1 %v9483_v7 }
 0x4f9   : > { %9319 = vmatmul.mubr.msk.f32.gmra.mrb[48].mxu1 %vm5661_vm6, %v12625_v52 }
 0x4fa   : > { %9321 = vmatprep.mubr.msk.f32.mxu1 %vm5661_vm6, %v12631_v9 }
 0x4fd   : > { %9322 = vmatmul.mubr.msk.f32.gmra.mrb[50].mxu1 %vm5661_vm6, %v12638_v43 }
 0x4fe   : > { %9324 = vmatprep.mubr.msk.f32.mxu1 %vm5661_vm6, %v12643_v5 }
 0x501   : > { %9325 = vmatmul.mubr.msk.f32.gmra.mrb[52].mxu1 %vm5661_vm6, %v12648_v45 }
 0x502   : > { %9331 = vmatprep.mubr.msk.f32.mxu1 %vm5661_vm6, %v12658_v1  ;;  %v6472_v1 = vrot.slane %v5721_v47, 2 }
 0x505   : > { %9332 = vmatmul.mubr.msk.f32.vlgmr.msra.gmra.mrb[46].mxu1 %vm5661_vm6, %v12662_v61 }
 0x506   : > { %9486 = vmatpush3.bf16.msra.mxu1 %v9483_v7  ;;  %9334 = vmatprep.mubr.msk.f32.mxu1 %vm5661_vm6, %v12666_v58  ;;  %v6465_v7 = vrot.slane %v12662_v61, 2  ;;  %v6475_v61 = vrot.slane %v12678_v46, 2  ;;  %v6471_v58 = vsel %vm1148_vm3, %v6469_v19, %v6470_v22 }
 0x507   : > { %9488 = vmatprep.subr.bf16.mxu1 %v9487_v16 }
 0x508   : > { %v6466_v49 = vsel %vm1148_vm3, %v6464_v37, %v6465_v7  ;;  %v6468_v6 = vsel %vm1148_vm3, %v6465_v7, %v6467_v4  ;;  %v9515_v37 = vpack.c.bf16 %v7015_v0, %v7014_v20  ;;  %v8012_v7 = vld [vmem:[%s12921_s7 + $0x40] sm:$0xff] }
 0x509   : > { %9335 = vmatmul.mubr.msk.f32.gmra.mrb[48].mxu1 %vm5661_vm6, %v12670_v34  ;;  %v6473_v34 = vsel %vm1148_vm3, %v6470_v22, %v6472_v1 }
 0x50a   : > { %9337 = vmatprep.mubr.msk.f32.mxu1 %vm5661_vm6, %v12674_v57 }
 0x50d   : > { %9338 = vmatmul.mubr.msk.f32.gmra.mrb[50].mxu1 %vm5661_vm6, %v12678_v46  ;;  %v6478_v46 = vsel %vm1148_vm3, %v6475_v61, %v6477_v51 }
 0x50e   : > { %9340 = vmatprep.mubr.msk.f32.mxu1 %vm5661_vm6, %v12683_v30  ;;  %v7993_v30 = vld [vmem:[%s12919_s5 + $0x80] sm:$0xff] }
 0x511   : > { %9341 = vmatmul.mubr.msk.f32.gmra.mrb[52].mxu1 %vm5661_vm6, %v12688_v14  ;;  %v7994_v14 = vld [vmem:[%s12919_s5 + $0x88] sm:$0xff] }
 0x512   : > { %9347 = vmatprep.mubr.msk.f32.mxu1 %vm5661_vm6, %v6314_v35  ;;  %v9499_v18 = vpack.c.bf16 %v7994_v14, %v7993_v30  ;;  %v5736_v35 = vld [vmem:[#allocation3 + $0xd0] sm:$0x3]  ;;  %v8024_v14 = vld [vmem:[%s12922_s8] ss:$0 sm:$0xff] }
 0x513   : > { %v6742_v47 = vrot.slane %v5736_v35, 1 }
 0x515   : > { %9348 = vmatmul.mubr.msk.f32.vlgmr.msra.gmra.mrb[46].mxu1 %vm5661_vm6, %v6316_v10 }
 0x516   : > { %9490 = vmatpush3.bf16.msra.mxu1 %v9487_v16  ;;  %9350 = vmatprep.mubr.msk.f32.mxu1 %vm5661_vm6, %v6319_v3  ;;  %v6474_v16 = vrot.slane %v12674_v57, 2 }
 0x517   : > { %9492 = vmatprep.subr.bf16.mxu1 %v9491_v48 }
 0x518   : > { %v6476_v57 = vsel %vm1148_vm3, %v6474_v16, %v6475_v61  ;;  %v8018_v61 = vld [vmem:[%s12921_s7 + $0x60] sm:$0xff] }
 0x519   : > { %9351 = vmatmul.mubr.msk.f32.gmra.mrb[48].mxu1 %vm5661_vm6, %v6321_v62 }
 0x51a   : > { %9353 = vmatprep.mubr.msk.f32.mxu1 %vm5661_vm6, %v6324_v31 }
 0x51d   : > { %9354 = vmatmul.mubr.msk.f32.gmra.mrb[50].mxu1 %vm5661_vm6, %v6326_v15 }
 0x51e   : > { %9356 = vmatprep.mubr.msk.f32.mxu1 %vm5661_vm6, %v6329_v21 }
 0x521   : > { %9357 = vmatmul.mubr.msk.f32.gmra.mrb[52].mxu1 %vm5661_vm6, %v6331_v38  ;;  %v8013_v38 = vld [vmem:[%s12921_s7 + $0x48] sm:$0xff] }
 0x522   : > { %9363 = vmatprep.mubr.msk.f32.mxu1 %vm5661_vm6, %v6466_v49  ;;  %v9519_v19 = vpack.c.bf16 %v8013_v38, %v8012_v7  ;;  %v8014_v49 = vld [vmem:[%s12921_s7 + $0x50] sm:$0xff] }
 0x525   : > { %9364 = vmatmul.mubr.msk.f32.vlgmr.msra.gmra.mrb[46].mxu1 %vm5661_vm6, %v6468_v6 }
 0x526   : > { %9494 = vmatpush3.bf16.msra.mxu1 %v9491_v48  ;;  %9366 = vmatprep.mubr.msk.f32.mxu1 %vm5661_vm6, %v6471_v58  ;;  %v8019_v58 = vld [vmem:[%s12921_s7 + $0x68] sm:$0xff] }
 0x527   : > { %9496 = vmatprep.subr.bf16.mxu1 %v9495_v54  ;;  %v9527_v51 = vpack.c.bf16 %v8019_v58, %v8018_v61 }
 0x529   : > { %9367 = vmatmul.mubr.msk.f32.gmra.mrb[48].mxu1 %vm5661_vm6, %v6473_v34 }
 0x52a   : > { %9369 = vmatprep.mubr.msk.f32.mxu1 %vm5661_vm6, %v6476_v57  ;;  %v8021_v57 = vld [vmem:[%s12921_s7 + $0x78] sm:$0xff] }
 0x52b   : > { %v9531_v56 = vpack.c.bf16 %v8021_v57, %v8020_v8 }
 0x52d   : > { %9370 = vmatmul.mubr.msk.f32.gmra.mrb[50].mxu1 %vm5661_vm6, %v6478_v46 }
 0x52e   : > { %9372 = vmatprep.mubr.msk.f32.mxu1 %vm5661_vm6, %v6481_v59 }
 0x531   : > { %9373 = vmatmul.mubr.msk.f32.gmra.mrb[52].mxu1 %vm5661_vm6, %v6483_v26 }
 0x532   : > { %9379 = vmatprep.mubr.msk.f32.mxu1 %vm5661_vm6, %v12510_v42  ;;  %v5735_v42 = vld [vmem:[#allocation3 + $0xc8] sm:$0xff] }
 0x535   : > { %9380 = vmatmul.mubr.msk.f32.vlgmr.msra.gmra.mrb[46].mxu1 %vm5661_vm6, %v12512_v41  ;;  %v8004_v41 = vld [vmem:[%s12921_s7 + $0x20] sm:$0xff] }
 0x536   : > { %9498 = vmatpush3.bf16.msra.mxu1 %v9495_v54  ;;  %9382 = vmatprep.mubr.msk.f32.mxu1 %vm5661_vm6, %v12537_v27  ;;  %v8005_v27 = vld [vmem:[%s12921_s7 + $0x28] sm:$0xff]  ;;  %v8015_v54 = vld [vmem:[%s12921_s7 + $0x58] sm:$0xff] }
 0x537   : > { %9500 = vmatprep.subr.bf16.mxu1 %v9499_v18  ;;  %v9523_v1 = vpack.c.bf16 %v8015_v54, %v8014_v49 }
 0x539   : > { %9383 = vmatmul.mubr.msk.f32.gmra.mrb[48].mxu1 %vm5661_vm6, %v12539_v55  ;;  %v9503_v55 = vpack.c.bf16 %v8005_v27, %v8004_v41 }
 0x53a   : > { %9385 = vmatprep.mubr.msk.f32.mxu1 %vm5661_vm6, %v12561_v24  ;;  %v6739_v24 = vrot.slane %v5734_v12, 1 }
 0x53d   : > { %9386 = vmatmul.mubr.msk.f32.gmra.mrb[50].mxu1 %vm5661_vm6, %v12563_v32  ;;  %v6740_v32 = vrot.slane %v5735_v42, 1 }
 0x53e   : > { %9388 = vmatprep.mubr.msk.f32.mxu1 %vm5661_vm6, %v5734_v12 }
 0x541   : > { %9389 = vmatmul.mubr.msk.f32.gmra.mrb[52].mxu1 %vm5661_vm6, %v5735_v42 }
 0x542   : > { %9395 = vmatprep.mubr.msk.f32.mxu1 %vm5661_vm6, %v12520_v13  ;;  %v6741_v13 = vsel %vm479_vm1, %v6739_v24, %v6740_v32 }
 0x545   : > { %9396 = vmatmul.mubr.msk.f32.vlgmr.msra.gmra.mrb[46].mxu1 %vm5661_vm6, %v12523_v28  ;;  %v6743_v28 = vsel %vm479_vm1, %v6740_v32, %v6742_v47 }
 0x546   : > { %9502 = vmatpush3.bf16.msra.mxu1 %v9499_v18  ;;  %9398 = vmatprep.mubr.msk.f32.mxu1 %vm5661_vm6, %v12547_v39  ;;  %v6864_v39 = vrot.slane %v5734_v12, 2 }
 0x547   : > { %9504 = vmatprep.subr.bf16.mxu1 %v9503_v55 }
 0x549   : > { %9399 = vmatmul.mubr.msk.f32.gmra.mrb[48].mxu1 %vm5661_vm6, %v12550_v29  ;;  %v6865_v29 = vrot.slane %v5735_v42, 2 }
 0x54a   : > { %9401 = vmatprep.mubr.msk.f32.mxu1 %vm5661_vm6, %v12569_v60  ;;  %v6867_v60 = vrot.slane %v5736_v35, 2 }
 0x54d   : > { %9402 = vmatmul.mubr.msk.f32.gmra.mrb[50].mxu1 %vm5661_vm6, %v12572_v53  ;;  %v6866_v53 = vsel %vm1148_vm3, %v6864_v39, %v6865_v29 }
 0x54e   : > { %9404 = vmatprep.mubr.msk.f32.mxu1 %vm5661_vm6, %v6741_v13 }
 0x551   : > { %9405 = vmatmul.mubr.msk.f32.gmra.mrb[52].mxu1 %vm5661_vm6, %v6743_v28 }
 0x552   : > { %9411 = vmatprep.mubr.msk.f32.mxu1 %vm5661_vm6, %v12618_v63  ;;  %v6868_v63 = vsel %vm1148_vm3, %v6865_v29, %v6867_v60 }
 0x555   : > { %9412 = vmatmul.mubr.msk.f32.vlgmr.msra.gmra.mrb[46].mxu1 %vm5661_vm6, %v12625_v52  ;;  %v8006_v52 = vld [vmem:[%s12921_s7 + $0x30] sm:$0xff] }
 0x556   : > { %9414 = vmatprep.mubr.msk.f32.mxu1 %vm5661_vm6, %v12631_v9  ;;  %9506 = vmatpush3.bf16.msra.mxu1 %v9503_v55  ;;  %v8007_v9 = vld [vmem:[%s12921_s7 + $0x38] sm:$0xff] }
 0x559   : > { %9415 = vmatmul.mubr.msk.f32.gmra.mrb[48].mxu1 %vm5661_vm6, %v12638_v43  ;;  %v9507_v43 = vpack.c.bf16 %v8007_v9, %v8006_v52 }
 0x55a   : > { %9417 = vmatprep.mubr.msk.f32.mxu1 %vm5661_vm6, %v12643_v5  ;;  %v7012_v5 = vld [vmem:[%s12921_s7] sm:$0xff] }
 0x55b   : > { %9508 = vmatprep.subr.bf16.mxu1 %v9507_v43 }
 0x55c   : > { %9510 = vmatpush3.bf16.msra.mxu1 %v9507_v43 }
 0x55d   : > { %9418 = vmatmul.mubr.msk.f32.gmra.mrb[50].mxu1 %vm5661_vm6, %v12648_v45  ;;  %v7013_v45 = vld [vmem:[%s12921_s7 + $0x8] sm:$0xff] }
 0x55e   : > { %9420 = vmatprep.mubr.msk.f32.mxu1 %vm5661_vm6, %v6866_v53  ;;  %v9511_v48 = vpack.c.bf16 %v7013_v45, %v7012_v5 }
 0x560   : > { %9512 = vmatprep.subr.bf16.mxu1 %v9511_v48 }
 0x561   : > { %9421 = vmatmul.mubr.msk.f32.gmra.mrb[52].mxu1 %vm5661_vm6, %v6868_v63 }
 0x628   : > { %v9413_v10 = vpop.f32.mrb[46].mxu1 }
 0x629   : > { %v6942_v2 = vpop.f32.mrb[47].mxu1  ;;  %v6997_v33 = vadd.f32 %v9413_v10, %v8003_v25 }
 0x62a   : > { %v6996_v62 = vadd.f32 %v8003_v25, %v6942_v2 }
 0x62b   : > { %v7005_v6 = vmax.f32 %v6997_v33, 0.0 }
 0x62c   : > { %v9416_v40 = vpop.f32.mrb[48].mxu1  ;;  %v7004_v21 = vmax.f32 %v6996_v62, 0.0 }
 0x62d   : > { %v6999_v3 = vadd.f32 %v9416_v40, %v8003_v25  ;;  %v6952_v23 = vpop.f32.mrb[49].mxu1 }
 0x62e   : > { %v6998_v50 = vadd.f32 %v8003_v25, %v6952_v23 }
 0x62f   : > { %v7007_v15 = vmax.f32 %v6999_v3, 0.0 }
 0x630   : > { %v7006_v31 = vmax.f32 %v6998_v50, 0.0  ;;  %v9419_v17 = vpop.f32.mrb[50].mxu1 }
 0x631   : > { %v6962_v11 = vpop.f32.mrb[51].mxu1  ;;  %v7001_v34 = vadd.f32 %v9419_v17, %v8003_v25 }
 0x632   : > { %9431 = vmatprep.mubr.msk.f32.mxu1 %vm7021_vm8, %v7006_v31  ;;  %v7000_v22 = vadd.f32 %v8003_v25, %v6962_v11 }
 0x633   : > { %9432 = vmatmul.mubr.msk.f32.vlgmr.msra.gmra.mrb[54].mxu1 %vm7021_vm8, %v7007_v15  ;;  %v7009_v46 = vmax.f32 %v7001_v34, 0.0 }
 0x634   : > { %9514 = vmatpush3.bf16.msra.mxu1 %v9511_v48  ;;  %v9422_v4 = vpop.f32.mrb[52].mxu1  ;;  %9442 = vmatprep.mubr.msk.f32.mxu1 %vm7021_vm8, %v7004_v21  ;;  %v7008_v16 = vmax.f32 %v7000_v22, 0.0 }
 0x635   : > { %v6972_v44 = vpop.f32.mrb[53].mxu1  ;;  %9516 = vmatprep.subr.bf16.mxu1 %v9515_v37  ;;  %v7003_v26 = vadd.f32 %v9422_v4, %v8003_v25 }
 0x636   : > { %v7002_v36 = vadd.f32 %v8003_v25, %v6972_v44 }
 0x637   : > { %v7011_v30 = vmax.f32 %v7003_v26, 0.0 }
 0x638   : > { %9518 = vmatpush3.bf16.msra.mxu1 %v9515_v37  ;;  %v7010_v59 = vmax.f32 %v7002_v36, 0.0 }
 0x639   : > { %9520 = vmatprep.subr.bf16.mxu1 %v9519_v19 }
 0x63b   : > { %9443 = vmatmul.mubr.msk.f32.vlgmr.msra.gmra.mrb[54].mxu1 %vm7021_vm8, %v7005_v6 }
 0x63c   : > { %9522 = vmatpush3.bf16.msra.mxu1 %v9519_v19  ;;  %9453 = vmatprep.mubr.msk.f32.mxu1 %vm7021_vm8, %v7008_v16 }
 0x63d   : > { %9524 = vmatprep.subr.bf16.mxu1 %v9523_v1 }
 0x640   : > { %9526 = vmatpush3.bf16.msra.mxu1 %v9523_v1 }
 0x641   : > { %9528 = vmatprep.subr.bf16.mxu1 %v9527_v51 }
 0x643   : > { %9454 = vmatmul.mubr.msk.f32.vlgmr.msra.gmra.mrb[54].mxu1 %vm7021_vm8, %v7009_v46 }
 0x644   : > { %9530 = vmatpush3.bf16.msra.mxu1 %v9527_v51  ;;  %9464 = vmatprep.mubr.msk.f32.mxu1 %vm7021_vm8, %v7010_v59 }
 0x645   : > { %9532 = vmatprep.subr.bf16.mxu1 %v9531_v56 }
 0x648   : > { %9534 = vmatpush3.bf16.msra.mxu1 %v9531_v56 }
 0x64b   : > { %9465 = vmatmul.mubr.msk.f32.vlgmr.msra.gmra.mrb[54].mxu1 %vm7021_vm8, %v7011_v30 }
 0x71e   : > { %v9466_v18 = vpop.f32.mrb[54].mxu1 }
 0x71f   : > { %v7368_v12 = vadd.f32 %v9466_v18, %v8024_v14  ;;  %v7349_v42 = vpop.f32.mrb[55].mxu1 }
 0x720   : > { %v7367_v41 = vadd.f32 %v8024_v14, %v7349_v42 }
 0x721   : > { %v7370_v27 = vmax.f32 %v7368_v12, 0.0 }
 0x722   : > { %v7369_v55 = vmax.f32 %v7367_v41, 0.0 }
 0x723   : > { %7373 = vst.msk [vmem:[%s325_s21 + $0x8] sm:$0xff] %vm7371_vm9, %v7370_v27 }
 0x724   : > { %7372 = vst.msk [vmem:[%s325_s21] sm:$0xff] %vm7371_vm9, %v7369_v55 }
 0x725   : > { %10077 = shalt.err (!%p10074_p3)
}
 0x726   : > { %s10078_s28 = scalar_lea.hbm %s12871_s25, 256  ;;  %s10082_s29 = scalar_lea.hbm %s12923_s9, 512 }
 0x727   : > { %p10079_p4 = scmp.ne.s32.totalorder %s12871_s25, %s10078_s28  ;;  %p10083_p9 = scmp.lt.u32.totalorder %s12871_s25, %s12923_s9 }
 0x728   : > { %p10084_p10 = scmp.lt.u32.totalorder %s10082_s29, %s10078_s28  ;;  %p10086_p12 = scmp.lt.u32.totalorder %s10078_s28, %s12871_s25 }
 0x729   : > { %p10080_p7 = pnand %p10079_p4, %p10220_p5 }
 0x72a   : > { %p10085_p11 = por %p10084_p10, %p10083_p9 }
 0x72b   : > { %p10081_p8 = pneg %p10080_p7 }
 0x72c   : > { %p10087_p13 = por %p10086_p12, %p10085_p11 }
 0x72e   : > { %p10088_p0 = pnand %p10087_p13, %p10081_p8 }
 0x730   : > { %10091 = shalt.err (!%p10088_p0)
}
 0x731   : > { %s10130_s13 = smov 128   ;;  %s10131_s27 = smov 8  }
 0x732   : > { %9992 = dma.vmem_to_hbm [thread:$0]  (%p10220_p5), %s12866_s22, 256, %s12871_s25, %s12873_s26, %s10130_s13, %s10130_s13, %s10131_s27  }
 0x733 PF: > { %p9998_p1 = scmp.ge.s32.totalorder %s10126_s12, 2  ;;  %s7403_s14 = sand.u32 1, %s10114_s30  }
 0x734   : > { %s7404_s16 = scalar_lea.sflag [#allocation5], %s7403_s14 }
 0x735   : > { %p9995_p2 = pnand %p9998_p1, %p10224_p6 }
 0x737   : > { %10109 = dma.done.wait (!%p9995_p2), %s7404_s16, 256  }
 0x738   : > { %10111 = vsyncadd (!%p9995_p2), %s7404_s16, 4294967040  ;;  %p19_p3 = scmp.ge.s32.totalorder %s10207_s15, 4   ;;  %s13187_s30 = smov %s10118_s10 }
 0x739   : > { %s13188_s10 = smov %s10122_s11  ;;  %s13189_s11 = smov %s10218_s18 }
 0x73a   : > { %s13190_s12 = smov %s10207_s15  ;;  %21 = sbr.rel (!%p19_p3) target bundleno = 3 (0x3), region = 120 }
 0x741   :  { %7409 = vsyncpa [#allocation5], 1 }
 0x742   :  { %7411 = vsyncpa [#allocation5 + $0x1], 1 }

</bundles_post_ra>
